<compile_context>
chip_gen: v5e
topology: v5e:2x2
jax: 0.10.0
libtpu: 0.0.40
codegen_flags: <defaults>
</compile_context>

<pallas_src>
import jax
import jax.numpy as jnp
import numpy as np
from jax.experimental import pallas as pl
from jax.experimental.pallas import tpu as pltpu


# ----------------------------------------------------------------------------
# tanh-approximation GELU: polynomial on the VPU (in vpu_dtype), tanh on the
# EUP (computed in f32 for lowering robustness; the casts vanish when
# vpu_dtype is already f32).
# ----------------------------------------------------------------------------
_SQRT_2_OVER_PI = 0.7978845608028654


def _gelu_tanh(x):
    u = _SQRT_2_OVER_PI * (x + 0.044715 * (x * x * x))
    t = jnp.tanh(u.astype(jnp.float32)).astype(x.dtype)
    return 0.5 * x * (1.0 + t)


# ----------------------------------------------------------------------------
# Pallas kernel: one (batch, row-block) tile per grid step.
#   x_ref  (1, Ht, W, C)  current row block (already in matmul dtype)
#   xt_ref (1, 1,  W, C)  row just above the block (index clamped at top)
#   xb_ref (1, 1,  W, C)  row just below the block (index clamped at bottom)
#   weights: w_in/b_in (matmul dtype / f32), w_dw/b_dw (vpu dtype),
#            w_out (matmul dtype), b_out (f32)
#   o_ref  (1, Ht, W, C)  output row block
# ----------------------------------------------------------------------------
def _ffn_kernel(x_ref, xt_ref, xb_ref,
                w_in_ref, b_in_ref, w_dw_ref, b_dw_ref, w_out_ref, b_out_ref,
                o_ref):
    _, Ht, W, C = x_ref.shape
    F2 = w_in_ref.shape[1]
    Fh = w_out_ref.shape[0]
    mm_dtype = w_in_ref.dtype
    vpu_dtype = w_dw_ref.dtype

    r = pl.program_id(1)
    is_first = r == 0
    is_last = r == pl.num_programs(1) - 1

    # ---- project_in: 1x1 conv == channel matmul on the MXU (f32 accumulate) --
    def project_in(rows2d):                                # (M, C) -> (M, F2) f32
        y = jnp.dot(rows2d.astype(mm_dtype), w_in_ref[...],
                    preferred_element_type=jnp.float32)
        return y + b_in_ref[...]

    y = project_in(x_ref[0].reshape(Ht * W, C)).reshape(Ht, W, F2)

    # halo rows; the dwconv zero-pads outside the image, so mask them to 0 at
    # the image top / bottom (they come from clamped row indices otherwise).
    y_top = project_in(xt_ref[0, 0])[None]                 # (1, W, F2)
    y_bot = project_in(xb_ref[0, 0])[None]
    y_top = jnp.where(is_first, 0.0, y_top)
    y_bot = jnp.where(is_last, 0.0, y_bot)

    # rows -1 .. Ht of the zero-padded project_in activation
    y_ext = jnp.concatenate([y_top, y, y_bot], axis=0)     # (Ht+2, W, F2) f32

    # horizontal neighbours: sublane (W-axis) rotation on the XLU slot (f32),
    # then cast to vpu_dtype; boundary columns zeroed with one cheap select.
    col = jax.lax.broadcasted_iota(jnp.int32, (1, W, 1), 1)
    yc = y_ext.astype(vpu_dtype)
    yl = jnp.where(col > 0,
                   pltpu.roll(y_ext, shift=1, axis=1).astype(vpu_dtype), 0.0)
    yr = jnp.where(col < W - 1,
                   pltpu.roll(y_ext, shift=W - 1, axis=1).astype(vpu_dtype), 0.0)

    # ---- depthwise 3x3 conv (padding=1): 9 per-channel FMAs on the VPU ----
    def wt(k):                                             # (1, F2) per-channel tap
        return w_dw_ref[k:k + 1, :]

    def rows(t, k):                                        # rows k .. k+Ht-1
        return t[k:k + Ht]

    d = (wt(0) * rows(yl, 0) + wt(1) * rows(yc, 0) + wt(2) * rows(yr, 0) +
         wt(3) * rows(yl, 1) + (wt(4) * rows(yc, 1) + b_dw_ref[...]) +
         wt(5) * rows(yr, 1) +
         wt(6) * rows(yl, 2) + wt(7) * rows(yc, 2) + wt(8) * rows(yr, 2))

    # ---- gating: gelu(x1) * x2  (VPU, transcendental on the EUP) ----
    g = _gelu_tanh(d[:, :, :Fh]) * d[:, :, Fh:]            # (Ht, W, Fh)

    # ---- project_out: 1x1 conv == channel matmul on the MXU (f32 accumulate) -
    out = jnp.dot(g.reshape(Ht * W, Fh).astype(mm_dtype), w_out_ref[...],
                  preferred_element_type=jnp.float32)
    out = out + b_out_ref[...]
    o_ref[0] = out.reshape(Ht, W, C).astype(o_ref.dtype)


# ----------------------------------------------------------------------------
# wrappers
# ----------------------------------------------------------------------------
def _vmem_capacity_bytes():
    try:
        info = pltpu.get_tpu_info()
        cap = int(getattr(info, "vmem_capacity_bytes", 0))
        if cap > 0:
            return cap
    except Exception:
        pass
    return 64 * 1024 * 1024          # conservative fallback (v7x per-core VMEM)


def _pick_block_rows(H, W, F2, vpu_bytes, budget_bytes):
    """Largest divisor of H whose in-kernel temporaries fit the VMEM budget.

    Live per-row temporaries are roughly 3 f32 (Ht+2, W, F2) tensors
    (project_in result + the two rolled copies) plus ~6 vpu-dtype ones
    (shifted taps, d, g, ...).  Using a divisor of H avoids ragged last
    blocks and never falls back to Ht=H when H is large and unaligned.
    """
    per_row = (12 + 6 * vpu_bytes) * W * F2
    max_rows = max(1, min(32, budget_bytes // max(per_row, 1)))
    best = 1
    for cand in range(2, H + 1):
        if cand <= max_rows and H % cand == 0:
            best = cand
    return best


def feed_forward_pallas_nhwc(x, params, *, block_rows=None,
                             matmul_dtype=jnp.bfloat16, vpu_dtype=None,
                             out_dtype=None):
    """x: (N, H, W, C) channels-last.  Returns (N, H, W, C) in out_dtype.

    matmul_dtype: MXU input dtype of the two 1x1 convs (f32 accumulation).
    vpu_dtype:    dtype of the depthwise-conv / GELU / gating stage.
                  Defaults to matmul_dtype (bf16 -> ~2x VPU throughput on
                  v6e/v7x).  Pass jnp.float32 on v5e (no bf16 VPU/EUP).
    out_dtype:    output dtype (defaults to x.dtype).
    """
    N, H, W, C = x.shape
    if vpu_dtype is None:
        vpu_dtype = matmul_dtype
    if out_dtype is None:
        out_dtype = x.dtype

    # hand the kernel matmul_dtype activations directly: halves input DMA and
    # drops the per-element cast (ideally the caller already keeps activations
    # in matmul_dtype so this is a no-op).
    x = x.astype(matmul_dtype)

    w_in = params["w_in"].astype(matmul_dtype)             # (C, 2F)
    b_in = params["b_in"].astype(jnp.float32)              # (1, 2F)
    w_dw = params["w_dw"].astype(vpu_dtype)                # (9, 2F)
    b_dw = params["b_dw"].astype(vpu_dtype)                # (1, 2F)
    w_out = params["w_out"].astype(matmul_dtype)           # (F, C)
    b_out = params["b_out"].astype(jnp.float32)            # (1, C)
    F2 = w_in.shape[1]
    Fh = w_out.shape[0]

    # hardware-derived VMEM budget: ~75% of per-core capacity as the scoped
    # limit (48 MiB on v7x, 96 MiB on v5e/v6e), ~25% for in-kernel temporaries.
    vmem_cap = _vmem_capacity_bytes()
    vmem_limit = max(32 << 20, min(int(0.75 * vmem_cap), 96 << 20))
    scratch_budget = max(vmem_cap // 4, 8 << 20)
    vpu_bytes = jnp.dtype(vpu_dtype).itemsize

    Ht = block_rows
    if Ht is None or H % Ht != 0:
        Ht = _pick_block_rows(H, W, F2, vpu_bytes, scratch_budget)
    R = H // Ht

    x_map = lambda n, r: (n, r, 0, 0)
    top_map = lambda n, r: (n, jnp.maximum(r * Ht - 1, 0), 0, 0)
    bot_map = lambda n, r: (n, jnp.minimum((r + 1) * Ht, H - 1), 0, 0)
    w_map = lambda n, r: (0, 0)

    return pl.pallas_call(
        _ffn_kernel,
        out_shape=jax.ShapeDtypeStruct((N, H, W, C), out_dtype),
        grid=(N, R),
        in_specs=[
            pl.BlockSpec((1, Ht, W, C), x_map),            # row block
            pl.BlockSpec((1, 1, W, C), top_map),           # halo row above
            pl.BlockSpec((1, 1, W, C), bot_map),           # halo row below
            pl.BlockSpec((C, F2), w_map),
            pl.BlockSpec((1, F2), w_map),
            pl.BlockSpec((9, F2), w_map),
            pl.BlockSpec((1, F2), w_map),
            pl.BlockSpec((Fh, C), w_map),
            pl.BlockSpec((1, C), w_map),
        ],
        out_specs=pl.BlockSpec((1, Ht, W, C), x_map),
        compiler_params=pltpu.CompilerParams(
            # each grid point writes a disjoint output block -> both axes can
            # be split across cores / megacore
            dimension_semantics=("parallel", "parallel"),
            vmem_limit_bytes=vmem_limit,
        ),
    )(x, x, x, w_in, b_in, w_dw, b_dw, w_out, b_out)


def feed_forward_pallas(x_nchw, params, **kwargs):
    """PyTorch-compatible NCHW interface.  The two transposes below cost two
    extra HBM passes; keep the surrounding model NHWC and call
    feed_forward_pallas_nhwc directly to avoid them."""
    x = jnp.transpose(x_nchw, (0, 2, 3, 1))
    out = feed_forward_pallas_nhwc(x, params, **kwargs)
    return jnp.transpose(out, (0, 3, 1, 2))


# ----------------------------------------------------------------------------
# pure-JAX f32 reference (exact erf GELU, like F.gelu) -- verification only
# ----------------------------------------------------------------------------
def feed_forward_ref(x_nchw, params):
    x = jnp.transpose(x_nchw, (0, 2, 3, 1))
    N, H, W, C = x.shape
    y = jnp.einsum("nhwc,cf->nhwf", x, params["w_in"]) + params["b_in"]
    yp = jnp.pad(y, ((0, 0), (1, 1), (1, 1), (0, 0)))
    dw = jnp.zeros_like(y)
    for i in range(3):
        for j in range(3):
            dw = dw + yp[:, i:i + H, j:j + W, :] * params["w_dw"][i * 3 + j]
    dw = dw + params["b_dw"]
    Fh = params["w_out"].shape[0]
    x1, x2 = dw[..., :Fh], dw[..., Fh:]
    g = jax.nn.gelu(x1, approximate=False) * x2
    out = jnp.einsum("nhwf,fc->nhwc", g, params["w_out"]) + params["b_out"]
    return jnp.transpose(out, (0, 3, 1, 2))


# ----------------------------------------------------------------------------
# deterministic parameter init (shapes follow FeedForward(dim, factor, bias=True))
# ----------------------------------------------------------------------------
def init_params(key, dim, ffn_expansion_factor):
    hidden = int(dim * ffn_expansion_factor)
    F2 = hidden * 2
    ks = jax.random.split(key, 6)
    return {
        # project_in: Conv2d(dim, 2*hidden, k=1) -> weight stored as (C_in, C_out)
        "w_in": 0.2 * jax.random.normal(ks[0], (dim, F2), jnp.float32),
        "b_in": 0.1 * jax.random.normal(ks[1], (1, F2), jnp.float32),
        # dwconv: Conv2d(2*hidden, 2*hidden, k=3, groups=2*hidden)
        #   PyTorch weight (2F, 1, 3, 3) stored as (9, 2F), tap index = 3*ki + kj
        "w_dw": 0.2 * jax.random.normal(ks[2], (9, F2), jnp.float32),
        "b_dw": 0.1 * jax.random.normal(ks[3], (1, F2), jnp.float32),
        # project_out: Conv2d(hidden, dim, k=1) -> (C_in, C_out)
        "w_out": 0.2 * jax.random.normal(ks[4], (hidden, dim), jnp.float32),
        "b_out": 0.1 * jax.random.normal(ks[5], (1, dim), jnp.float32),
    }


if __name__ == "__main__":
    dim = 4
    ffn_expansion_factor = 2
    N, H, W = 2, 16, 16

    key = jax.random.PRNGKey(0)
    k_x, k_p = jax.random.split(key)
    x = jax.random.normal(k_x, (N, dim, H, W), jnp.float32)   # NCHW, like PyTorch
    params = init_params(k_p, dim, ffn_expansion_factor)

    ref = jax.block_until_ready(feed_forward_ref(x, params))

    # Default path: bf16 MXU inputs and bf16 VPU (dwconv/GELU/gating) with f32
    # accumulation; block_rows=8 -> 2 row blocks per image (exercises the halo).
    out = jax.block_until_ready(feed_forward_pallas(x, params, block_rows=8))
    np.testing.assert_allclose(np.asarray(out), np.asarray(ref),
                               rtol=2e-2, atol=2e-2)

    # All-f32 path with auto block-row selection: matches the exact-GELU
    # reference tightly (remaining gap is the tanh-GELU approximation, <~3e-4).
    out_f32 = jax.block_until_ready(
        feed_forward_pallas(x, params, matmul_dtype=jnp.float32))
    np.testing.assert_allclose(np.asarray(out_f32), np.asarray(ref),
                               rtol=2e-3, atol=2e-3)

    print("KERNEL_OK")
</pallas_src>

<mosaic_0001>
module attributes {stable_mosaic.version = 11 : i64} {
  func.func @_ffn_kernel(%arg0: i32, %arg1: i32, %arg2: memref<1x8x16x4xbf16, #tpu.memory_space<vmem>>, %arg3: memref<1x1x16x4xbf16, #tpu.memory_space<vmem>>, %arg4: memref<1x1x16x4xbf16, #tpu.memory_space<vmem>>, %arg5: memref<4x16xbf16, #tpu.memory_space<vmem>>, %arg6: memref<1x16xf32, #tpu.memory_space<vmem>>, %arg7: memref<9x16xbf16, #tpu.memory_space<vmem>>, %arg8: memref<1x16xbf16, #tpu.memory_space<vmem>>, %arg9: memref<8x4xbf16, #tpu.memory_space<vmem>>, %arg10: memref<1x4xf32, #tpu.memory_space<vmem>>, %arg11: memref<1x8x16x4xf32, #tpu.memory_space<vmem>>) attributes {dimension_semantics = [#tpu.dimension_semantics<parallel>, #tpu.dimension_semantics<parallel>], iteration_bounds = array<i64: 2, 2>, scalar_prefetch = 0 : i64, scratch_operands = 0 : i64, tpu.core_type = #tpu.core_type<tc>, window_params = [{transform_indices = @transform_0, window_bounds = array<i64: 1, 8, 16, 4>}, {transform_indices = @transform_1, window_bounds = array<i64: 1, 1, 16, 4>}, {transform_indices = @transform_2, window_bounds = array<i64: 1, 1, 16, 4>}, {pipeline_mode = #tpu.pipeline_mode<synchronous>, transform_indices = @transform_3, window_bounds = array<i64: 4, 16>}, {pipeline_mode = #tpu.pipeline_mode<synchronous>, transform_indices = @transform_4, window_bounds = array<i64: 1, 16>}, {pipeline_mode = #tpu.pipeline_mode<synchronous>, transform_indices = @transform_5, window_bounds = array<i64: 9, 16>}, {pipeline_mode = #tpu.pipeline_mode<synchronous>, transform_indices = @transform_6, window_bounds = array<i64: 1, 16>}, {pipeline_mode = #tpu.pipeline_mode<synchronous>, transform_indices = @transform_7, window_bounds = array<i64: 8, 4>}, {pipeline_mode = #tpu.pipeline_mode<synchronous>, transform_indices = @transform_8, window_bounds = array<i64: 1, 4>}, {transform_indices = @transform_9, window_bounds = array<i64: 1, 8, 16, 4>}]} {
    %c0_i32 = arith.constant 0 : i32
    %0 = arith.cmpi eq, %arg1, %c0_i32 : i32
    %c1_i32 = arith.constant 1 : i32
    %1 = arith.cmpi eq, %arg1, %c1_i32 : i32
    %c0 = arith.constant 0 : index
    %c0_0 = arith.constant 0 : index
    %c0_1 = arith.constant 0 : index
    %c0_2 = arith.constant 0 : index
    %2 = vector.load %arg2[%c0, %c0_0, %c0_1, %c0_2] : memref<1x8x16x4xbf16, #tpu.memory_space<vmem>>, vector<1x8x16x4xbf16>
    %3 = vector.shape_cast %2 : vector<1x8x16x4xbf16> to vector<8x16x4xbf16>
    %4 = vector.shape_cast %3 : vector<8x16x4xbf16> to vector<128x4xbf16>
    %c0_3 = arith.constant 0 : index
    %c0_4 = arith.constant 0 : index
    %5 = vector.load %arg5[%c0_3, %c0_4] : memref<4x16xbf16, #tpu.memory_space<vmem>>, vector<4x16xbf16>
    %cst = arith.constant dense<0.000000e+00> : vector<128x16xf32>
    %6 = tpu.matmul %4, %5, %cst {dimension_numbers = #tpu.dot_dimension_numbers<[1], [0], [0], [1], [0, 0, 1, 1], [], []>} : vector<128x4xbf16>, vector<4x16xbf16>, vector<128x16xf32> -> vector<128x16xf32>
    %c0_5 = arith.constant 0 : index
    %c0_6 = arith.constant 0 : index
    %7 = vector.load %arg6[%c0_5, %c0_6] : memref<1x16xf32, #tpu.memory_space<vmem>>, vector<1x16xf32>
    %8 = vector.broadcast %7 : vector<1x16xf32> to vector<128x16xf32>
    %9 = arith.addf %6, %8 : vector<128x16xf32>
    %10 = vector.shape_cast %9 : vector<128x16xf32> to vector<8x16x16xf32>
    %c0_7 = arith.constant 0 : index
    %c0_8 = arith.constant 0 : index
    %c0_9 = arith.constant 0 : index
    %c0_10 = arith.constant 0 : index
    %11 = vector.load %arg3[%c0_7, %c0_8, %c0_9, %c0_10] : memref<1x1x16x4xbf16, #tpu.memory_space<vmem>>, vector<1x1x16x4xbf16>
    %12 = vector.shape_cast %11 : vector<1x1x16x4xbf16> to vector<16x4xbf16>
    %c0_11 = arith.constant 0 : index
    %c0_12 = arith.constant 0 : index
    %13 = vector.load %arg5[%c0_11, %c0_12] : memref<4x16xbf16, #tpu.memory_space<vmem>>, vector<4x16xbf16>
    %cst_13 = arith.constant dense<0.000000e+00> : vector<16x16xf32>
    %14 = tpu.matmul %12, %13, %cst_13 {dimension_numbers = #tpu.dot_dimension_numbers<[1], [0], [0], [1], [0, 0, 1, 1], [], []>} : vector<16x4xbf16>, vector<4x16xbf16>, vector<16x16xf32> -> vector<16x16xf32>
    %c0_14 = arith.constant 0 : index
    %c0_15 = arith.constant 0 : index
    %15 = vector.load %arg6[%c0_14, %c0_15] : memref<1x16xf32, #tpu.memory_space<vmem>>, vector<1x16xf32>
    %16 = vector.broadcast %15 : vector<1x16xf32> to vector<16x16xf32>
    %17 = arith.addf %14, %16 : vector<16x16xf32>
    %18 = vector.shape_cast %17 : vector<16x16xf32> to vector<1x16x16xf32>
    %c0_16 = arith.constant 0 : index
    %c0_17 = arith.constant 0 : index
    %c0_18 = arith.constant 0 : index
    %c0_19 = arith.constant 0 : index
    %19 = vector.load %arg4[%c0_16, %c0_17, %c0_18, %c0_19] : memref<1x1x16x4xbf16, #tpu.memory_space<vmem>>, vector<1x1x16x4xbf16>
    %20 = vector.shape_cast %19 : vector<1x1x16x4xbf16> to vector<16x4xbf16>
    %c0_20 = arith.constant 0 : index
    %c0_21 = arith.constant 0 : index
    %21 = vector.load %arg5[%c0_20, %c0_21] : memref<4x16xbf16, #tpu.memory_space<vmem>>, vector<4x16xbf16>
    %cst_22 = arith.constant dense<0.000000e+00> : vector<16x16xf32>
    %22 = tpu.matmul %20, %21, %cst_22 {dimension_numbers = #tpu.dot_dimension_numbers<[1], [0], [0], [1], [0, 0, 1, 1], [], []>} : vector<16x4xbf16>, vector<4x16xbf16>, vector<16x16xf32> -> vector<16x16xf32>
    %c0_23 = arith.constant 0 : index
    %c0_24 = arith.constant 0 : index
    %23 = vector.load %arg6[%c0_23, %c0_24] : memref<1x16xf32, #tpu.memory_space<vmem>>, vector<1x16xf32>
    %24 = vector.broadcast %23 : vector<1x16xf32> to vector<16x16xf32>
    %25 = arith.addf %22, %24 : vector<16x16xf32>
    %26 = vector.shape_cast %25 : vector<16x16xf32> to vector<1x16x16xf32>
    %cst_25 = arith.constant 0.000000e+00 : f32
    %27 = vector.broadcast %cst_25 : f32 to vector<1x16x16xf32>
    %28 = arith.select %0, %27, %18 : vector<1x16x16xf32>
    %cst_26 = arith.constant 0.000000e+00 : f32
    %29 = vector.broadcast %cst_26 : f32 to vector<1x16x16xf32>
    %30 = arith.select %1, %29, %26 : vector<1x16x16xf32>
    %31 = tpu.concatenate %28, %10, %30 in 0 : vector<1x16x16xf32>, vector<8x16x16xf32>, vector<1x16x16xf32> -> vector<10x16x16xf32>
    %32 = tpu.iota {dimensions = array<i32: 1>} : vector<1x16x1xi32>
    %33 = arith.truncf %31 : vector<10x16x16xf32> to vector<10x16x16xbf16>
    %c0_i32_27 = arith.constant 0 : i32
    %34 = vector.broadcast %c0_i32_27 : i32 to vector<1x16x1xi32>
    %35 = arith.cmpi sgt, %32, %34 : vector<1x16x1xi32>
    %c1_i32_28 = arith.constant 1 : i32
    %36 = tpu.dynamic_rotate %31 by %c1_i32_28 dim 1 : vector<10x16x16xf32>, i32 -> vector<10x16x16xf32>
    %37 = arith.truncf %36 : vector<10x16x16xf32> to vector<10x16x16xbf16>
    %cst_29 = arith.constant 0.000000e+00 : f32
    %38 = arith.truncf %cst_29 : f32 to bf16
    %39 = vector.shape_cast %35 : vector<1x16x1xi1> to vector<1x16x1xi1>
    %40 = vector.broadcast %39 : vector<1x16x1xi1> to vector<10x16x16xi1>
    %41 = vector.broadcast %38 : bf16 to vector<10x16x16xbf16>
    %42 = arith.select %40, %37, %41 : vector<10x16x16xi1>, vector<10x16x16xbf16>
    %c15_i32 = arith.constant 15 : i32
    %43 = vector.broadcast %c15_i32 : i32 to vector<1x16x1xi32>
    %44 = arith.cmpi slt, %32, %43 : vector<1x16x1xi32>
    %c15_i32_30 = arith.constant 15 : i32
    %45 = tpu.dynamic_rotate %31 by %c15_i32_30 dim 1 : vector<10x16x16xf32>, i32 -> vector<10x16x16xf32>
    %46 = arith.truncf %45 : vector<10x16x16xf32> to vector<10x16x16xbf16>
    %cst_31 = arith.constant 0.000000e+00 : f32
    %47 = arith.truncf %cst_31 : f32 to bf16
    %48 = vector.shape_cast %44 : vector<1x16x1xi1> to vector<1x16x1xi1>
    %49 = vector.broadcast %48 : vector<1x16x1xi1> to vector<10x16x16xi1>
    %50 = vector.broadcast %47 : bf16 to vector<10x16x16xbf16>
    %51 = arith.select %49, %46, %50 : vector<10x16x16xi1>, vector<10x16x16xbf16>
    %c0_32 = arith.constant 0 : index
    %c0_33 = arith.constant 0 : index
    %52 = vector.load %arg7[%c0_32, %c0_33] : memref<9x16xbf16, #tpu.memory_space<vmem>>, vector<1x16xbf16>
    %53 = vector.extract_strided_slice %42 {offsets = [0, 0, 0], sizes = [8, 16, 16], strides = [1, 1, 1]} : vector<10x16x16xbf16> to vector<8x16x16xbf16>
    %54 = vector.shape_cast %52 : vector<1x16xbf16> to vector<1x1x16xbf16>
    %55 = vector.broadcast %54 : vector<1x1x16xbf16> to vector<8x16x16xbf16>
    %56 = arith.mulf %55, %53 : vector<8x16x16xbf16>
    %c1 = arith.constant 1 : index
    %c0_34 = arith.constant 0 : index
    %57 = vector.load %arg7[%c1, %c0_34] : memref<9x16xbf16, #tpu.memory_space<vmem>>, vector<1x16xbf16>
    %58 = vector.extract_strided_slice %33 {offsets = [0, 0, 0], sizes = [8, 16, 16], strides = [1, 1, 1]} : vector<10x16x16xbf16> to vector<8x16x16xbf16>
    %59 = vector.shape_cast %57 : vector<1x16xbf16> to vector<1x1x16xbf16>
    %60 = vector.broadcast %59 : vector<1x1x16xbf16> to vector<8x16x16xbf16>
    %61 = arith.mulf %60, %58 : vector<8x16x16xbf16>
    %62 = arith.addf %56, %61 : vector<8x16x16xbf16>
    %c2 = arith.constant 2 : index
    %c0_35 = arith.constant 0 : index
    %63 = vector.load %arg7[%c2, %c0_35] : memref<9x16xbf16, #tpu.memory_space<vmem>>, vector<1x16xbf16>
    %64 = vector.extract_strided_slice %51 {offsets = [0, 0, 0], sizes = [8, 16, 16], strides = [1, 1, 1]} : vector<10x16x16xbf16> to vector<8x16x16xbf16>
    %65 = vector.shape_cast %63 : vector<1x16xbf16> to vector<1x1x16xbf16>
    %66 = vector.broadcast %65 : vector<1x1x16xbf16> to vector<8x16x16xbf16>
    %67 = arith.mulf %66, %64 : vector<8x16x16xbf16>
    %68 = arith.addf %62, %67 : vector<8x16x16xbf16>
    %c3 = arith.constant 3 : index
    %c0_36 = arith.constant 0 : index
    %69 = vector.load %arg7[%c3, %c0_36] : memref<9x16xbf16, #tpu.memory_space<vmem>>, vector<1x16xbf16>
    %70 = vector.extract_strided_slice %42 {offsets = [1, 0, 0], sizes = [8, 16, 16], strides = [1, 1, 1]} : vector<10x16x16xbf16> to vector<8x16x16xbf16>
    %71 = vector.shape_cast %69 : vector<1x16xbf16> to vector<1x1x16xbf16>
    %72 = vector.broadcast %71 : vector<1x1x16xbf16> to vector<8x16x16xbf16>
    %73 = arith.mulf %72, %70 : vector<8x16x16xbf16>
    %74 = arith.addf %68, %73 : vector<8x16x16xbf16>
    %c4 = arith.constant 4 : index
    %c0_37 = arith.constant 0 : index
    %75 = vector.load %arg7[%c4, %c0_37] : memref<9x16xbf16, #tpu.memory_space<vmem>>, vector<1x16xbf16>
    %76 = vector.extract_strided_slice %33 {offsets = [1, 0, 0], sizes = [8, 16, 16], strides = [1, 1, 1]} : vector<10x16x16xbf16> to vector<8x16x16xbf16>
    %77 = vector.shape_cast %75 : vector<1x16xbf16> to vector<1x1x16xbf16>
    %78 = vector.broadcast %77 : vector<1x1x16xbf16> to vector<8x16x16xbf16>
    %79 = arith.mulf %78, %76 : vector<8x16x16xbf16>
    %c0_38 = arith.constant 0 : index
    %c0_39 = arith.constant 0 : index
    %80 = vector.load %arg8[%c0_38, %c0_39] : memref<1x16xbf16, #tpu.memory_space<vmem>>, vector<1x16xbf16>
    %81 = vector.shape_cast %80 : vector<1x16xbf16> to vector<1x1x16xbf16>
    %82 = vector.broadcast %81 : vector<1x1x16xbf16> to vector<8x16x16xbf16>
    %83 = arith.addf %79, %82 : vector<8x16x16xbf16>
    %84 = arith.addf %74, %83 : vector<8x16x16xbf16>
    %c5 = arith.constant 5 : index
    %c0_40 = arith.constant 0 : index
    %85 = vector.load %arg7[%c5, %c0_40] : memref<9x16xbf16, #tpu.memory_space<vmem>>, vector<1x16xbf16>
    %86 = vector.extract_strided_slice %51 {offsets = [1, 0, 0], sizes = [8, 16, 16], strides = [1, 1, 1]} : vector<10x16x16xbf16> to vector<8x16x16xbf16>
    %87 = vector.shape_cast %85 : vector<1x16xbf16> to vector<1x1x16xbf16>
    %88 = vector.broadcast %87 : vector<1x1x16xbf16> to vector<8x16x16xbf16>
    %89 = arith.mulf %88, %86 : vector<8x16x16xbf16>
    %90 = arith.addf %84, %89 : vector<8x16x16xbf16>
    %c6 = arith.constant 6 : index
    %c0_41 = arith.constant 0 : index
    %91 = vector.load %arg7[%c6, %c0_41] : memref<9x16xbf16, #tpu.memory_space<vmem>>, vector<1x16xbf16>
    %92 = vector.extract_strided_slice %42 {offsets = [2, 0, 0], sizes = [8, 16, 16], strides = [1, 1, 1]} : vector<10x16x16xbf16> to vector<8x16x16xbf16>
    %93 = vector.shape_cast %91 : vector<1x16xbf16> to vector<1x1x16xbf16>
    %94 = vector.broadcast %93 : vector<1x1x16xbf16> to vector<8x16x16xbf16>
    %95 = arith.mulf %94, %92 : vector<8x16x16xbf16>
    %96 = arith.addf %90, %95 : vector<8x16x16xbf16>
    %c7 = arith.constant 7 : index
    %c0_42 = arith.constant 0 : index
    %97 = vector.load %arg7[%c7, %c0_42] : memref<9x16xbf16, #tpu.memory_space<vmem>>, vector<1x16xbf16>
    %98 = vector.extract_strided_slice %33 {offsets = [2, 0, 0], sizes = [8, 16, 16], strides = [1, 1, 1]} : vector<10x16x16xbf16> to vector<8x16x16xbf16>
    %99 = vector.shape_cast %97 : vector<1x16xbf16> to vector<1x1x16xbf16>
    %100 = vector.broadcast %99 : vector<1x1x16xbf16> to vector<8x16x16xbf16>
    %101 = arith.mulf %100, %98 : vector<8x16x16xbf16>
    %102 = arith.addf %96, %101 : vector<8x16x16xbf16>
    %c8 = arith.constant 8 : index
    %c0_43 = arith.constant 0 : index
    %103 = vector.load %arg7[%c8, %c0_43] : memref<9x16xbf16, #tpu.memory_space<vmem>>, vector<1x16xbf16>
    %104 = vector.extract_strided_slice %51 {offsets = [2, 0, 0], sizes = [8, 16, 16], strides = [1, 1, 1]} : vector<10x16x16xbf16> to vector<8x16x16xbf16>
    %105 = vector.shape_cast %103 : vector<1x16xbf16> to vector<1x1x16xbf16>
    %106 = vector.broadcast %105 : vector<1x1x16xbf16> to vector<8x16x16xbf16>
    %107 = arith.mulf %106, %104 : vector<8x16x16xbf16>
    %108 = arith.addf %102, %107 : vector<8x16x16xbf16>
    %109 = vector.extract_strided_slice %108 {offsets = [0, 0, 0], sizes = [8, 16, 8], strides = [1, 1, 1]} : vector<8x16x16xbf16> to vector<8x16x8xbf16>
    %110 = arith.mulf %109, %109 : vector<8x16x8xbf16>
    %111 = arith.mulf %110, %109 : vector<8x16x8xbf16>
    %cst_44 = arith.constant 4.467770e-02 : bf16
    %112 = vector.broadcast %cst_44 : bf16 to vector<8x16x8xbf16>
    %113 = arith.mulf %112, %111 : vector<8x16x8xbf16>
    %114 = arith.addf %109, %113 : vector<8x16x8xbf16>
    %cst_45 = arith.constant 7.968750e-01 : bf16
    %115 = vector.broadcast %cst_45 : bf16 to vector<8x16x8xbf16>
    %116 = arith.mulf %115, %114 : vector<8x16x8xbf16>
    %117 = arith.extf %116 : vector<8x16x8xbf16> to vector<8x16x8xf32>
    %118 = math.tanh %117 : vector<8x16x8xf32>
    %119 = arith.truncf %118 : vector<8x16x8xf32> to vector<8x16x8xbf16>
    %cst_46 = arith.constant 5.000000e-01 : bf16
    %120 = vector.broadcast %cst_46 : bf16 to vector<8x16x8xbf16>
    %121 = arith.mulf %120, %109 : vector<8x16x8xbf16>
    %cst_47 = arith.constant 1.000000e+00 : bf16
    %122 = vector.broadcast %cst_47 : bf16 to vector<8x16x8xbf16>
    %123 = arith.addf %122, %119 : vector<8x16x8xbf16>
    %124 = arith.mulf %121, %123 : vector<8x16x8xbf16>
    %125 = vector.extract_strided_slice %108 {offsets = [0, 0, 8], sizes = [8, 16, 8], strides = [1, 1, 1]} : vector<8x16x16xbf16> to vector<8x16x8xbf16>
    %126 = arith.mulf %124, %125 : vector<8x16x8xbf16>
    %127 = vector.shape_cast %126 : vector<8x16x8xbf16> to vector<128x8xbf16>
    %c0_48 = arith.constant 0 : index
    %c0_49 = arith.constant 0 : index
    %128 = vector.load %arg9[%c0_48, %c0_49] : memref<8x4xbf16, #tpu.memory_space<vmem>>, vector<8x4xbf16>
    %cst_50 = arith.constant dense<0.000000e+00> : vector<128x4xf32>
    %129 = tpu.matmul %127, %128, %cst_50 {dimension_numbers = #tpu.dot_dimension_numbers<[1], [0], [0], [1], [0, 0, 1, 1], [], []>} : vector<128x8xbf16>, vector<8x4xbf16>, vector<128x4xf32> -> vector<128x4xf32>
    %c0_51 = arith.constant 0 : index
    %c0_52 = arith.constant 0 : index
    %130 = vector.load %arg10[%c0_51, %c0_52] : memref<1x4xf32, #tpu.memory_space<vmem>>, vector<1x4xf32>
    %131 = vector.broadcast %130 : vector<1x4xf32> to vector<128x4xf32>
    %132 = arith.addf %129, %131 : vector<128x4xf32>
    %133 = vector.shape_cast %132 : vector<128x4xf32> to vector<8x16x4xf32>
    %c0_53 = arith.constant 0 : index
    %c0_54 = arith.constant 0 : index
    %c0_55 = arith.constant 0 : index
    %c0_56 = arith.constant 0 : index
    %134 = vector.load %arg11[%c0_53, %c0_54, %c0_55, %c0_56] : memref<1x8x16x4xf32, #tpu.memory_space<vmem>>, vector<1x8x16x4xf32>
    %135 = vector.shape_cast %134 : vector<1x8x16x4xf32> to vector<8x16x4xf32>
    %136 = vector.shape_cast %133 : vector<8x16x4xf32> to vector<1x8x16x4xf32>
    tpu.vector_store %arg11[%c0_53, %c0_54, %c0_55, %c0_56], %136 {strides = array<i32>} : memref<1x8x16x4xf32, #tpu.memory_space<vmem>>, vector<1x8x16x4xf32>,
    return
  }
  func.func @transform_0(%arg0: i32, %arg1: i32) -> (i32, i32, i32, i32) {
    %c0_i32 = arith.constant 0 : i32
    %c0_i32_0 = arith.constant 0 : i32
    %c0_i32_1 = arith.constant 0 : i32
    return %arg0, %arg1, %c0_i32, %c0_i32_0 : i32, i32, i32, i32
  }
  func.func @transform_1(%arg0: i32, %arg1: i32) -> (i32, i32, i32, i32) {
    %c8_i32 = arith.constant 8 : i32
    %0 = arith.muli %arg1, %c8_i32 : i32
    %c1_i32 = arith.constant 1 : i32
    %1 = arith.subi %0, %c1_i32 : i32
    %c0_i32 = arith.constant 0 : i32
    %2 = arith.maxsi %1, %c0_i32 : i32
    %c0_i32_0 = arith.constant 0 : i32
    %c0_i32_1 = arith.constant 0 : i32
    %c0_i32_2 = arith.constant 0 : i32
    return %arg0, %2, %c0_i32_0, %c0_i32_1 : i32, i32, i32, i32
  }
  func.func @transform_2(%arg0: i32, %arg1: i32) -> (i32, i32, i32, i32) {
    %c1_i32 = arith.constant 1 : i32
    %0 = arith.addi %arg1, %c1_i32 : i32
    %c8_i32 = arith.constant 8 : i32
    %1 = arith.muli %0, %c8_i32 : i32
    %c15_i32 = arith.constant 15 : i32
    %2 = arith.minsi %1, %c15_i32 : i32
    %c0_i32 = arith.constant 0 : i32
    %c0_i32_0 = arith.constant 0 : i32
    %c0_i32_1 = arith.constant 0 : i32
    return %arg0, %2, %c0_i32, %c0_i32_0 : i32, i32, i32, i32
  }
  func.func @transform_3(%arg0: i32, %arg1: i32) -> (i32, i32) {
    %c0_i32 = arith.constant 0 : i32
    %c0_i32_0 = arith.constant 0 : i32
    %c0_i32_1 = arith.constant 0 : i32
    return %c0_i32, %c0_i32_0 : i32, i32
  }
  func.func @transform_4(%arg0: i32, %arg1: i32) -> (i32, i32) {
    %c0_i32 = arith.constant 0 : i32
    %c0_i32_0 = arith.constant 0 : i32
    %c0_i32_1 = arith.constant 0 : i32
    return %c0_i32, %c0_i32_0 : i32, i32
  }
  func.func @transform_5(%arg0: i32, %arg1: i32) -> (i32, i32) {
    %c0_i32 = arith.constant 0 : i32
    %c0_i32_0 = arith.constant 0 : i32
    %c0_i32_1 = arith.constant 0 : i32
    return %c0_i32, %c0_i32_0 : i32, i32
  }
  func.func @transform_6(%arg0: i32, %arg1: i32) -> (i32, i32) {
    %c0_i32 = arith.constant 0 : i32
    %c0_i32_0 = arith.constant 0 : i32
    %c0_i32_1 = arith.constant 0 : i32
    return %c0_i32, %c0_i32_0 : i32, i32
  }
  func.func @transform_7(%arg0: i32, %arg1: i32) -> (i32, i32) {
    %c0_i32 = arith.constant 0 : i32
    %c0_i32_0 = arith.constant 0 : i32
    %c0_i32_1 = arith.constant 0 : i32
    return %c0_i32, %c0_i32_0 : i32, i32
  }
  func.func @transform_8(%arg0: i32, %arg1: i32) -> (i32, i32) {
    %c0_i32 = arith.constant 0 : i32
    %c0_i32_0 = arith.constant 0 : i32
    %c0_i32_1 = arith.constant 0 : i32
    return %c0_i32, %c0_i32_0 : i32, i32
  }
  func.func @transform_9(%arg0: i32, %arg1: i32) -> (i32, i32, i32, i32) {
    %c0_i32 = arith.constant 0 : i32
    %c0_i32_0 = arith.constant 0 : i32
    %c0_i32_1 = arith.constant 0 : i32
    return %arg0, %arg1, %c0_i32, %c0_i32_0 : i32, i32, i32, i32
  }
}

</mosaic_0001>

<bundles_post_ra>
// kernel: tpu_custom_call.1
= control target key start
LH: loop header
LB: loop body
LE: loop exit
PB: predicated region body
PF: predicated region fallthrough
CT: control target
= control target key end

     0   :  { %s3015_s30 = smov 0   ;;  %s3017_s10 = smov 0   ;;  %s4349_s0 = inlined_call_operand.vmem [shape: bf16[2,16,16,4], index: 0, kind: input, shape index: {}]   ;;  %s4350_s1 = inlined_call_operand.vmem [shape: bf16[2,16,16,4], index: 1, kind: input, shape index: {}]   ;;  %s4351_s2 = inlined_call_operand.vmem [shape: bf16[2,16,16,4], index: 2, kind: input, shape index: {}]   ;;  %s4352_s3 = inlined_call_operand.vmem [shape: bf16[4,16], index: 3, kind: input, shape index: {}]   ;;  %s4353_s4 = inlined_call_operand.vmem [shape: f32[1,16], index: 4, kind: input, shape index: {}]   ;;  %s4354_s5 = inlined_call_operand.vmem [shape: bf16[9,16], index: 5, kind: input, shape index: {}]   ;;  %s4355_s6 = inlined_call_operand.vmem [shape: bf16[1,16], index: 6, kind: input, shape index: {}]   ;;  %s4356_s7 = inlined_call_operand.vmem [shape: bf16[8,4], index: 7, kind: input, shape index: {}]   ;;  %s4357_s8 = inlined_call_operand.vmem [shape: f32[1,4], index: 8, kind: input, shape index: {}]   ;;  %s4358_s9 = inlined_call_operand.vmem [shape: f32[2,16,16,4], index: 9, kind: output, shape index: {}]  }
   0x1   :  { %s3019_s11 = smov 0   ;;  %s3021_s12 = smov 0  }
   0x2   :  { %s3023_s13 = smov 0  }
   0x3 LB: > { %s28_s14 = sadd.s32 1, %s2953_s11  ;;  %s31_s15 = sadd.s32 1, %s2957_s12  ;;  %s2961_s13 = sphi %s3023_s13, %s19_s13   ;;  %s2957_s12 = sphi %s3021_s12, %s4468_s12   ;;  %s2953_s11 = sphi %s3019_s11, %s4467_s11   ;;  %s2949_s10 = sphi %s3017_s10, %s4466_s10   ;;  %s2945_s30 = sphi %s3015_s30, %s4465_s30  }
   0x4   : > { %p29_p0 = scmp.ge.s32.totalorder %s28_s14, 2  ;;  %p2700_p1 = scmp.ge.s32.totalorder %s2961_s13, 1 }
   0x5   : > { %p373_p2 = scmp.lt.s32.totalorder %s2961_s13, 5 }
   0x6   : > { %s4470_s14 = smov (%p29_p0, %s28_s14), 0  ;;  %s4472_s15 = smov (!%p29_p0, %s31_s15), %s2957_s12 }
   0x7   : > { %p374_p3 = pnand %p2700_p1, %p373_p2  ;;  %p33_p4 = scmp.ge.s32.totalorder %s4472_s15, 2 }
   0x9   : > { %s4474_s15 = smov (%p33_p4, %s4472_s15), 0  ;;  %377 = sbr.rel (%p374_p3) target bundleno = 760 (0x2f8), region = 56 }
   0xe   : > { %v520_v0 = vld [vmem:[%s4352_s3] sm:$0x3]  ;;  %vm590_vm0 = vcmask 1041408   ;;  %s3051_s18 = sshll.u32 %s2945_s30, 3  ;;  %p446_p5 = scmp.lt.s32.totalorder %s2949_s10, 1  ;;  %vm565_vm1 = vcmask 31744   ;;  %v701_v23 = vlaneseq }
   0xf   : > { %v592_v1 = vsel %vm590_vm0, %v520_v0, 0  ;;  %p448_p6 = scmp.lt.s32.totalorder %s3051_s18, 15  ;;  %s2793_s19 = sadd.s32 8, %s3051_s18  ;;  %v902_v12 = vld [vmem:[%s4354_s5] sm:$0x1]  ;;  %vm2963_vm7 = vmmov 1  }
  0x10   : > { %601 = vmatpush.bf16.msra.mxu0 %v592_v1  ;;  %2804 = vmatpush.bf16.msra.mxu1 %v592_v1  ;;  %s4476_s10 = smov (!%p446_p5, %s2949_s10), 1  ;;  %p475_p7 = scmp.lt.s32.totalorder %s2793_s19, 15  ;;  %v1294_v13 = vld [vmem:[%s4354_s5] sm:$0x4]  ;;  %v956_v14 = vshrl.u32 %v902_v12, 16  ;;  %v904_v17 = vpack.i.b16 %v902_v12, %v902_v12  ;;  %v3118_v35 = vshrl.u32 %v701_v23, 7  ;;  %vm3162_vm8 = vmpackc.low %vm2963_vm7, %vm2963_vm7 }
  0x11   : > { %s449_s20 = scalar_select %p448_p6, %s3051_s18, 15  ;;  %684 = vmatpush.bf16.msra.mxu2 %v592_v1  ;;  %v1296_v15 = vpack.i.b16 %v1294_v13, %v1294_v13  ;;  %v1555_v16 = vld [vmem:[%s4354_s5] sm:$0x8]  ;;  %v1334_v19 = vld [vmem:[%s4355_s6] sm:$0x1]  ;;  %v1452_v25 = vshrl.u32 %v1294_v13, 16 }
  0x12   : > { %s3056_s21 = sshll.u32 %s4476_s10, 5  ;;  %s4478_s19 = smov (!%p475_p7, %s2793_s19), 15  ;;  %v957_v18 = vpack.i.b16 %v956_v14, %v956_v14  ;;  %v1073_v20 = vld [vmem:[%s4354_s5] sm:$0x2]  ;;  %v3112_v21 = vld [vmem:[%s4353_s4] ss:$0 sm:$0xff]  ;;  %v1336_v26 = vpack.i.b16 %v1334_v19, %v1334_v19  ;;  %v1557_v38 = vpack.i.b16 %v1555_v16, %v1555_v16 }
  0x13   : > { %s2702_s22 = sshll.u32 %s449_s20, 1  ;;  %s4480_s19 = smov (!%p475_p7, %s4478_s19), 15  ;;  %v1659_v22 = vshrl.u32 %v1555_v16, 16  ;;  %v1298_v24 = vperm.slane %v1296_v15, 2  ;;  %v1191_v27 = vshrl.u32 %v1073_v20, 16  ;;  %v906_v29 = vperm.slane %v904_v17, 0 }
  0x14   : > { %660 = vmatpush.bf16.msrb.mxu1 %v592_v1  ;;  %s3059_s23 = sadd.s32 %s3056_s21, %s2702_s22  ;;  %s2719_s28 = sshll.u32 %s4480_s19, 1  ;;  %v959_v30 = vperm.slane %v957_v18, 0  ;;  %v1453_v37 = vpack.i.b16 %v1452_v25, %v1452_v25  ;;  %v1075_v39 = vpack.i.b16 %v1073_v20, %v1073_v20  ;;  %v1338_v41 = vperm.slane %v1336_v26, 0 }
  0x15   : > { %s2704_s24 = sshll.u32 %s3059_s23, 2  ;;  %s483_s29 = sadd.s32 %s2719_s28, %s3056_s21  ;;  %v1660_v34 = vpack.i.b16 %v1659_v22, %v1659_v22  ;;  %v3120_v36 = vunpack.c.l.bf16 %v1298_v24  ;;  %v1192_v43 = vpack.i.b16 %v1191_v27, %v1191_v27  ;;  %v703_v47 = vadd.s32 8, %v3118_v35 }
  0x16   : > { %s3065_s27 = scalar_lea.vmem %s4349_s0, %s2704_s24  ;;  %s2721_s10 = sshll.u32 %s483_s29, 2  ;;  %v3125_v48 = vunpack.c.l.bf16 %v959_v30  ;;  %v1455_v49 = vperm.slane %v1453_v37, 2  ;;  %v1559_v50 = vperm.slane %v1557_v38, 3  ;;  %v1077_v51 = vperm.slane %v1075_v39, 1 }
  0x17   : > { %v2794_v2 = vld [vmem:[%s3065_s27] sm:$0xff]  ;;  %v2799_v3 = vld [vmem:[%s3065_s27 + $0x28] sm:$0xff]  ;;  %s485_s20 = scalar_lea.vmem %s4351_s2, %s2721_s10  ;;  %v2800_v6 = vld [vmem:[%s3065_s27 + $0x30] sm:$0xff]  ;;  %s2706_s22 = sadd.s32 4294967295, %s3051_s18  ;;  %v1662_v46 = vperm.slane %v1660_v34, 3  ;;  %v3127_v52 = vunpack.c.l.bf16 %v906_v29  ;;  %v3130_v54 = vunpack.c.l.bf16 %v1338_v41  ;;  %v1194_v55 = vperm.slane %v1192_v43, 1 }
  0x18   : > { %2758 = vmatmul.msk.bf16.vlgmr.msra.gmra.mxu0 %vm565_vm1, %v2794_v2  ;;  %2763 = vmatmul.msk.bf16.vlgmr.msra.gmra.mxu1 %vm565_vm1, %v2799_v3  ;;  %v2803_v4 = vld [vmem:[%s485_s20] sm:$0xff]  ;;  %v2795_v5 = vld [vmem:[%s3065_s27 + $0x8] sm:$0xff]  ;;  %p458_p8 = scmp.gt.s32.totalorder %s2706_s22, 0  ;;  %p2707_p9 = scmp.lt.s32.totalorder %s2706_s22, 15  ;;  %v2796_v7 = vld [vmem:[%s3065_s27 + $0x10] sm:$0xff]  ;;  %vm724_vm2 = vcmp.gt.s32.totalorder %v3118_v35, 0  ;;  %v3138_v60 = vunpack.c.l.bf16 %v1455_v49  ;;  %v3140_v61 = vunpack.c.l.bf16 %v1559_v50  ;;  %v3143_v63 = vunpack.c.l.bf16 %v1077_v51 }
  0x19   : > { %2775 = vmatmul.msk.bf16.vlgmr.msra.gmra.mxu2 %vm565_vm1, %v2803_v4  ;;  %v2801_v8 = vld [vmem:[%s3065_s27 + $0x38] sm:$0xff]  ;;  %v2798_v11 = vld [vmem:[%s3065_s27 + $0x20] sm:$0xff]  ;;  %vm746_vm3 = vcmp.lt.s32.totalorder %v3118_v35, 1  ;;  %vm835_vm4 = vcmp.lt.s32.totalorder %v3118_v35, 7  ;;  %v3136_v59 = vunpack.c.l.bf16 %v1662_v46  ;;  %vm814_vm5 = vcmp.lt.s32.totalorder %v703_v47, 15  ;;  %vm3154_vm6 = vmpackc.low %vm724_vm2, %vm724_vm2  ;;  %p502_p10 = scmp.eq.s32.totalorder %s2945_s30, 0 }
  0x1a   : > { %s4482_s22 = smov (!%p458_p8, %s2706_s22), 0  ;;  %v2797_v9 = vld [vmem:[%s3065_s27 + $0x18] sm:$0xff]  ;;  %4370 = vst [vmem:[#allocation2_spill] sm:$0xff] %v3138_v60  ;;  %v3146_v3 = vunpack.c.l.bf16 %v1194_v55  ;;  %vm3172_vm9 = vmpackc.low %vm814_vm5, %vm814_vm5  ;;  %p503_p11 = scmp.eq.s32.totalorder %s2945_s30, 1  ;;  %vm2480_vm12 = vcmask 1043456   ;;  %vm2455_vm13 = vcmask 64512  }
  0x1b   : > { %s4484_s22 = smov (!%p2707_p9, %s4482_s22), 15  ;;  %s2964_s30 = smov 120  }
  0x1c   : > { %s2712_s19 = sshll.u32 %s4484_s22, 1  ;;  %s2725_s22 = sshll.u32 %s3059_s23, 3 }
  0x1d   : > { %s466_s24 = sadd.s32 %s2712_s19, %s3056_s21  ;;  %s4300_s26 = scalar_lea.vmem %s4358_s9, %s2725_s22 }
  0x1e   : > { %s2714_s25 = sshll.u32 %s466_s24, 2 }
  0x1f   : > { %s468_s29 = scalar_lea.vmem %s4350_s1, %s2714_s25 }
  0x20   : > { %v2802_v10 = vld [vmem:[%s468_s29] sm:$0xff]  ;;  %s691_s16 = scalar_select %p502_p10, 1, 0 }
  0x21   : > { %s696_s21 = scalar_select %p503_p11, 1, 0 }
  0x28   : > { %2759 = vmatmul.msk.bf16.gmra.mxu0 %vm565_vm1, %v2795_v5  ;;  %2764 = vmatmul.msk.bf16.gmra.mxu1 %vm565_vm1, %v2800_v6 }
  0x38   : > { %2760 = vmatmul.msk.bf16.gmra.mxu0 %vm565_vm1, %v2796_v7  ;;  %2765 = vmatmul.msk.bf16.gmra.mxu1 %vm565_vm1, %v2801_v8 }
  0x48   : > { %2761 = vmatmul.msk.bf16.gmra.mxu0 %vm565_vm1, %v2797_v9  ;;  %2770 = vmatmul.msk.bf16.vlgmr.msrb.gmra.mxu1 %vm565_vm1, %v2802_v10 }
  0x58   : > { %2762 = vmatmul.msk.bf16.gmra.mxu0 %vm565_vm1, %v2798_v11 }
  0x95   : > { %v603_v28 = vpop.f32.mrf.mxu0  ;;  %v628_v31 = vpop.f32.mrf.mxu1 }
  0x96   : > { %v604_v32 = vadd.f32 %v3112_v21, %v603_v28  ;;  %v3116_v33 = vadd.f32 %v3112_v21, %v628_v31 }
  0x98   : > { %v706_v40 = vpack.c.bf16 %v604_v32, %v604_v32  ;;  %v716_v42 = vpack.c.bf16 %v3116_v33, %v3116_v33  ;;  %v727_v0 = vrot.slane %v604_v32, 7  ;;  %v816_v1 = vrot.slane %v604_v32, 1 }
  0x99   : > { %v732_v10 = vrot.slane %v3116_v33, 7 }
  0x9a   : > { %v963_v44 = vunpack.c.l.bf16 %v706_v40  ;;  %v973_v45 = vunpack.c.l.bf16 %v716_v42  ;;  %v3193_v40 = vld [vmem:[%s4354_s5 + $0x4] sm:$0x1] }
  0x9b   : > { %v1764_v55 = vpack.i.b16 %v3193_v40, %v3193_v40 }
  0x9c   : > { %v1302_v53 = vmul.f32 %v3120_v36, %v963_v44  ;;  %v1312_v58 = vmul.f32 %v3120_v36, %v973_v45  ;;  %v979_v2 = vmul.f32 %v963_v44, %v3125_v48  ;;  %v989_v4 = vmul.f32 %v973_v45, %v3125_v48 }
  0x9d   : > { %v605_v56 = vpop.f32.mrf.mxu0  ;;  %v630_v8 = vpop.f32.mrf.mxu1  ;;  %v1674_v12 = vmul.f32 %v3136_v59, %v973_v45  ;;  %v821_v45 = vrot.slane %v3116_v33, 1 }
  0x9e   : > { %v1318_v57 = vpack.c.bf16 %v1302_v53, %v1302_v53  ;;  %v606_v62 = vadd.f32 %v3112_v21, %v605_v56  ;;  %v1328_v11 = vpack.c.bf16 %v1312_v58, %v1312_v58  ;;  %v995_v19 = vpack.c.bf16 %v979_v2, %v979_v2 }
  0x9f   : > { %v3177_v24 = vadd.f32 %v3112_v21, %v630_v8  ;;  %v1005_v25 = vpack.c.bf16 %v989_v4, %v989_v4  ;;  %v1690_v46 = vpack.c.bf16 %v1674_v12, %v1674_v12 }
  0xa0   : > { %v707_v5 = vpack.c.bf16 %v606_v62, %v606_v62  ;;  %v737_v6 = vrot.slane %v606_v62, 7  ;;  %v826_v7 = vrot.slane %v606_v62, 1  ;;  %v1339_v9 = vunpack.c.l.bf16 %v1318_v57 }
  0xa1   : > { %v1349_v30 = vunpack.c.l.bf16 %v1328_v11  ;;  %v742_v44 = vrot.slane %v3177_v24, 7  ;;  %v1027_v56 = vunpack.c.l.bf16 %v995_v19  ;;  %v3211_v8 = vunpack.c.l.bf16 %v1690_v46 }
  0xa2   : > { %v748_v14 = vsel %vm746_vm3, %v727_v0, %v737_v6  ;;  %v758_v15 = vsel %vm746_vm3, %v737_v6, %v727_v0  ;;  %v837_v17 = vsel %vm835_vm4, %v816_v1, %v826_v7  ;;  %v847_v18 = vsel %vm835_vm4, %v826_v7, %v816_v1 }
  0xa3   : > { %v769_v20 = vpack.c.bf16 %v758_v15, %v758_v15  ;;  %v770_v22 = vpack.c.bf16 %v748_v14, %v748_v14  ;;  %v858_v26 = vpack.c.bf16 %v837_v17, %v837_v17  ;;  %v859_v27 = vpack.c.bf16 %v847_v18, %v847_v18  ;;  %4377 = vst [vmem:[#allocation3_spill] sm:$0xff] %v3211_v8 }
  0xa4   : > { %v964_v28 = vunpack.c.l.bf16 %v707_v5  ;;  %v1356_v29 = vadd.f32 %v3130_v54, %v1339_v9  ;;  %v3205_v1 = vunpack.c.l.bf16 %v1005_v25  ;;  %v1366_v33 = vadd.f32 %v3130_v54, %v1349_v30 }
  0xa5   : > { %v795_v31 = vsel %vm3154_vm6, %v769_v20, 0  ;;  %v796_v32 = vsel %vm3162_vm8, %v770_v22, 0  ;;  %v884_v34 = vsel %vm3162_vm8, %v858_v26, 0  ;;  %v3188_v37 = vsel %vm3172_vm9, %v859_v27, 0 }
  0xa6   : > { %v910_v38 = vunpack.c.l.bf16 %v795_v31  ;;  %v911_v39 = vunpack.c.l.bf16 %v796_v32  ;;  %v980_v41 = vmul.f32 %v964_v28, %v3125_v48  ;;  %v1081_v42 = vunpack.c.l.bf16 %v884_v34 }
  0xa7   : > { %v1303_v43 = vmul.f32 %v3120_v36, %v964_v28  ;;  %v1082_v51 = vunpack.c.l.bf16 %v3188_v37  ;;  %v1372_v0 = vpack.c.bf16 %v1356_v29, %v1356_v29  ;;  %v753_v2 = vsel %vm746_vm3, %v732_v10, %v742_v44 }
  0xa8   : > { %v926_v47 = vmul.f32 %v910_v38, %v3127_v52  ;;  %v927_v49 = vmul.f32 %v911_v39, %v3127_v52  ;;  %v996_v50 = vpack.c.bf16 %v980_v41, %v980_v41  ;;  %v1097_v53 = vmul.f32 %v1081_v42, %v3143_v63 }
  0xa9   : > { %v1319_v62 = vpack.c.bf16 %v1303_v43, %v1303_v43  ;;  %v1198_v7 = vmul.f32 %v3146_v3, %v910_v38  ;;  %v1098_v9 = vmul.f32 %v1082_v51, %v3143_v63  ;;  %v1199_v12 = vmul.f32 %v3146_v3, %v911_v39 }
  0xaa   : > { %v942_v57 = vpack.c.bf16 %v926_v47, %v926_v47  ;;  %v943_v58 = vpack.c.bf16 %v927_v49, %v927_v49  ;;  %v1028_v6 = vunpack.c.l.bf16 %v996_v50  ;;  %v1113_v11 = vpack.c.bf16 %v1097_v53, %v1097_v53 }
  0xab   : > { %v1340_v17 = vunpack.c.l.bf16 %v1319_v62  ;;  %v763_v18 = vsel %vm746_vm3, %v742_v44, %v732_v10  ;;  %v1382_v19 = vpack.c.bf16 %v1366_v33, %v1366_v33  ;;  %v717_v20 = vpack.c.bf16 %v3177_v24, %v3177_v24 }
  0xac   : > { %v1011_v4 = vunpack.c.l.bf16 %v942_v57  ;;  %v1012_v5 = vunpack.c.l.bf16 %v943_v58  ;;  %v779_v22 = vpack.c.bf16 %v763_v18, %v763_v18  ;;  %v780_v25 = vpack.c.bf16 %v753_v2, %v753_v2 }
  0xad   : > { %v3219_v26 = vunpack.c.l.bf16 %v1372_v0  ;;  %v1214_v28 = vpack.c.bf16 %v1198_v7, %v1198_v7  ;;  %v831_v29 = vrot.slane %v3177_v24, 1  ;;  %v1114_v30 = vpack.c.bf16 %v1098_v9, %v1098_v9 }
  0xae   : > { %v1043_v14 = vadd.f32 %v1027_v56, %v1011_v4  ;;  %v1044_v15 = vadd.f32 %v1028_v6, %v1012_v5  ;;  %v1215_v31 = vpack.c.bf16 %v1199_v12, %v1199_v12  ;;  %v805_v32 = vsel %vm3154_vm6, %v779_v22, 0 }
  0xaf   : > { %v806_v10 = vsel %vm3162_vm8, %v780_v25, 0  ;;  %v1145_v37 = vunpack.c.l.bf16 %v1113_v11  ;;  %v1357_v38 = vadd.f32 %v3130_v54, %v1340_v17  ;;  %v842_v39 = vsel %vm835_vm4, %v821_v45, %v831_v29 }
  0xb0   : > { %v1059_v27 = vpack.c.bf16 %v1043_v14, %v1043_v14  ;;  %v1060_v34 = vpack.c.bf16 %v1044_v15, %v1044_v15  ;;  %v852_v41 = vsel %vm835_vm4, %v831_v29, %v821_v45  ;;  %v868_v43 = vpack.c.bf16 %v842_v39, %v842_v39 }
  0xb1   : > { %v920_v24 = vunpack.c.l.bf16 %v805_v32  ;;  %v921_v44 = vunpack.c.l.bf16 %v806_v10  ;;  %v1459_v47 = vmul.f32 %v3138_v60, %v1081_v42  ;;  %v869_v49 = vpack.c.bf16 %v852_v41, %v852_v41  ;;  %v608_v32 = vpop.f32.mrf.mxu0 }
  0xb2   : > { %v1129_v46 = vunpack.c.l.bf16 %v1059_v27  ;;  %v974_v50 = vunpack.c.l.bf16 %v717_v20  ;;  %v1146_v53 = vunpack.c.l.bf16 %v1114_v30  ;;  %v894_v56 = vsel %vm3162_vm8, %v868_v43, 0 }
  0xb3   : > { %v936_v57 = vmul.f32 %v920_v24, %v3127_v52  ;;  %v937_v58 = vmul.f32 %v921_v44, %v3127_v52  ;;  %v1130_v62 = vunpack.c.l.bf16 %v1060_v34  ;;  %v1460_v0 = vmul.f32 %v3138_v60, %v1082_v51 }
  0xb4   : > { %v895_v45 = vsel %vm3172_vm9, %v869_v49, 0  ;;  %v990_v33 = vmul.f32 %v974_v50, %v3125_v48  ;;  %v3240_v4 = vunpack.c.l.bf16 %v894_v56  ;;  %v1161_v6 = vadd.f32 %v1145_v37, %v1129_v46 }
  0xb5   : > { %v952_v2 = vpack.c.bf16 %v936_v57, %v936_v57  ;;  %v953_v42 = vpack.c.bf16 %v937_v58, %v937_v58  ;;  %v3242_v5 = vunpack.c.l.bf16 %v895_v45  ;;  %v1373_v7 = vpack.c.bf16 %v1357_v38, %v1357_v38 }
  0xb6   : > { %v1475_v9 = vpack.c.bf16 %v1459_v47, %v1459_v47  ;;  %v1006_v11 = vpack.c.bf16 %v990_v33, %v990_v33  ;;  %v1107_v51 = vmul.f32 %v3240_v4, %v3143_v63  ;;  %v3248_v17 = vunpack.c.l.bf16 %v1382_v19 }
  0xb7   : > { %v1021_v12 = vunpack.c.l.bf16 %v952_v2  ;;  %v1022_v14 = vunpack.c.l.bf16 %v953_v42  ;;  %v1108_v15 = vmul.f32 %v3242_v5, %v3143_v63  ;;  %v1476_v18 = vpack.c.bf16 %v1460_v0, %v1460_v0 }
  0xb8   : > { %4378 = vst [vmem:[#allocation4_spill] sm:$0xff] %v3248_v17  ;;  %v1038_v20 = vunpack.c.l.bf16 %v1006_v11  ;;  %v1313_v22 = vmul.f32 %v3120_v36, %v974_v50  ;;  %v1162_v25 = vadd.f32 %v1146_v53, %v1130_v62  ;;  %v3251_v27 = vunpack.c.l.bf16 %v1214_v28 }
  0xb9   : > { %v3253_v29 = vunpack.c.l.bf16 %v1215_v31  ;;  %v1053_v30 = vadd.f32 %v3205_v1, %v1021_v12  ;;  %v3256_v10 = vunpack.c.l.bf16 %v1373_v7  ;;  %v1123_v37 = vpack.c.bf16 %v1107_v51, %v1107_v51 }
  0xba   : > { %v1054_v34 = vadd.f32 %v1038_v20, %v1022_v14  ;;  %v1329_v38 = vpack.c.bf16 %v1313_v22, %v1313_v22  ;;  %v1177_v39 = vpack.c.bf16 %v1161_v6, %v1161_v6  ;;  %v3258_v19 = vunpack.c.l.bf16 %v1475_v9  ;;  %v633_v6 = vpop.f32.mrf.mxu1 }
  0xbb   : > { %v1069_v41 = vpack.c.bf16 %v1053_v30, %v1053_v30  ;;  %v1124_v43 = vpack.c.bf16 %v1108_v15, %v1108_v15  ;;  %v3260_v46 = vunpack.c.l.bf16 %v1476_v18  ;;  %v1208_v28 = vmul.f32 %v3146_v3, %v920_v24 }
  0xbc   : > { %4379 = vst [vmem:[#allocation5_spill] sm:$0xff] %v3258_v19  ;;  %v1070_v47 = vpack.c.bf16 %v1054_v34, %v1054_v34  ;;  %v1350_v31 = vunpack.c.l.bf16 %v1329_v38  ;;  %v1178_v49 = vpack.c.bf16 %v1162_v25, %v1162_v25  ;;  %v1209_v1 = vmul.f32 %v3146_v3, %v921_v44 }
  0xbd   : > { %4380 = vst [vmem:[#allocation6_spill] sm:$0xff] %v3260_v46  ;;  %v1139_v53 = vunpack.c.l.bf16 %v1069_v41  ;;  %v1469_v56 = vmul.f32 %v3138_v60, %v3240_v4  ;;  %v1155_v58 = vunpack.c.l.bf16 %v1123_v37  ;;  %v1470_v62 = vmul.f32 %v3138_v60, %v3242_v5  ;;  %v610_v37 = vpop.f32.mrf.mxu0 }
  0xbe   : > { %v1140_v57 = vunpack.c.l.bf16 %v1070_v47  ;;  %v1571_v0 = vmul.f32 %v3140_v61, %v920_v24  ;;  %v3269_v45 = vunpack.c.l.bf16 %v1177_v39  ;;  %v1156_v33 = vunpack.c.l.bf16 %v1124_v43 }
  0xbf   : > { %v1572_v2 = vmul.f32 %v3140_v61, %v921_v44  ;;  %v1675_v42 = vmul.f32 %v3136_v59, %v974_v50  ;;  %v1171_v7 = vadd.f32 %v1155_v58, %v1139_v53  ;;  %v1224_v9 = vpack.c.bf16 %v1208_v28, %v1208_v28 }
  0xc0   : > { %v1367_v11 = vadd.f32 %v3130_v54, %v1350_v31  ;;  %v1766_v12 = vperm.slane %v1764_v55, 0  ;;  %v1172_v14 = vadd.f32 %v1156_v33, %v1140_v57  ;;  %v1225_v51 = vpack.c.bf16 %v1209_v1, %v1209_v1 }
  0xc1   : > { %v1485_v15 = vpack.c.bf16 %v1469_v56, %v1469_v56  ;;  %v609_v24 = vadd.f32 %v3112_v21, %v608_v32  ;;  %v3278_v18 = vunpack.c.l.bf16 %v1178_v49  ;;  %v1486_v20 = vpack.c.bf16 %v1470_v62, %v1470_v62 }
  0xc2   : > { %v1587_v44 = vpack.c.bf16 %v1571_v0, %v1571_v0  ;;  %v3281_v50 = vadd.f32 %v3112_v21, %v633_v6  ;;  %v1588_v22 = vpack.c.bf16 %v1572_v2, %v1572_v2  ;;  %v1691_v25 = vpack.c.bf16 %v1675_v42, %v1675_v42 }
  0xc3   : > { %v3283_v30 = vunpack.c.l.bf16 %v1766_v12  ;;  %v708_v34 = vpack.c.bf16 %v609_v24, %v609_v24  ;;  %v1187_v40 = vpack.c.bf16 %v1171_v7, %v1171_v7  ;;  %v3285_v55 = vunpack.c.l.bf16 %v1224_v9 }
  0xc4   : > { %v1383_v38 = vpack.c.bf16 %v1367_v11, %v1367_v11  ;;  %v718_v32 = vpack.c.bf16 %v3281_v50, %v3281_v50  ;;  %v1188_v39 = vpack.c.bf16 %v1172_v14, %v1172_v14  ;;  %v3289_v41 = vunpack.c.l.bf16 %v1225_v51 }
  0xc5   : > { %4381 = vst [vmem:[#allocation7_spill] sm:$0xff] %v3285_v55  ;;  %v3291_v43 = vunpack.c.l.bf16 %v1485_v15  ;;  %v965_v47 = vunpack.c.l.bf16 %v708_v34  ;;  %v3293_v28 = vunpack.c.l.bf16 %v1486_v20  ;;  %v3295_v31 = vunpack.c.l.bf16 %v1587_v44 }
  0xc6   : > { %4382 = vst [vmem:[#allocation8_spill] sm:$0xff] %v3289_v41  ;;  %v3297_v49 = vunpack.c.l.bf16 %v718_v32  ;;  %v611_v53 = vadd.f32 %v3112_v21, %v610_v37  ;;  %v3300_v1 = vunpack.c.l.bf16 %v1588_v22  ;;  %v3302_v56 = vunpack.c.l.bf16 %v1691_v25 }
  0xc7   : > { %4383 = vst [vmem:[#allocation9_spill] sm:$0xff] %v3291_v43  ;;  %v3306_v57 = vmul.f32 %v3283_v30, %v3240_v4  ;;  %v3310_v58 = vmul.f32 %v3283_v30, %v3242_v5  ;;  %v3312_v62 = vunpack.c.l.bf16 %v1187_v40  ;;  %v3314_v0 = vunpack.c.l.bf16 %v1383_v38  ;;  %v635_v4 = vpop.f32.mrf.mxu1 }
  0xc8   : > { %4384 = vst [vmem:[#allocation10_spill] sm:$0xff] %v3293_v28  ;;  %v728_v33 = vrot.slane %v609_v24, 7  ;;  %v981_v2 = vmul.f32 %v965_v47, %v3125_v48  ;;  %v3317_v42 = vunpack.c.l.bf16 %v1188_v39  ;;  %v817_v6 = vrot.slane %v609_v24, 1 }
  0xc9   : > { %4385 = vst [vmem:[#allocation11_spill] sm:$0xff] %v3295_v31  ;;  %v1304_v7 = vmul.f32 %v3120_v36, %v965_v47  ;;  %v1314_v11 = vmul.f32 %v3120_v36, %v3297_v49  ;;  %v709_v5 = vpack.c.bf16 %v611_v53, %v611_v53  ;;  %v738_v12 = vrot.slane %v611_v53, 7 }
  0xca   : > { %4386 = vst [vmem:[#allocation12_spill] sm:$0xff] %v3300_v1  ;;  %v827_v14 = vrot.slane %v611_v53, 1  ;;  %v3328_v20 = vmul.f32 %v3136_v59, %v965_v47  ;;  %v997_v44 = vpack.c.bf16 %v981_v2, %v981_v2  ;;  %v3336_v34 = vadd.f32 %v3112_v21, %v635_v4 }
  0xcb   : > { %4387 = vst [vmem:[#allocation13_spill] sm:$0xff] %v3302_v56  ;;  %v749_v22 = vsel %vm746_vm3, %v728_v33, %v738_v12  ;;  %v759_v25 = vsel %vm746_vm3, %v738_v12, %v728_v33  ;;  %v1320_v37 = vpack.c.bf16 %v1304_v7, %v1304_v7  ;;  %v3340_v40 = vmul.f32 %v3297_v49, %v3125_v48 }
  0xcc   : > { %4388 = vst [vmem:[#allocation14_spill] sm:$0xff] %v3314_v0  ;;  %v771_v38 = vpack.c.bf16 %v759_v25, %v759_v25  ;;  %v772_v32 = vpack.c.bf16 %v749_v22, %v749_v22  ;;  %v1330_v39 = vpack.c.bf16 %v1314_v11, %v1314_v11  ;;  %v838_v47 = vsel %vm835_vm4, %v817_v6, %v827_v14 }
  0xcd   : > { %v848_v53 = vsel %vm835_vm4, %v827_v14, %v817_v6  ;;  %v3346_v2 = vunpack.c.l.bf16 %v709_v5  ;;  %v860_v12 = vpack.c.bf16 %v838_v47, %v838_v47  ;;  %v1029_v22 = vunpack.c.l.bf16 %v997_v44 }
  0xce   : > { %v797_v7 = vsel %vm3154_vm6, %v771_v38, 0  ;;  %v798_v4 = vsel %vm3162_vm8, %v772_v32, 0  ;;  %v861_v11 = vpack.c.bf16 %v848_v53, %v848_v53  ;;  %v1341_v9 = vunpack.c.l.bf16 %v1320_v37 }
  0xcf   : > { %v912_v25 = vunpack.c.l.bf16 %v797_v7  ;;  %v913_v24 = vunpack.c.l.bf16 %v798_v4  ;;  %v886_v6 = vsel %vm3162_vm8, %v860_v12, 0  ;;  %v982_v5 = vmul.f32 %v3346_v2, %v3125_v48 }
  0xd0   : > { %v1305_v14 = vmul.f32 %v3120_v36, %v3346_v2  ;;  %v1351_v33 = vunpack.c.l.bf16 %v1330_v39  ;;  %v887_v38 = vsel %vm3172_vm9, %v861_v11, 0  ;;  %v3364_v53 = vunpack.c.l.bf16 %v886_v6 }
  0xd1   : > { %v928_v32 = vmul.f32 %v912_v25, %v3127_v52  ;;  %v929_v44 = vmul.f32 %v913_v24, %v3127_v52  ;;  %v998_v47 = vpack.c.bf16 %v982_v5, %v982_v5  ;;  %v3366_v37 = vunpack.c.l.bf16 %v887_v38 }
  0xd2   : > { %v1200_v7 = vmul.f32 %v3146_v3, %v912_v25  ;;  %v1201_v15 = vmul.f32 %v3146_v3, %v913_v24  ;;  %v1321_v51 = vpack.c.bf16 %v1305_v14, %v1305_v14  ;;  %v1099_v11 = vmul.f32 %v3364_v53, %v3143_v63 }
  0xd3   : > { %v944_v4 = vpack.c.bf16 %v928_v32, %v928_v32  ;;  %v945_v12 = vpack.c.bf16 %v929_v44, %v929_v44  ;;  %v1030_v39 = vunpack.c.l.bf16 %v998_v47  ;;  %v1100_v43 = vmul.f32 %v3366_v37, %v3143_v63 }
  0xd4   : > { %v1216_v8 = vpack.c.bf16 %v1200_v7, %v1200_v7  ;;  %v1217_v56 = vpack.c.bf16 %v1201_v15, %v1201_v15  ;;  %v1342_v38 = vunpack.c.l.bf16 %v1321_v51  ;;  %v1358_v28 = vadd.f32 %v3130_v54, %v1341_v9 }
  0xd5   : > { %v1013_v5 = vunpack.c.l.bf16 %v944_v4  ;;  %v1014_v6 = vunpack.c.l.bf16 %v945_v12  ;;  %v1368_v32 = vadd.f32 %v3130_v54, %v1351_v33  ;;  %v1676_v44 = vmul.f32 %v3136_v59, %v3297_v49 }
  0xd6   : > { %v1248_v14 = vunpack.c.l.bf16 %v1216_v8  ;;  %v1115_v31 = vpack.c.bf16 %v1099_v11, %v1099_v11  ;;  %v1249_v1 = vunpack.c.l.bf16 %v1217_v56  ;;  %v1116_v0 = vpack.c.bf16 %v1100_v43, %v1100_v43 }
  0xd7   : > { %v1045_v47 = vadd.f32 %v1029_v22, %v1013_v5  ;;  %v1046_v19 = vadd.f32 %v1030_v39, %v1014_v6  ;;  %v1359_v7 = vadd.f32 %v3130_v54, %v1342_v38  ;;  %v1461_v51 = vmul.f32 %v3138_v60, %v3364_v53 }
  0xd8   : > { %v1264_v17 = vadd.f32 %v1248_v14, %v3269_v45  ;;  %v1265_v33 = vadd.f32 %v1249_v1, %v3278_v18  ;;  %v1462_v49 = vmul.f32 %v3138_v60, %v3366_v37  ;;  %v1374_v8 = vpack.c.bf16 %v1358_v28, %v1358_v28 }
  0xd9   : > { %v1061_v15 = vpack.c.bf16 %v1045_v47, %v1045_v47  ;;  %v1062_v9 = vpack.c.bf16 %v1046_v19, %v1046_v19  ;;  %v1007_v22 = vpack.c.bf16 %v3340_v40, %v3340_v40  ;;  %v1692_v56 = vpack.c.bf16 %v1676_v44, %v1676_v44 }
  0xda   : > { %v1280_v43 = vpack.c.bf16 %v1264_v17, %v1264_v17  ;;  %v1384_v4 = vpack.c.bf16 %v1368_v32, %v1368_v32  ;;  %v1281_v39 = vpack.c.bf16 %v1265_v33, %v1265_v33  ;;  %v1147_v11 = vunpack.c.l.bf16 %v1115_v31 }
  0xdb   : > { %v1131_v45 = vunpack.c.l.bf16 %v1061_v15  ;;  %v1132_v12 = vunpack.c.l.bf16 %v1062_v9  ;;  %v1563_v6 = vmul.f32 %v3140_v61, %v912_v25  ;;  %v1564_v19 = vmul.f32 %v3140_v61, %v913_v24 }
  0xdc   : > { %v1390_v5 = vunpack.c.l.bf16 %v1280_v43  ;;  %v1148_v18 = vunpack.c.l.bf16 %v1116_v0  ;;  %v1375_v1 = vpack.c.bf16 %v1359_v7, %v1359_v7  ;;  %v1477_v38 = vpack.c.bf16 %v1461_v51, %v1461_v51 }
  0xdd   : > { %v1478_v14 = vpack.c.bf16 %v1462_v49, %v1462_v49  ;;  %v4389_v28 = vpack.c.bf16 %v3306_v57, %v3306_v57  ;;  %v4391_v17 = vpack.c.bf16 %v3310_v58, %v3310_v58  ;;  %v1406_v31 = vunpack.c.l.bf16 %v1374_v8 }
  0xde   : > { %v1163_v44 = vadd.f32 %v1147_v11, %v1131_v45  ;;  %v4393_v25 = vpack.c.bf16 %v3328_v20, %v3328_v20  ;;  %v3404_v0 = vunpack.c.l.bf16 %v1007_v22  ;;  %v1164_v47 = vadd.f32 %v1148_v18, %v1132_v12 }
  0xdf   : > { %v3392_v40 = vunpack.c.l.bf16 %v4389_v28  ;;  %v3397_v32 = vunpack.c.l.bf16 %v4391_v17  ;;  %v1391_v7 = vunpack.c.l.bf16 %v1281_v39  ;;  %v3406_v51 = vunpack.c.l.bf16 %v1692_v56 }
  0xe0   : > { %v3402_v24 = vunpack.c.l.bf16 %v4393_v25  ;;  %v1422_v57 = vadd.f32 %v1406_v31, %v1390_v5  ;;  %v1579_v15 = vpack.c.bf16 %v1563_v6, %v1563_v6  ;;  %v1580_v9 = vpack.c.bf16 %v1564_v19, %v1564_v19 }
  0xe1   : > { %4390 = vst [vmem:[#allocation15_spill] sm:$0xff] %v3392_v40  ;;  %v3408_v33 = vunpack.c.l.bf16 %v1384_v4  ;;  %v1407_v58 = vunpack.c.l.bf16 %v1375_v1  ;;  %v1509_v49 = vunpack.c.l.bf16 %v1477_v38  ;;  %v3410_v8 = vunpack.c.l.bf16 %v1478_v14 }
  0xe2   : > { %4392 = vst [vmem:[#allocation16_spill] sm:$0xff] %v3397_v32  ;;  %v1179_v43 = vpack.c.bf16 %v1163_v44, %v1163_v44  ;;  %v1667_v20 = vmul.f32 %v3136_v59, %v3346_v2  ;;  %v3416_v22 = vmul.f32 %v3283_v30, %v3364_v53  ;;  %v719_v56 = vpack.c.bf16 %v3336_v34, %v3336_v34 }
  0xe3   : > { %4394 = vst [vmem:[#allocation17_spill] sm:$0xff] %v3402_v24  ;;  %v1180_v45 = vpack.c.bf16 %v1164_v47, %v1164_v47  ;;  %v1423_v12 = vadd.f32 %v1407_v58, %v1391_v7  ;;  %v743_v4 = vrot.slane %v3336_v34, 7  ;;  %v832_v39 = vrot.slane %v3336_v34, 1 }
  0xe4   : > { %4395 = vst [vmem:[#allocation18_spill] sm:$0xff] %v3406_v51  ;;  %v1438_v11 = vpack.c.bf16 %v1422_v57, %v1422_v57  ;;  %v3422_v5 = vunpack.c.l.bf16 %v1579_v15  ;;  %v3424_v6 = vunpack.c.l.bf16 %v1580_v9  ;;  %v976_v19 = vunpack.c.l.bf16 %v719_v56 }
  0xe5   : > { %4396 = vst [vmem:[#allocation19_spill] sm:$0xff] %v3416_v22  ;;  %v4399_v2 = vrot.slane %v3281_v50, 7  ;;  %v4401_v38 = vrot.slane %v3281_v50, 1  ;;  %v1683_v17 = vpack.c.bf16 %v1667_v20, %v1667_v20  ;;  %v3444_v47 = vmul.f32 %v3283_v30, %v3366_v37 }
  0xe6   : > { %4397 = vst [vmem:[#allocation20_spill] sm:$0xff] %v3422_v5  ;;  %v992_v57 = vmul.f32 %v976_v19, %v3125_v48  ;;  %v1315_v15 = vmul.f32 %v3120_v36, %v976_v19  ;;  %v3448_v9 = vunpack.c.l.bf16 %v1179_v43 }
  0xe7   : > { %4398 = vst [vmem:[#allocation21_spill] sm:$0xff] %v3424_v6  ;;  %v754_v53 = vsel %vm746_vm3, %v4399_v2, %v743_v4  ;;  %v4400_v18 = vmov %v4399_v2  ;;  %v843_v34 = vsel %vm835_vm4, %v4401_v38, %v832_v39  ;;  %v4402_v14 = vmov %v4401_v38 }
  0xe8   : > { %v764_v1 = vsel %vm746_vm3, %v743_v4, %v4400_v18  ;;  %v853_v28 = vsel %vm835_vm4, %v832_v39, %v4402_v14  ;;  %v782_v44 = vpack.c.bf16 %v754_v53, %v754_v53  ;;  %v870_v25 = vpack.c.bf16 %v843_v34, %v843_v34  ;;  %4403 = vst [vmem:[#allocation22_spill] sm:$0xff] %v3444_v47 }
  0xe9   : > { %v781_v31 = vpack.c.bf16 %v764_v1, %v764_v1  ;;  %v871_v7 = vpack.c.bf16 %v853_v28, %v853_v28  ;;  %v1008_v39 = vpack.c.bf16 %v992_v57, %v992_v57  ;;  %v3458_v2 = vunpack.c.l.bf16 %v1180_v45 }
  0xea   : > { %v808_v58 = vsel %vm3162_vm8, %v782_v44, 0  ;;  %v896_v20 = vsel %vm3162_vm8, %v870_v25, 0  ;;  %v1439_v53 = vpack.c.bf16 %v1423_v12, %v1423_v12  ;;  %v1331_v18 = vpack.c.bf16 %v1315_v15, %v1315_v15 }
  0xeb   : > { %v807_v50 = vsel %vm3154_vm6, %v781_v31, 0  ;;  %v897_v37 = vsel %vm3172_vm9, %v871_v7, 0  ;;  %v923_v4 = vunpack.c.l.bf16 %v808_v58  ;;  %v1493_v28 = vunpack.c.l.bf16 %v1438_v11  ;;  %v613_v7 = vpop.f32.mrf.mxu0 }
  0xec   : > { %v922_v56 = vunpack.c.l.bf16 %v807_v50  ;;  %v1094_v43 = vunpack.c.l.bf16 %v897_v37  ;;  %v1093_v31 = vunpack.c.l.bf16 %v896_v20  ;;  %v1352_v25 = vunpack.c.l.bf16 %v1331_v18 }
  0xed   : > { %v939_v34 = vmul.f32 %v923_v4, %v3127_v52  ;;  %v1211_v44 = vmul.f32 %v3146_v3, %v923_v4  ;;  %v1040_v12 = vunpack.c.l.bf16 %v1008_v39  ;;  %v3466_v15 = vunpack.c.l.bf16 %v1683_v17 }
  0xee   : > { %v938_v38 = vmul.f32 %v922_v56, %v3127_v52  ;;  %v1210_v14 = vmul.f32 %v3146_v3, %v922_v56  ;;  %v1110_v58 = vmul.f32 %v1094_v43, %v3143_v63  ;;  %v1369_v1 = vadd.f32 %v3130_v54, %v1352_v25 }
  0xef   : > { %v955_v57 = vpack.c.bf16 %v939_v34, %v939_v34  ;;  %4404 = vst [vmem:[#allocation23_spill] sm:$0xff] %v3466_v15  ;;  %v1227_v37 = vpack.c.bf16 %v1211_v44, %v1211_v44  ;;  %v3472_v40 = vunpack.c.l.bf16 %v1439_v53  ;;  %v1525_v18 = vadd.f32 %v1509_v49, %v1493_v28 }
  0xf0   : > { %v954_v45 = vpack.c.bf16 %v938_v38, %v938_v38  ;;  %v1226_v50 = vpack.c.bf16 %v1210_v14, %v1210_v14  ;;  %v1109_v38 = vmul.f32 %v1093_v31, %v3143_v63  ;;  %v3478_v44 = vadd.f32 %v3112_v21, %v613_v7 }
  0xf1   : > { %v1024_v20 = vunpack.c.l.bf16 %v955_v57  ;;  %v1259_v39 = vunpack.c.l.bf16 %v1227_v37  ;;  %v1126_v25 = vpack.c.bf16 %v1110_v58, %v1110_v58  ;;  %v1677_v57 = vmul.f32 %v3136_v59, %v976_v19  ;;  %v638_v37 = vpop.f32.mrf.mxu1 }
  0xf2   : > { %v1023_v11 = vunpack.c.l.bf16 %v954_v45  ;;  %v1258_v22 = vunpack.c.l.bf16 %v1226_v50  ;;  %v1385_v45 = vpack.c.bf16 %v1369_v1, %v1369_v1  ;;  %v1471_v49 = vmul.f32 %v3138_v60, %v1093_v31 }
  0xf3   : > { %v1056_v34 = vadd.f32 %v1040_v12, %v1024_v20  ;;  %v1275_v51 = vadd.f32 %v1259_v39, %v3317_v42  ;;  %v1472_v28 = vmul.f32 %v3138_v60, %v1094_v43  ;;  %v1125_v12 = vpack.c.bf16 %v1109_v38, %v1109_v38 }
  0xf4   : > { %v1055_v17 = vadd.f32 %v3404_v0, %v1023_v11  ;;  %v1274_v14 = vadd.f32 %v1258_v22, %v3312_v62  ;;  %v1541_v0 = vpack.c.bf16 %v1525_v18, %v1525_v18  ;;  %v3485_v62 = vadd.f32 %v3112_v21, %v638_v37 }
  0xf5   : > { %v1072_v53 = vpack.c.bf16 %v1056_v34, %v1056_v34  ;;  %v1291_v11 = vpack.c.bf16 %v1275_v51, %v1275_v51  ;;  %v1573_v42 = vmul.f32 %v3140_v61, %v922_v56  ;;  %v1158_v1 = vunpack.c.l.bf16 %v1126_v25  ;;  %v615_v34 = vpop.f32.mrf.mxu0 }
  0xf6   : > { %v1290_v50 = vpack.c.bf16 %v1274_v14, %v1274_v14  ;;  %v1071_v22 = vpack.c.bf16 %v1055_v17, %v1055_v17  ;;  %v1417_v20 = vunpack.c.l.bf16 %v1385_v45  ;;  %v1574_v39 = vmul.f32 %v3140_v61, %v923_v4 }
  0xf7   : > { %v1142_v7 = vunpack.c.l.bf16 %v1072_v53  ;;  %v1401_v19 = vunpack.c.l.bf16 %v1291_v11  ;;  %v1487_v14 = vpack.c.bf16 %v1471_v49, %v1471_v49  ;;  %v1488_v47 = vpack.c.bf16 %v1472_v28, %v1472_v28 }
  0xf8   : > { %v1400_v58 = vunpack.c.l.bf16 %v1290_v50  ;;  %v1693_v24 = vpack.c.bf16 %v1677_v57, %v1677_v57  ;;  %v1780_v18 = vmul.f32 %v3283_v30, %v1093_v31  ;;  %v1781_v17 = vmul.f32 %v3283_v30, %v1094_v43 }
  0xf9   : > { %v1174_v51 = vadd.f32 %v1158_v1, %v1142_v7  ;;  %v710_v53 = vpack.c.bf16 %v3478_v44, %v3478_v44  ;;  %v3494_v56 = vunpack.c.l.bf16 %v1541_v0  ;;  %v1141_v25 = vunpack.c.l.bf16 %v1071_v22 }
  0xfa   : > { %v1432_v38 = vadd.f32 %v3408_v33, %v1400_v58  ;;  %v1589_v45 = vpack.c.bf16 %v1573_v42, %v1573_v42  ;;  %v616_v4 = vadd.f32 %v3112_v21, %v615_v34  ;;  %v1157_v50 = vunpack.c.l.bf16 %v1125_v12 }
  0xfb   : > { %v1433_v49 = vadd.f32 %v1417_v20, %v1401_v19  ;;  %v1590_v28 = vpack.c.bf16 %v1574_v39, %v1574_v39  ;;  %v967_v57 = vunpack.c.l.bf16 %v710_v53  ;;  %v1519_v37 = vunpack.c.l.bf16 %v1487_v14 }
  0xfc   : > { %v3497_v31 = vunpack.c.l.bf16 %v1488_v47  ;;  %v1796_v11 = vpack.c.bf16 %v1780_v18, %v1780_v18  ;;  %v720_v33 = vpack.c.bf16 %v3485_v62, %v3485_v62  ;;  %v1190_v43 = vpack.c.bf16 %v1174_v51, %v1174_v51 }
  0xfd   : > { %v1448_v7 = vpack.c.bf16 %v1432_v38, %v1432_v38  ;;  %v3501_v58 = vunpack.c.l.bf16 %v1693_v24  ;;  %v1797_v0 = vpack.c.bf16 %v1781_v17, %v1781_v17  ;;  %v3503_v22 = vadd.f32 %v1157_v50, %v1141_v25 }
  0xfe   : > { %v3505_v42 = vunpack.c.l.bf16 %v1589_v45  ;;  %v1306_v21 = vmul.f32 %v3120_v36, %v967_v57  ;;  %v3508_v12 = vunpack.c.l.bf16 %v720_v33  ;;  %v1449_v1 = vpack.c.bf16 %v1433_v49, %v1433_v49 }
  0xff   : > { %4405 = vst [vmem:[#allocation24_spill] sm:$0xff] %v3501_v58  ;;  %v3510_v47 = vunpack.c.l.bf16 %v1590_v28  ;;  %v729_v19 = vrot.slane %v3478_v44, 7  ;;  %v711_v20 = vpack.c.bf16 %v616_v4, %v616_v4  ;;  %v3513_v39 = vunpack.c.l.bf16 %v1796_v11 }
 0x100   : > { %4406 = vst [vmem:[#allocation25_spill] sm:$0xff] %v3505_v42  ;;  %v818_v24 = vrot.slane %v3478_v44, 1  ;;  %v739_v34 = vrot.slane %v616_v4, 7  ;;  %v828_v14 = vrot.slane %v616_v4, 1  ;;  %v3516_v18 = vunpack.c.l.bf16 %v1190_v43 }
 0x101   : > { %4407 = vst [vmem:[#allocation26_spill] sm:$0xff] %v3510_v47  ;;  %v1503_v51 = vunpack.c.l.bf16 %v1448_v7  ;;  %v3518_v38 = vunpack.c.l.bf16 %v1797_v0  ;;  %v983_v17 = vmul.f32 %v967_v57, %v3125_v48  ;;  %v1322_v53 = vpack.c.bf16 %v1306_v21, %v1306_v21 }
 0x102   : > { %4408 = vst [vmem:[#allocation27_spill] sm:$0xff] %v3513_v39  ;;  %v1316_v25 = vmul.f32 %v3508_v12, %v3120_v36  ;;  %v750_v45 = vsel %vm746_vm3, %v729_v19, %v739_v34  ;;  %v760_v50 = vsel %vm746_vm3, %v739_v34, %v729_v19  ;;  %v839_v4 = vsel %vm835_vm4, %v818_v24, %v828_v14 }
 0x103   : > { %4409 = vst [vmem:[#allocation28_spill] sm:$0xff] %v3518_v38  ;;  %v773_v44 = vpack.c.bf16 %v760_v50, %v760_v50  ;;  %v774_v49 = vpack.c.bf16 %v750_v45, %v750_v45  ;;  %v3529_v28 = vunpack.c.l.bf16 %v711_v20  ;;  %v3531_v11 = vunpack.c.l.bf16 %v1449_v1 }
 0x104   : > { %v3534_v33 = vmul.f32 %v3136_v59, %v967_v57  ;;  %v849_v43 = vsel %vm835_vm4, %v828_v14, %v818_v24  ;;  %v862_v7 = vpack.c.bf16 %v839_v4, %v839_v4  ;;  %v999_v0 = vpack.c.bf16 %v983_v17, %v983_v17 }
 0x105   : > { %v799_v21 = vsel %vm3154_vm6, %v773_v44, 0  ;;  %v800_v19 = vsel %vm3162_vm8, %v774_v49, 0  ;;  %v863_v34 = vpack.c.bf16 %v849_v43, %v849_v43  ;;  %v1343_v45 = vunpack.c.l.bf16 %v1322_v53 }
 0x106   : > { %v888_v1 = vsel %vm3162_vm8, %v862_v7, 0  ;;  %v914_v20 = vunpack.c.l.bf16 %v799_v21  ;;  %v915_v50 = vunpack.c.l.bf16 %v800_v19  ;;  %v1332_v57 = vpack.c.bf16 %v1316_v25, %v1316_v25 }
 0x107   : > { %v889_v39 = vsel %vm3172_vm9, %v863_v34, 0  ;;  %v984_v24 = vmul.f32 %v3529_v28, %v3125_v48  ;;  %v3548_v14 = vunpack.c.l.bf16 %v888_v1  ;;  %v3550_v17 = vadd.f32 %v1519_v37, %v1503_v51 }
 0x108   : > { %v930_v44 = vmul.f32 %v914_v20, %v3127_v52  ;;  %v931_v53 = vmul.f32 %v915_v50, %v3127_v52  ;;  %v3554_v49 = vunpack.c.l.bf16 %v889_v39  ;;  %v1202_v43 = vmul.f32 %v3146_v3, %v914_v20 }
 0x109   : > { %v1000_v4 = vpack.c.bf16 %v984_v24, %v984_v24  ;;  %v1101_v25 = vmul.f32 %v3548_v14, %v3143_v63  ;;  %v1203_v7 = vmul.f32 %v3146_v3, %v915_v50  ;;  %v1031_v21 = vunpack.c.l.bf16 %v999_v0 }
 0x10a   : > { %v946_v19 = vpack.c.bf16 %v930_v44, %v930_v44  ;;  %v947_v34 = vpack.c.bf16 %v931_v53, %v931_v53  ;;  %v1102_v37 = vmul.f32 %v3554_v49, %v3143_v63  ;;  %v1360_v51 = vadd.f32 %v3130_v54, %v1343_v45 }
 0x10b   : > { %v1353_v1 = vunpack.c.l.bf16 %v1332_v57  ;;  %v1218_v38 = vpack.c.bf16 %v1202_v43, %v1202_v43  ;;  %v1219_v39 = vpack.c.bf16 %v1203_v7, %v1203_v7  ;;  %v1032_v42 = vunpack.c.l.bf16 %v1000_v4 }
 0x10c   : > { %v1015_v58 = vunpack.c.l.bf16 %v946_v19  ;;  %v1016_v24 = vunpack.c.l.bf16 %v947_v34  ;;  %v1307_v32 = vmul.f32 %v3120_v36, %v3529_v28  ;;  %v1117_v47 = vpack.c.bf16 %v1101_v25, %v1101_v25 }
 0x10d   : > { %v1118_v15 = vpack.c.bf16 %v1102_v37, %v1102_v37  ;;  %v1250_v5 = vunpack.c.l.bf16 %v1218_v38  ;;  %v1251_v0 = vunpack.c.l.bf16 %v1219_v39  ;;  %v1684_v44 = vpack.c.bf16 %v3534_v33, %v3534_v33 }
 0x10e   : > { %v1047_v53 = vadd.f32 %v1031_v21, %v1015_v58  ;;  %v1048_v6 = vadd.f32 %v1032_v42, %v1016_v24  ;;  %v1323_v41 = vpack.c.bf16 %v1307_v32, %v1307_v32  ;;  %v1376_v45 = vpack.c.bf16 %v1360_v51, %v1360_v51 }
 0x10f   : > { %v1370_v57 = vadd.f32 %v3130_v54, %v1353_v1  ;;  %v1678_v43 = vmul.f32 %v3136_v59, %v3508_v12  ;;  %v1266_v4 = vadd.f32 %v1250_v5, %v3448_v9  ;;  %v1267_v25 = vadd.f32 %v1251_v0, %v3458_v2 }
 0x110   : > { %v1063_v7 = vpack.c.bf16 %v1047_v53, %v1047_v53  ;;  %v1064_v19 = vpack.c.bf16 %v1048_v6, %v1048_v6  ;;  %v1344_v38 = vunpack.c.l.bf16 %v1323_v41  ;;  %v1149_v34 = vunpack.c.l.bf16 %v1117_v47 }
 0x111   : > { %v1150_v37 = vunpack.c.l.bf16 %v1118_v15  ;;  %v1282_v39 = vpack.c.bf16 %v1266_v4, %v1266_v4  ;;  %v1463_v58 = vmul.f32 %v3138_v60, %v3548_v14  ;;  %v1464_v12 = vmul.f32 %v3138_v60, %v3554_v49 }
 0x112   : > { %v1133_v32 = vunpack.c.l.bf16 %v1063_v7  ;;  %v1134_v42 = vunpack.c.l.bf16 %v1064_v19  ;;  %v1361_v33 = vadd.f32 %v3130_v54, %v1344_v38  ;;  %v1408_v21 = vunpack.c.l.bf16 %v1376_v45  ;;  %v640_v19 = vpop.f32.mrf.mxu1 }
 0x113   : > { %v1392_v5 = vunpack.c.l.bf16 %v1282_v39  ;;  %v1526_v6 = vadd.f32 %v3410_v8, %v3472_v40  ;;  %v1565_v41 = vmul.f32 %v3140_v61, %v914_v20  ;;  %v1694_v9 = vpack.c.bf16 %v1678_v43, %v1678_v43 }
 0x114   : > { %v1165_v2 = vadd.f32 %v1149_v34, %v1133_v32  ;;  %v1166_v15 = vadd.f32 %v1150_v37, %v1134_v42  ;;  %v1283_v47 = vpack.c.bf16 %v1267_v25, %v1267_v25  ;;  %v1386_v51 = vpack.c.bf16 %v1370_v57, %v1370_v57  ;;  %v3598_v42 = vld [vmem:[%s4353_s4] ss:$0 sm:$0xff] }
 0x115   : > { %v1424_v1 = vadd.f32 %v1408_v21, %v1392_v5  ;;  %v1479_v24 = vpack.c.bf16 %v1463_v58, %v1463_v58  ;;  %v1566_v0 = vmul.f32 %v3140_v61, %v915_v50  ;;  %v734_v53 = vrot.slane %v3485_v62, 7 }
 0x116   : > { %v1377_v4 = vpack.c.bf16 %v1361_v33, %v1361_v33  ;;  %v1480_v7 = vpack.c.bf16 %v1464_v12, %v1464_v12  ;;  %v1669_v45 = vmul.f32 %v3136_v59, %v3529_v28  ;;  %v823_v40 = vrot.slane %v3485_v62, 1 }
 0x117   : > { %v1181_v8 = vpack.c.bf16 %v1165_v2, %v1165_v2  ;;  %v1542_v20 = vpack.c.bf16 %v1526_v6, %v1526_v6  ;;  %v1581_v43 = vpack.c.bf16 %v1565_v41, %v1565_v41  ;;  %v3585_v38 = vunpack.c.l.bf16 %v1684_v44 }
 0x118   : > { %v3587_v57 = vunpack.c.l.bf16 %v1694_v9  ;;  %v1182_v25 = vpack.c.bf16 %v1166_v15, %v1166_v15  ;;  %v1393_v34 = vunpack.c.l.bf16 %v1283_v47  ;;  %v3589_v50 = vunpack.c.l.bf16 %v1386_v51 }
 0x119   : > { %4410 = vst [vmem:[#allocation29_spill] sm:$0xff] %v3585_v38  ;;  %v1440_v37 = vpack.c.bf16 %v1424_v1, %v1424_v1  ;;  %v3591_v39 = vunpack.c.l.bf16 %v1479_v24  ;;  %v1582_v58 = vpack.c.bf16 %v1566_v0, %v1566_v0  ;;  %v1409_v32 = vunpack.c.l.bf16 %v1377_v4 }
 0x11a   : > { %v3593_v28 = vunpack.c.l.bf16 %v1480_v7  ;;  %v1685_v62 = vpack.c.bf16 %v1669_v45, %v1669_v45  ;;  %v641_v44 = vadd.f32 %v3598_v42, %v640_v19  ;;  %v3601_v33 = vunpack.c.l.bf16 %v1181_v8 }
 0x11b   : > { %v1598_v12 = vunpack.c.l.bf16 %v1542_v20  ;;  %v1613_v21 = vunpack.c.l.bf16 %v1581_v43  ;;  %v3605_v5 = vmul.f32 %v3283_v30, %v3548_v14  ;;  %v3607_v6 = vunpack.c.l.bf16 %v1182_v25 }
 0x11c   : > { %v3609_v41 = vadd.f32 %v1409_v32, %v1393_v34  ;;  %v721_v9 = vpack.c.bf16 %v641_v44, %v641_v44  ;;  %v744_v2 = vrot.slane %v641_v44, 7  ;;  %v1495_v15 = vunpack.c.l.bf16 %v1440_v37 }
 0x11d   : > { %4411 = vst [vmem:[#allocation30_spill] sm:$0xff] %v3605_v5  ;;  %v1614_v47 = vunpack.c.l.bf16 %v1582_v58  ;;  %v3612_v51 = vadd.f32 %v1613_v21, %v3494_v56  ;;  %v833_v1 = vrot.slane %v641_v44, 1  ;;  %v1717_v24 = vunpack.c.l.bf16 %v1685_v62 }
 0x11e   : > { %v755_v0 = vsel %vm746_vm3, %v734_v53, %v744_v2  ;;  %v765_v14 = vsel %vm746_vm3, %v744_v2, %v734_v53  ;;  %v1301_v4 = vunpack.c.l.bf16 %v721_v9  ;;  %v1536_v25 = vadd.f32 %v3497_v31, %v3531_v11 }
 0x11f   : > { %v1630_v7 = vadd.f32 %v1614_v47, %v1598_v12  ;;  %v783_v45 = vpack.c.bf16 %v765_v14, %v765_v14  ;;  %v784_v8 = vpack.c.bf16 %v755_v0, %v755_v0  ;;  %v844_v20 = vsel %vm835_vm4, %v823_v40, %v833_v1 }
 0x120   : > { %v854_v43 = vsel %vm835_vm4, %v833_v1, %v823_v40  ;;  %v872_v56 = vpack.c.bf16 %v844_v20, %v844_v20  ;;  %v1317_v19 = vmul.f32 %v1301_v4, %v3120_v36  ;;  %v3627_v34 = vmul.f32 %v3283_v30, %v3554_v49 }
 0x121   : > { %v809_v53 = vsel %vm3154_vm6, %v783_v45, 0  ;;  %v810_v37 = vsel %vm3162_vm8, %v784_v8, 0  ;;  %v1189_v58 = vpack.c.bf16 %v3503_v22, %v3503_v22  ;;  %v873_v40 = vpack.c.bf16 %v854_v43, %v854_v43 }
 0x122   : > { %4412 = vst [vmem:[#allocation31_spill] sm:$0xff] %v3627_v34  ;;  %v3637_v32 = vsel %vm3162_vm8, %v872_v56, 0  ;;  %v1196_v62 = vunpack.c.l.bf16 %v809_v53  ;;  %v1197_v31 = vunpack.c.l.bf16 %v810_v37  ;;  %v1333_v44 = vpack.c.bf16 %v1317_v19, %v1317_v19 }
 0x123   : > { %v1551_v12 = vpack.c.bf16 %v3550_v17, %v3550_v17  ;;  %v1646_v21 = vpack.c.bf16 %v1630_v7, %v1630_v7  ;;  %v1552_v2 = vpack.c.bf16 %v1536_v25, %v1536_v25  ;;  %v1457_v1 = vunpack.c.l.bf16 %v3637_v32 }
 0x124   : > { %v1212_v22 = vmul.f32 %v1196_v62, %v3146_v3  ;;  %v1213_v9 = vmul.f32 %v1197_v31, %v3146_v3  ;;  %v1354_v47 = vunpack.c.l.bf16 %v1333_v44  ;;  %v1575_v0 = vmul.f32 %v3140_v61, %v1196_v62 }
 0x125   : > { %v1576_v14 = vmul.f32 %v3140_v61, %v1197_v31  ;;  %v899_v45 = vsel %vm3172_vm9, %v873_v40, 0  ;;  %v1244_v43 = vunpack.c.l.bf16 %v1189_v58  ;;  %v1607_v19 = vunpack.c.l.bf16 %v1551_v12 }
 0x126   : > { %v1228_v8 = vpack.c.bf16 %v1212_v22, %v1212_v22  ;;  %v1229_v20 = vpack.c.bf16 %v1213_v9, %v1213_v9  ;;  %v1371_v17 = vadd.f32 %v3130_v54, %v1354_v47  ;;  %v1591_v7 = vpack.c.bf16 %v1575_v0, %v1575_v0  ;;  %v618_v9 = vpop.f32.mrf.mxu0 }
 0x127   : > { %v1592_v56 = vpack.c.bf16 %v1576_v14, %v1576_v14  ;;  %v1701_v53 = vunpack.c.l.bf16 %v1646_v21  ;;  %v1608_v44 = vunpack.c.l.bf16 %v1552_v2  ;;  %v1458_v32 = vunpack.c.l.bf16 %v899_v45 }
 0x128   : > { %v1260_v25 = vunpack.c.l.bf16 %v1228_v8  ;;  %v1261_v37 = vunpack.c.l.bf16 %v1229_v20  ;;  %v1473_v62 = vmul.f32 %v1457_v1, %v3138_v60  ;;  %v1623_v31 = vunpack.c.l.bf16 %v1591_v7 }
 0x129   : > { %v1624_v49 = vunpack.c.l.bf16 %v1592_v56  ;;  %v1387_v22 = vpack.c.bf16 %v1371_v17, %v1371_v17  ;;  %v1679_v58 = vmul.f32 %v3136_v59, %v1301_v4  ;;  %v1527_v47 = vadd.f32 %v3591_v39, %v1495_v15 }
 0x12a   : > { %v1276_v11 = vadd.f32 %v1260_v25, %v1244_v43  ;;  %v1277_v40 = vadd.f32 %v1261_v37, %v3516_v18  ;;  %v1639_v21 = vadd.f32 %v1623_v31, %v1607_v19  ;;  %v1733_v0 = vadd.f32 %v1717_v24, %v1701_v53 }
 0x12b   : > { %v1640_v2 = vadd.f32 %v1624_v49, %v1608_v44  ;;  %v1695_v8 = vpack.c.bf16 %v1679_v58, %v1679_v58  ;;  %v1489_v20 = vpack.c.bf16 %v1473_v62, %v1473_v62  ;;  %v3661_v17 = vadd.f32 %v3598_v42, %v618_v9 }
 0x12c   : > { %v1292_v14 = vpack.c.bf16 %v1276_v11, %v1276_v11  ;;  %v1293_v45 = vpack.c.bf16 %v1277_v40, %v1277_v40  ;;  %v1655_v43 = vpack.c.bf16 %v1639_v21, %v1639_v21  ;;  %v1419_v39 = vunpack.c.l.bf16 %v1387_v22 }
 0x12d   : > { %v1656_v18 = vpack.c.bf16 %v1640_v2, %v1640_v2  ;;  %v1783_v15 = vmul.f32 %v3283_v30, %v1458_v32  ;;  %v1727_v49 = vunpack.c.l.bf16 %v1695_v8  ;;  %v712_v24 = vpack.c.bf16 %v3661_v17, %v3661_v17 }
 0x12e   : > { %v1402_v4 = vunpack.c.l.bf16 %v1292_v14  ;;  %v1403_v7 = vunpack.c.l.bf16 %v1293_v45  ;;  %v1710_v56 = vunpack.c.l.bf16 %v1655_v43  ;;  %v1543_v11 = vpack.c.bf16 %v1527_v47, %v1527_v47 }
 0x12f   : > { %v1711_v19 = vunpack.c.l.bf16 %v1656_v18  ;;  %v1474_v37 = vmul.f32 %v1458_v32, %v3138_v60  ;;  %v1782_v31 = vmul.f32 %v3283_v30, %v1457_v1  ;;  %v969_v40 = vunpack.c.l.bf16 %v712_v24 }
 0x130   : > { %v1434_v25 = vadd.f32 %v3589_v50, %v1402_v4  ;;  %v1742_v44 = vadd.f32 %v3587_v57, %v1710_v56  ;;  %v1749_v22 = vpack.c.bf16 %v1733_v0, %v1733_v0  ;;  %v1521_v9 = vunpack.c.l.bf16 %v1489_v20  ;;  %v662_v4 = vpop.f32.mrf.mxu1 }
 0x131   : > { %v1743_v62 = vadd.f32 %v1727_v49, %v1711_v19  ;;  %v1799_v47 = vpack.c.bf16 %v1783_v15, %v1783_v15  ;;  %v1435_v21 = vadd.f32 %v1419_v39, %v1403_v7  ;;  %v1308_v45 = vmul.f32 %v3120_v36, %v969_v40 }
 0x132   : > { %v1450_v58 = vpack.c.bf16 %v1434_v25, %v1434_v25  ;;  %v1758_v2 = vpack.c.bf16 %v1742_v44, %v1742_v44  ;;  %v985_v32 = vmul.f32 %v969_v40, %v3125_v48  ;;  %v1670_v57 = vmul.f32 %v3136_v59, %v969_v40 }
 0x133   : > { %v1759_v14 = vpack.c.bf16 %v1743_v62, %v1743_v62  ;;  %v692_v8 = vstv %s691_s16  ;;  %v4413_v1 = vpack.c.bf16 %v3609_v41, %v3609_v41  ;;  %v1490_v20 = vpack.c.bf16 %v1474_v37, %v1474_v37  ;;  %v620_v41 = vpop.f32.mrf.mxu0 }
 0x134   : > { %v1505_v50 = vunpack.c.l.bf16 %v1450_v58  ;;  %v1798_v43 = vpack.c.bf16 %v1782_v31, %v1782_v31  ;;  %v1831_v39 = vunpack.c.l.bf16 %v1799_v47  ;;  %v1324_v15 = vpack.c.bf16 %v1308_v45, %v1308_v45 }
 0x135   : > { %v3681_v0 = vunpack.c.l.bf16 %v4413_v1  ;;  %v1815_v18 = vunpack.c.l.bf16 %v1759_v14  ;;  %v663_v56 = vadd.f32 %v3598_v42, %v662_v4  ;;  %v3684_v19 = vunpack.c.l.bf16 %v1543_v11  ;;  %v686_v14 = vpop.f32.mrf.mxu2 }
 0x136   : > { %v1537_v7 = vadd.f32 %v1521_v9, %v1505_v50  ;;  %v1451_v49 = vpack.c.bf16 %v1435_v21, %v1435_v21  ;;  %v1814_v24 = vunpack.c.l.bf16 %v1758_v2  ;;  %vm3686_vm10 = vcmp.eq.s32.totalorder %v692_v8, 1 }
 0x137   : > { %v3692_v37 = vunpack.c.l.bf16 %v1749_v22  ;;  %v1847_v44 = vadd.f32 %v1831_v39, %v1815_v18  ;;  %v1001_v62 = vpack.c.bf16 %v985_v32, %v985_v32  ;;  %v1686_v31 = vpack.c.bf16 %v1670_v57, %v1670_v57 }
 0x138   : > { %v3694_v40 = vunpack.c.l.bf16 %v1490_v20  ;;  %v1830_v58 = vunpack.c.l.bf16 %v1798_v43  ;;  %v730_v11 = vrot.slane %v3661_v17, 7  ;;  %v819_v9 = vrot.slane %v3661_v17, 1 }
 0x139   : > { %4416 = vst [vmem:[#allocation32_spill] sm:$0xff] %v3692_v37  ;;  %v1553_v47 = vpack.c.bf16 %v1537_v7, %v1537_v7  ;;  %v1345_v21 = vunpack.c.l.bf16 %v1324_v15  ;;  %v3700_v2 = vsel %vm3686_vm10, 0.0, %v663_v56  ;;  %v621_v22 = vadd.f32 %v3598_v42, %v620_v41 }
 0x13a   : > { %v3703_v45 = vunpack.c.l.bf16 %v1451_v49  ;;  %v3705_v50 = vadd.f32 %v1830_v58, %v1814_v24  ;;  %v687_v32 = vadd.f32 %v3598_v42, %v686_v14  ;;  %v697_v57 = vstv %s696_s21 }
 0x13b   : > { %v1863_v8 = vpack.c.bf16 %v1847_v44, %v1847_v44  ;;  %v1033_v1 = vunpack.c.l.bf16 %v1001_v62  ;;  %v3708_v20 = vunpack.c.l.bf16 %v1686_v31  ;;  %v704_v17 = vpack.c.bf16 %v3700_v2, %v3700_v2 }
 0x13c   : > { %4417 = vst [vmem:[#allocation33_spill] sm:$0xff] %v3705_v50  ;;  %v713_v18 = vpack.c.bf16 %v621_v22, %v621_v22  ;;  %v740_v4 = vrot.slane %v621_v22, 7  ;;  %v829_v7 = vrot.slane %v621_v22, 1  ;;  %v3713_v39 = vunpack.c.l.bf16 %v1553_v47 }
 0x13d   : > { %4418 = vst [vmem:[#allocation34_spill] sm:$0xff] %v3708_v20  ;;  %v1362_v15 = vadd.f32 %v3130_v54, %v1345_v21  ;;  %vm3717_vm11 = vcmp.eq.s32.totalorder %v697_v57, 1  ;;  %v3729_v31 = vunpack.c.l.bf16 %v1863_v8  ;;  %v961_v58 = vunpack.c.l.bf16 %v704_v17 }
 0x13e   : > { %v751_v24 = vsel %vm746_vm3, %v730_v11, %v740_v4  ;;  %v761_v41 = vsel %vm746_vm3, %v740_v4, %v730_v11  ;;  %v840_v44 = vsel %vm835_vm4, %v819_v9, %v829_v7  ;;  %v850_v62 = vsel %vm835_vm4, %v829_v7, %v819_v9 }
 0x13f   : > { %4421 = vst [vmem:[#allocation35_spill] sm:$0xff] %v3729_v31  ;;  %v775_v47 = vpack.c.bf16 %v761_v41, %v761_v41  ;;  %v776_v21 = vpack.c.bf16 %v751_v24, %v751_v24  ;;  %v3733_v14 = vsel %vm3717_vm11, 0.0, %v687_v32  ;;  %v864_v22 = vpack.c.bf16 %v840_v44, %v840_v44 }
 0x140   : > { %v865_v57 = vpack.c.bf16 %v850_v62, %v850_v62  ;;  %v3735_v53 = vunpack.c.l.bf16 %v713_v18  ;;  %v1378_v11 = vpack.c.bf16 %v1362_v15, %v1362_v15  ;;  %v722_v4 = vpack.c.bf16 %v3733_v14, %v3733_v14 }
 0x141   : > { %v801_v9 = vsel %vm3154_vm6, %v775_v47, 0  ;;  %v802_v8 = vsel %vm3162_vm8, %v776_v21, 0  ;;  %v890_v17 = vsel %vm3162_vm8, %v864_v22, 0  ;;  %v1528_v44 = vadd.f32 %v3593_v28, %v3681_v0 }
 0x142   : > { %v891_v32 = vsel %vm3172_vm9, %v865_v57, 0  ;;  %v916_v7 = vunpack.c.l.bf16 %v801_v9  ;;  %v917_v24 = vunpack.c.l.bf16 %v802_v8  ;;  %v986_v18 = vmul.f32 %v3735_v53, %v3125_v48 }
 0x143   : > { %v3749_v15 = vunpack.c.l.bf16 %v890_v17  ;;  %v3751_v41 = vunpack.c.l.bf16 %v891_v32  ;;  %v977_v57 = vmul.f32 %v961_v58, %v3125_v48  ;;  %v1664_v9 = vunpack.c.l.bf16 %v722_v4 }
 0x144   : > { %v932_v62 = vmul.f32 %v916_v7, %v3127_v52  ;;  %v933_v47 = vmul.f32 %v917_v24, %v3127_v52  ;;  %v1204_v21 = vmul.f32 %v3146_v3, %v916_v7  ;;  %v1205_v22 = vmul.f32 %v3146_v3, %v917_v24 }
 0x145   : > { %v1002_v8 = vpack.c.bf16 %v986_v18, %v986_v18  ;;  %v1309_v17 = vmul.f32 %v3120_v36, %v3735_v53  ;;  %v1103_v0 = vmul.f32 %v3749_v15, %v3143_v63  ;;  %v1104_v31 = vmul.f32 %v3751_v41, %v3143_v63 }
 0x146   : > { %v948_v32 = vpack.c.bf16 %v932_v62, %v932_v62  ;;  %v949_v12 = vpack.c.bf16 %v933_v47, %v933_v47  ;;  %v1220_v56 = vpack.c.bf16 %v1204_v21, %v1204_v21  ;;  %v1221_v43 = vpack.c.bf16 %v1205_v22, %v1205_v22 }
 0x147   : > { %v1034_v28 = vunpack.c.l.bf16 %v1002_v8  ;;  %v1325_v20 = vpack.c.bf16 %v1309_v17, %v1309_v17  ;;  %v1410_v18 = vunpack.c.l.bf16 %v1378_v11  ;;  %v1680_v37 = vmul.f32 %v1664_v9, %v3136_v59 }
 0x148   : > { %v1017_v50 = vunpack.c.l.bf16 %v948_v32  ;;  %v1018_v5 = vunpack.c.l.bf16 %v949_v12  ;;  %v1252_v58 = vunpack.c.l.bf16 %v1220_v56  ;;  %v1253_v4 = vunpack.c.l.bf16 %v1221_v43  ;;  %v664_v56 = vpop.f32.mrf.mxu1 }
 0x149   : > { %v1346_v34 = vunpack.c.l.bf16 %v1325_v20  ;;  %v1544_v62 = vpack.c.bf16 %v1528_v44, %v1528_v44  ;;  %v1119_v38 = vpack.c.bf16 %v1103_v0, %v1103_v0  ;;  %v1120_v55 = vpack.c.bf16 %v1104_v31, %v1104_v31 }
 0x14a   : > { %v1049_v47 = vadd.f32 %v1033_v1, %v1017_v50  ;;  %v1050_v21 = vadd.f32 %v1034_v28, %v1018_v5  ;;  %v1268_v22 = vadd.f32 %v1252_v58, %v3601_v33  ;;  %v1269_v8 = vadd.f32 %v1253_v4, %v3607_v6 }
 0x14b   : > { %v1363_v46 = vadd.f32 %v3130_v54, %v1346_v34  ;;  %v1465_v12 = vmul.f32 %v3138_v60, %v3749_v15  ;;  %v1466_v5 = vmul.f32 %v3138_v60, %v3751_v41  ;;  %v1567_v33 = vmul.f32 %v3140_v61, %v916_v7 }
 0x14c   : > { %v1065_v43 = vpack.c.bf16 %v1049_v47, %v1049_v47  ;;  %v1066_v11 = vpack.c.bf16 %v1050_v21, %v1050_v21  ;;  %v1284_v17 = vpack.c.bf16 %v1268_v22, %v1268_v22  ;;  %v1285_v9 = vpack.c.bf16 %v1269_v8, %v1269_v8 }
 0x14d   : > { %v1379_v20 = vpack.c.bf16 %v1363_v46, %v1363_v46  ;;  %v1568_v6 = vmul.f32 %v3140_v61, %v917_v24  ;;  %v993_v50 = vpack.c.bf16 %v977_v57, %v977_v57  ;;  %v665_v34 = vadd.f32 %v3598_v42, %v664_v56 }
 0x14e   : > { %v1135_v1 = vunpack.c.l.bf16 %v1065_v43  ;;  %v1136_v31 = vunpack.c.l.bf16 %v1066_v11  ;;  %v1394_v44 = vunpack.c.l.bf16 %v1284_v17  ;;  %v1395_v32 = vunpack.c.l.bf16 %v1285_v9 }
 0x14f   : > { %v1584_v28 = vpack.c.bf16 %v1568_v6, %v1568_v6  ;;  %v1600_v0 = vunpack.c.l.bf16 %v1544_v62  ;;  %v1696_v58 = vpack.c.bf16 %v1680_v37, %v1680_v37  ;;  %v1151_v4 = vunpack.c.l.bf16 %v1119_v38 }
 0x150   : > { %v1152_v47 = vunpack.c.l.bf16 %v1120_v55  ;;  %v1481_v46 = vpack.c.bf16 %v1465_v12, %v1465_v12  ;;  %v1411_v21 = vunpack.c.l.bf16 %v1379_v20  ;;  %v1482_v22 = vpack.c.bf16 %v1466_v5, %v1466_v5 }
 0x151   : > { %v1583_v8 = vpack.c.bf16 %v1567_v33, %v1567_v33  ;;  %v1616_v60 = vunpack.c.l.bf16 %v1584_v28  ;;  %v735_v7 = vrot.slane %v3733_v14, 7  ;;  %v1167_v24 = vadd.f32 %v1151_v4, %v1135_v1 }
 0x152   : > { %v1168_v57 = vadd.f32 %v1152_v47, %v1136_v31  ;;  %v695_v43 = vsel %vm3686_vm10, 0.0, %v665_v34  ;;  %v1426_v56 = vadd.f32 %v1410_v18, %v1394_v44  ;;  %v3780_v11 = vadd.f32 %v1411_v21, %v1395_v32 }
 0x153   : > { %v1632_v17 = vadd.f32 %v1616_v60, %v1600_v0  ;;  %v1671_v38 = vmul.f32 %v3136_v59, %v3735_v53  ;;  %v3784_v55 = vunpack.c.l.bf16 %v993_v50  ;;  %v824_v37 = vrot.slane %v3733_v14, 1 }
 0x154   : > { %v3787_v62 = vunpack.c.l.bf16 %v1696_v58  ;;  %v3789_v12 = vunpack.c.l.bf16 %v1481_v46  ;;  %v3791_v9 = vunpack.c.l.bf16 %v1482_v22  ;;  %v1615_v20 = vunpack.c.l.bf16 %v1583_v8 }
 0x155   : > { %v1648_v25 = vpack.c.bf16 %v1632_v17, %v1632_v17  ;;  %v3795_v18 = vmul.f32 %v3283_v30, %v3749_v15  ;;  %v1183_v60 = vpack.c.bf16 %v1167_v24, %v1167_v24  ;;  %v1184_v5 = vpack.c.bf16 %v1168_v57, %v1168_v57  ;;  %v688_v57 = vpop.f32.mrf.mxu2 }
 0x156   : > { %v705_v33 = vpack.c.bf16 %v695_v43, %v695_v43  ;;  %v736_v53 = vrot.slane %v695_v43, 7  ;;  %v1442_v6 = vpack.c.bf16 %v1426_v56, %v1426_v56  ;;  %v1443_v50 = vpack.c.bf16 %v3780_v11, %v3780_v11 }
 0x157   : > { %v1687_v1 = vpack.c.bf16 %v1671_v38, %v1671_v38  ;;  %v825_v31 = vrot.slane %v695_v43, 1  ;;  %v3800_v34 = vadd.f32 %v1615_v20, %v3684_v19  ;;  %v3804_v44 = vmul.f32 %v3283_v30, %v3751_v41 }
 0x158   : > { %v4422_v15 = vrot.slane %v3700_v2, 7  ;;  %v1703_v58 = vunpack.c.l.bf16 %v1648_v25  ;;  %v4424_v19 = vrot.slane %v3700_v2, 1  ;;  %v3818_v41 = vunpack.c.l.bf16 %v1183_v60 }
 0x159   : > { %v962_v24 = vunpack.c.l.bf16 %v705_v33  ;;  %v1719_v43 = vunpack.c.l.bf16 %v1687_v1  ;;  %v689_v1 = vadd.f32 %v3598_v42, %v688_v57  ;;  %v1790_v57 = vpack.c.bf16 %v3795_v18, %v3795_v18 }
 0x15a   : > { %v747_v32 = vsel %vm746_vm3, %v4422_v15, %v736_v53  ;;  %v4423_v28 = vmov %v4422_v15  ;;  %v836_v46 = vsel %vm835_vm4, %v4424_v19, %v825_v31  ;;  %v4425_v21 = vmov %v4424_v19 }
 0x15b   : > { %v757_v0 = vsel %vm746_vm3, %v736_v53, %v4423_v28  ;;  %v768_v47 = vpack.c.bf16 %v747_v32, %v747_v32  ;;  %v846_v22 = vsel %vm835_vm4, %v825_v31, %v4425_v21  ;;  %v856_v8 = vpack.c.bf16 %v836_v46, %v836_v46 }
 0x15c   : > { %v767_v4 = vpack.c.bf16 %v757_v0, %v757_v0  ;;  %v857_v38 = vpack.c.bf16 %v846_v22, %v846_v22  ;;  %v978_v2 = vmul.f32 %v962_v24, %v3125_v48  ;;  %v1735_v53 = vadd.f32 %v1719_v43, %v1703_v58 }
 0x15d   : > { %v794_v17 = vsel %vm3162_vm8, %v768_v47, 0  ;;  %v882_v20 = vsel %vm3162_vm8, %v856_v8, 0  ;;  %v1497_v47 = vunpack.c.l.bf16 %v1442_v6  ;;  %v700_v58 = vsel %vm3717_vm11, 0.0, %v689_v1 }
 0x15e   : > { %v793_v56 = vsel %vm3154_vm6, %v767_v4, 0  ;;  %v909_v60 = vunpack.c.l.bf16 %v794_v17  ;;  %v883_v33 = vsel %vm3172_vm9, %v857_v38, 0  ;;  %v1079_v31 = vunpack.c.l.bf16 %v882_v20 }
 0x15f   : > { %v908_v25 = vunpack.c.l.bf16 %v793_v56  ;;  %v994_v28 = vpack.c.bf16 %v978_v2, %v978_v2  ;;  %v1080_v0 = vunpack.c.l.bf16 %v883_v33  ;;  %v3836_v4 = vunpack.c.l.bf16 %v1184_v5 }
 0x160   : > { %v925_v32 = vmul.f32 %v909_v60, %v3127_v52  ;;  %v1095_v19 = vmul.f32 %v1079_v31, %v3143_v63  ;;  %v1647_v24 = vpack.c.bf16 %v3800_v34, %v3800_v34  ;;  %v745_v5 = vrot.slane %v700_v58, 7 }
 0x161   : > { %v924_v15 = vmul.f32 %v908_v25, %v3127_v52  ;;  %v1026_v22 = vunpack.c.l.bf16 %v994_v28  ;;  %v1096_v8 = vmul.f32 %v1080_v0, %v3143_v63  ;;  %v1751_v56 = vpack.c.bf16 %v1735_v53, %v1735_v53  ;;  %v623_v28 = vpop.f32.mrf.mxu0 }
 0x162   : > { %v941_v21 = vpack.c.bf16 %v925_v32, %v925_v32  ;;  %v1111_v43 = vpack.c.bf16 %v1095_v19, %v1095_v19  ;;  %v834_v38 = vrot.slane %v700_v58, 1  ;;  %v756_v49 = vsel %vm746_vm3, %v735_v7, %v745_v5 }
 0x163   : > { %v940_v46 = vpack.c.bf16 %v924_v15, %v924_v15  ;;  %v1112_v20 = vpack.c.bf16 %v1096_v8, %v1096_v8  ;;  %v766_v25 = vsel %vm746_vm3, %v745_v5, %v735_v7  ;;  %v1538_v60 = vadd.f32 %v3694_v40, %v3703_v45 }
 0x164   : > { %v1010_v17 = vunpack.c.l.bf16 %v941_v21  ;;  %v723_v33 = vpack.c.bf16 %v700_v58, %v700_v58  ;;  %v785_v31 = vpack.c.bf16 %v766_v25, %v766_v25  ;;  %v1143_v1 = vunpack.c.l.bf16 %v1111_v43 }
 0x165   : > { %v1009_v6 = vunpack.c.l.bf16 %v940_v46  ;;  %v786_v15 = vpack.c.bf16 %v756_v49, %v756_v49  ;;  %v845_v32 = vsel %vm835_vm4, %v824_v37, %v834_v38  ;;  %v855_v7 = vsel %vm835_vm4, %v834_v38, %v824_v37 }
 0x166   : > { %v1042_v53 = vadd.f32 %v1026_v22, %v1010_v17  ;;  %v811_v45 = vsel %vm3154_vm6, %v785_v31, 0  ;;  %v1144_v19 = vunpack.c.l.bf16 %v1112_v20  ;;  %v875_v46 = vpack.c.bf16 %v855_v7, %v855_v7 }
 0x167   : > { %v1041_v2 = vadd.f32 %v3784_v55, %v1009_v6  ;;  %v874_v55 = vpack.c.bf16 %v845_v32, %v845_v32  ;;  %v812_v58 = vsel %vm3162_vm8, %v786_v15, 0  ;;  %v1561_v21 = vunpack.c.l.bf16 %v811_v45 }
 0x168   : > { %v1058_v40 = vpack.c.bf16 %v1042_v53, %v1042_v53  ;;  %v1562_v43 = vunpack.c.l.bf16 %v812_v58  ;;  %v1529_v37 = vadd.f32 %v3789_v12, %v1497_v47  ;;  %v1791_v5 = vpack.c.bf16 %v3804_v44, %v3804_v44 }
 0x169   : > { %v1057_v0 = vpack.c.bf16 %v1041_v2, %v1041_v2  ;;  %v900_v14 = vsel %vm3162_vm8, %v874_v55, 0  ;;  %v1577_v6 = vmul.f32 %v1561_v21, %v3140_v61  ;;  %v1665_v17 = vunpack.c.l.bf16 %v723_v33 }
 0x16a   : > { %v1128_v8 = vunpack.c.l.bf16 %v1058_v40  ;;  %v1554_v49 = vpack.c.bf16 %v1538_v60, %v1538_v60  ;;  %v1578_v25 = vmul.f32 %v1562_v43, %v3140_v61  ;;  %v1807_v2 = vunpack.c.l.bf16 %v1751_v56 }
 0x16b   : > { %v1127_v22 = vunpack.c.l.bf16 %v1057_v0  ;;  %v1593_v53 = vpack.c.bf16 %v1577_v6, %v1577_v6  ;;  %v1768_v31 = vunpack.c.l.bf16 %v900_v14  ;;  %v3877_v15 = vadd.f32 %v3598_v42, %v623_v28 }
 0x16c   : > { %v1160_v20 = vadd.f32 %v1144_v19, %v1128_v8  ;;  %v901_v12 = vsel %vm3172_vm9, %v875_v46, 0  ;;  %v1594_v44 = vpack.c.bf16 %v1578_v25, %v1578_v25  ;;  %v1823_v47 = vunpack.c.l.bf16 %v1791_v5  ;;  %v625_v46 = vpop.f32.mrf.mxu0 }
 0x16d   : > { %v1159_v38 = vadd.f32 %v1143_v1, %v1127_v22  ;;  %v1625_v0 = vunpack.c.l.bf16 %v1593_v53  ;;  %v1681_v33 = vmul.f32 %v1665_v17, %v3136_v59  ;;  %v714_v60 = vpack.c.bf16 %v3877_v15, %v3877_v15 }
 0x16e   : > { %v1176_v7 = vpack.c.bf16 %v1160_v20, %v1160_v20  ;;  %v1610_v40 = vunpack.c.l.bf16 %v1554_v49  ;;  %v1626_v45 = vunpack.c.l.bf16 %v1594_v44  ;;  %v1498_v28 = vunpack.c.l.bf16 %v1443_v50 }
 0x16f   : > { %v1175_v32 = vpack.c.bf16 %v1159_v38, %v1159_v38  ;;  %v1641_v55 = vadd.f32 %v1625_v0, %v3713_v39  ;;  %v1769_v19 = vunpack.c.l.bf16 %v901_v12  ;;  %v1784_v58 = vmul.f32 %v1768_v31, %v3283_v30 }
 0x170   : > { %v1231_v56 = vunpack.c.l.bf16 %v1176_v7  ;;  %v1545_v21 = vpack.c.bf16 %v1529_v37, %v1529_v37  ;;  %v3889_v22 = vadd.f32 %v1823_v47, %v1807_v2  ;;  %v3896_v43 = vunpack.c.l.bf16 %v1647_v24 }
 0x171   : > { %v1230_v1 = vunpack.c.l.bf16 %v1175_v32  ;;  %v3901_v39 = vunpack.c.l.bf16 %v1790_v57  ;;  %v1697_v11 = vpack.c.bf16 %v1681_v33, %v1681_v33  ;;  %v971_v50 = vunpack.c.l.bf16 %v714_v60 }
 0x172   : > { %v1263_v14 = vadd.f32 %v3253_v29, %v1231_v56  ;;  %v1642_v6 = vadd.f32 %v1626_v45, %v1610_v40  ;;  %v626_v17 = vadd.f32 %v3598_v42, %v625_v46  ;;  %v3905_v29 = vmul.f32 %v1769_v19, %v3283_v30 }
 0x173   : > { %v1262_v8 = vadd.f32 %v3251_v27, %v1230_v1  ;;  %v1657_v27 = vpack.c.bf16 %v1641_v55, %v1641_v55  ;;  %v1800_v38 = vpack.c.bf16 %v1784_v58, %v1784_v58  ;;  %v1310_v34 = vmul.f32 %v3120_v36, %v971_v50 }
 0x174   : > { %v1279_v37 = vpack.c.bf16 %v1263_v14, %v1263_v14  ;;  %v3908_v24 = vunpack.c.l.bf16 %v1545_v21  ;;  %v1855_v18 = vpack.c.bf16 %v3889_v22, %v3889_v22  ;;  %v987_v20 = vmul.f32 %v971_v50, %v3125_v48 }
 0x175   : > { %v1278_v5 = vpack.c.bf16 %v1262_v8, %v1262_v8  ;;  %v3913_v49 = vunpack.c.l.bf16 %v1697_v11  ;;  %v731_v25 = vrot.slane %v3877_v15, 7  ;;  %v1326_v42 = vpack.c.bf16 %v1310_v34, %v1310_v34 }
 0x176   : > { %v1672_v2 = vmul.f32 %v3136_v59, %v971_v50  ;;  %v1389_v53 = vunpack.c.l.bf16 %v1279_v37  ;;  %v1658_v32 = vpack.c.bf16 %v1642_v6, %v1642_v6  ;;  %v741_v7 = vrot.slane %v626_v17, 7 }
 0x177   : > { %v1388_v57 = vunpack.c.l.bf16 %v1278_v5  ;;  %v1712_v12 = vunpack.c.l.bf16 %v1657_v27  ;;  %v1801_v44 = vpack.c.bf16 %v3905_v29, %v3905_v29  ;;  %v3920_v47 = vunpack.c.l.bf16 %v1800_v38 }
 0x178   : > { %v820_v0 = vrot.slane %v3877_v15, 1  ;;  %v1003_v33 = vpack.c.bf16 %v987_v20, %v987_v20  ;;  %v1347_v60 = vunpack.c.l.bf16 %v1326_v42  ;;  %v752_v1 = vsel %vm746_vm3, %v731_v25, %v741_v7 }
 0x179   : > { %v1420_v31 = vadd.f32 %v3219_v26, %v1388_v57  ;;  %v3926_v56 = vadd.f32 %v3791_v9, %v1498_v28  ;;  %v1688_v40 = vpack.c.bf16 %v1672_v2, %v1672_v2  ;;  %v762_v26 = vsel %vm746_vm3, %v741_v7, %v731_v25 }
 0x17a   : > { %v778_v45 = vpack.c.bf16 %v752_v1, %v752_v1  ;;  %v4426_v55 = vpack.c.bf16 %v3612_v51, %v3612_v51  ;;  %v1421_v15 = vadd.f32 %v3256_v10, %v1389_v53  ;;  %v3936_v46 = vunpack.c.l.bf16 %v1658_v32 }
 0x17b   : > { %v1436_v58 = vpack.c.bf16 %v1420_v31, %v1420_v31  ;;  %v777_v21 = vpack.c.bf16 %v762_v26, %v762_v26  ;;  %v3939_v8 = vadd.f32 %v3787_v62, %v1712_v12  ;;  %v715_v9 = vpack.c.bf16 %v626_v17, %v626_v17 }
 0x17c   : > { %v3933_v19 = vunpack.c.l.bf16 %v4426_v55  ;;  %v804_v28 = vsel %vm3162_vm8, %v778_v45, 0  ;;  %v830_v14 = vrot.slane %v626_v17, 1  ;;  %v1035_v11 = vunpack.c.l.bf16 %v1003_v33 }
 0x17d   : > { %v1364_v50 = vadd.f32 %v3130_v54, %v1347_v60  ;;  %v803_v51 = vsel %vm3154_vm6, %v777_v21, 0  ;;  %v3946_v5 = vunpack.c.l.bf16 %v804_v28  ;;  %v3948_v10 = vunpack.c.l.bf16 %v1688_v40 }
 0x17e   : > { %v841_v37 = vsel %vm835_vm4, %v820_v0, %v830_v14  ;;  %v851_v62 = vsel %vm835_vm4, %v830_v14, %v820_v0  ;;  %v918_v6 = vunpack.c.l.bf16 %v803_v51  ;;  %v1437_v27 = vpack.c.bf16 %v1421_v15, %v1421_v15 }
 0x17f   : > { %v3954_v38 = vunpack.c.l.bf16 %v1436_v58  ;;  %v866_v17 = vpack.c.bf16 %v841_v37, %v841_v37  ;;  %v867_v34 = vpack.c.bf16 %v851_v62, %v851_v62  ;;  %v935_v13 = vmul.f32 %v3946_v5, %v3127_v52  ;;  %v4427_v37 = vld [vmem:[#allocation2_spill] sm:$0xff] }
 0x180   : > { %v934_v57 = vmul.f32 %v918_v6, %v3127_v52  ;;  %v972_v20 = vunpack.c.l.bf16 %v715_v9  ;;  %v1206_v25 = vmul.f32 %v3146_v3, %v918_v6  ;;  %v1380_v42 = vpack.c.bf16 %v1364_v50, %v1364_v50 }
 0x181   : > { %v892_v2 = vsel %vm3162_vm8, %v866_v17, 0  ;;  %v893_v35 = vsel %vm3172_vm9, %v867_v34, 0  ;;  %v1207_v53 = vmul.f32 %v3146_v3, %v3946_v5  ;;  %v951_v32 = vpack.c.bf16 %v935_v13, %v935_v13 }
 0x182   : > { %v950_v31 = vpack.c.bf16 %v934_v57, %v934_v57  ;;  %v988_v7 = vmul.f32 %v972_v20, %v3125_v48  ;;  %v3967_v12 = vunpack.c.l.bf16 %v892_v2  ;;  %v3969_v52 = vunpack.c.l.bf16 %v893_v35 }
 0x183   : > { %v1222_v0 = vpack.c.bf16 %v1206_v25, %v1206_v25  ;;  %v1223_v33 = vpack.c.bf16 %v1207_v53, %v1207_v53  ;;  %v1311_v60 = vmul.f32 %v3120_v36, %v972_v20  ;;  %v1020_v40 = vunpack.c.l.bf16 %v951_v32 }
 0x184   : > { %v1004_v16 = vpack.c.bf16 %v988_v7, %v988_v7  ;;  %v1019_v1 = vunpack.c.l.bf16 %v950_v31  ;;  %v1105_v23 = vmul.f32 %v3967_v12, %v3143_v63  ;;  %v1106_v3 = vmul.f32 %v3969_v52, %v3143_v63 }
 0x185   : > { %v1254_v26 = vunpack.c.l.bf16 %v1222_v0  ;;  %v1255_v45 = vunpack.c.l.bf16 %v1223_v33  ;;  %v1327_v48 = vpack.c.bf16 %v1311_v60, %v1311_v60  ;;  %v1492_v55 = vunpack.c.l.bf16 %v1437_v27 }
 0x186   : > { %v1036_v15 = vunpack.c.l.bf16 %v1004_v16  ;;  %v1051_v58 = vadd.f32 %v1035_v11, %v1019_v1  ;;  %v1121_v21 = vpack.c.bf16 %v1105_v23, %v1105_v23  ;;  %v1122_v9 = vpack.c.bf16 %v1106_v3, %v1106_v3 }
 0x187   : > { %v1270_v28 = vadd.f32 %v1254_v26, %v3818_v41  ;;  %v1271_v36 = vadd.f32 %v1255_v45, %v3836_v4  ;;  %v1348_v14 = vunpack.c.l.bf16 %v1327_v48  ;;  %v1467_v62 = vmul.f32 %v4427_v37, %v3967_v12  ;;  %v4428_v48 = vld [vmem:[#allocation6_spill] sm:$0xff] }
 0x188   : > { %v1052_v50 = vadd.f32 %v1036_v15, %v1020_v40  ;;  %v1067_v51 = vpack.c.bf16 %v1051_v58, %v1051_v58  ;;  %v1468_v63 = vmul.f32 %v4427_v37, %v3969_v52  ;;  %v1412_v17 = vunpack.c.l.bf16 %v1380_v42 }
 0x189   : > { %v1286_v34 = vpack.c.bf16 %v1270_v28, %v1270_v28  ;;  %v1287_v27 = vpack.c.bf16 %v1271_v36, %v1271_v36  ;;  %v1365_v11 = vadd.f32 %v3130_v54, %v1348_v14  ;;  %v1153_v25 = vunpack.c.l.bf16 %v1121_v21 }
 0x18a   : > { %v1068_v57 = vpack.c.bf16 %v1052_v50, %v1052_v50  ;;  %v1137_v13 = vunpack.c.l.bf16 %v1067_v51  ;;  %v1154_v41 = vunpack.c.l.bf16 %v1122_v9  ;;  %v1546_v53 = vpack.c.bf16 %v3926_v56, %v3926_v56 }
 0x18b   : > { %v1381_v2 = vpack.c.bf16 %v1365_v11, %v1365_v11  ;;  %v1396_v4 = vunpack.c.l.bf16 %v1286_v34  ;;  %v1397_v35 = vunpack.c.l.bf16 %v1287_v27  ;;  %v1483_v7 = vpack.c.bf16 %v1467_v62, %v1467_v62 }
 0x18c   : > { %v1138_v31 = vunpack.c.l.bf16 %v1068_v57  ;;  %v1169_v32 = vadd.f32 %v1153_v25, %v1137_v13  ;;  %v1484_v0 = vpack.c.bf16 %v1468_v63, %v1468_v63  ;;  %v1569_v60 = vmul.f32 %v3140_v61, %v918_v6 }
 0x18d   : > { %v1413_v33 = vunpack.c.l.bf16 %v1381_v2  ;;  %v1428_v42 = vadd.f32 %v1412_v17, %v1396_v4  ;;  %v1570_v54 = vmul.f32 %v3140_v61, %v3946_v5  ;;  %v1602_v40 = vunpack.c.l.bf16 %v1546_v53  ;;  %v4429_v5 = vld [vmem:[#allocation7_spill] sm:$0xff]  ;;  %v4430_v17 = vld [vmem:[#allocation8_spill] sm:$0xff] }
 0x18e   : > { %v1170_v16 = vadd.f32 %v1154_v41, %v1138_v31  ;;  %v1185_v1 = vpack.c.bf16 %v1169_v32, %v1169_v32  ;;  %v1673_v23 = vmul.f32 %v3136_v59, %v972_v20  ;;  %v1585_v45 = vpack.c.bf16 %v1569_v60, %v1569_v60  ;;  %v4434_v60 = vld [vmem:[#allocation4_spill] sm:$0xff] }
 0x18f   : > { %v1429_v3 = vadd.f32 %v1413_v33, %v1397_v35  ;;  %v1444_v26 = vpack.c.bf16 %v1428_v42, %v1428_v42  ;;  %v1586_v56 = vpack.c.bf16 %v1570_v54, %v1570_v54  ;;  %v3990_v15 = vadd.f32 %v4428_v48, %v1492_v55  ;;  %v4437_v48 = vld [vmem:[#allocation30_spill] sm:$0xff] }
 0x190   : > { %v1186_v58 = vpack.c.bf16 %v1170_v16, %v1170_v16  ;;  %v1240_v21 = vunpack.c.l.bf16 %v1185_v1  ;;  %v1515_v9 = vunpack.c.l.bf16 %v1483_v7  ;;  %v1617_v36 = vunpack.c.l.bf16 %v1585_v45 }
 0x191   : > { %v1445_v28 = vpack.c.bf16 %v1429_v3, %v1429_v3  ;;  %v1499_v6 = vunpack.c.l.bf16 %v1444_v26  ;;  %v1618_v14 = vunpack.c.l.bf16 %v1586_v56  ;;  %v1516_v51 = vunpack.c.l.bf16 %v1484_v0  ;;  %v4432_v0 = vld [vmem:[#allocation31_spill] sm:$0xff]  ;;  %v4436_v26 = vld [vmem:[#allocation14_spill] sm:$0xff] }
 0x192   : > { %v1241_v61 = vunpack.c.l.bf16 %v1186_v58  ;;  %v1272_v50 = vadd.f32 %v4429_v5, %v1240_v21  ;;  %v1689_v37 = vpack.c.bf16 %v1673_v23, %v1673_v23  ;;  %v1633_v62 = vadd.f32 %v1617_v36, %v3908_v24  ;;  %v4431_v24 = vld [vmem:[#allocation29_spill] sm:$0xff]  ;;  %v4435_v23 = vld [vmem:[#allocation32_spill] sm:$0xff] }
 0x193   : > { %v1500_v59 = vunpack.c.l.bf16 %v1445_v28  ;;  %v1531_v20 = vadd.f32 %v1515_v9, %v1499_v6  ;;  %v1634_v63 = vadd.f32 %v1618_v14, %v1602_v40  ;;  %v1540_v55 = vpack.c.bf16 %v3990_v15, %v3990_v15  ;;  %v4439_v21 = vld [vmem:[#allocation12_spill] sm:$0xff] }
 0x194   : > { %v1273_v34 = vadd.f32 %v4430_v17, %v1241_v61  ;;  %v1288_v27 = vpack.c.bf16 %v1272_v50, %v1272_v50  ;;  %v1777_v11 = vmul.f32 %v3283_v30, %v3969_v52  ;;  %v1776_v41 = vmul.f32 %v3283_v30, %v3967_v12  ;;  %v4440_v50 = vld [vmem:[#allocation33_spill] sm:$0xff] }
 0x195   : > { %v1532_v57 = vadd.f32 %v1516_v51, %v1500_v59  ;;  %v1547_v13 = vpack.c.bf16 %v1531_v20, %v1531_v20  ;;  %v1650_v25 = vpack.c.bf16 %v1634_v63, %v1634_v63  ;;  %v1721_v35 = vunpack.c.l.bf16 %v1689_v37  ;;  %v4441_v37 = vld [vmem:[#allocation11_spill] sm:$0xff] }
 0x196   : > { %v1289_v2 = vpack.c.bf16 %v1273_v34, %v1273_v34  ;;  %v1398_v4 = vunpack.c.l.bf16 %v1288_v27  ;;  %v1732_v53 = vadd.f32 %v4431_v24, %v3933_v19  ;;  %v1649_v32 = vpack.c.bf16 %v1633_v62, %v1633_v62 }
 0x197   : > { %v1548_v31 = vpack.c.bf16 %v1532_v57, %v1532_v57  ;;  %v1705_v7 = vunpack.c.l.bf16 %v1650_v25  ;;  %v4433_v33 = vpack.c.bf16 %v4432_v0, %v4432_v0  ;;  %v1793_v16 = vpack.c.bf16 %v1777_v11, %v1777_v11  ;;  %v4442_v25 = vld [vmem:[#allocation5_spill] sm:$0xff] }
 0x198   : > { %v1399_v52 = vunpack.c.l.bf16 %v1289_v2  ;;  %v1430_v54 = vadd.f32 %v4434_v60, %v1398_v4  ;;  %v1748_v1 = vpack.c.bf16 %v1732_v53, %v1732_v53  ;;  %v1603_v40 = vunpack.c.l.bf16 %v1547_v13  ;;  %v4443_v4 = vld [vmem:[#allocation10_spill] sm:$0xff] }
 0x199   : > { %v1821_v42 = vunpack.c.l.bf16 %v4433_v33  ;;  %v1604_v30 = vunpack.c.l.bf16 %v1548_v31  ;;  %v1737_v12 = vadd.f32 %v1721_v35, %v1705_v7  ;;  %v4438_v15 = vpack.c.bf16 %v4437_v48, %v4437_v48 }
 0x19a   : > { %v1431_v45 = vadd.f32 %v4436_v26, %v1399_v52  ;;  %v1446_v19 = vpack.c.bf16 %v1430_v54, %v1430_v54  ;;  %v1804_v56 = vunpack.c.l.bf16 %v1748_v1  ;;  %v1704_v36 = vunpack.c.l.bf16 %v1649_v32 }
 0x19b   : > { %v1837_v3 = vadd.f32 %v1821_v42, %v4435_v23  ;;  %v1820_v58 = vunpack.c.l.bf16 %v4438_v15  ;;  %v1636_v9 = vadd.f32 %v4439_v21, %v1604_v30  ;;  %v1753_v28 = vpack.c.bf16 %v1737_v12, %v1737_v12  ;;  %v4445_v12 = vld [vmem:[#allocation13_spill] sm:$0xff]  ;;  %v4448_v15 = vld [vmem:[#allocation3_spill] sm:$0xff] }
 0x19c   : > { %v1447_v14 = vpack.c.bf16 %v1431_v45, %v1431_v45  ;;  %v1792_v61 = vpack.c.bf16 %v1776_v41, %v1776_v41  ;;  %v1862_v51 = vpack.c.bf16 %v4440_v50, %v4440_v50  ;;  %v1635_v59 = vadd.f32 %v4441_v37, %v1603_v40 }
 0x19d   : > { %v1853_v6 = vpack.c.bf16 %v1837_v3, %v1837_v3  ;;  %v1836_v5 = vadd.f32 %v1820_v58, %v1804_v56  ;;  %v1652_v20 = vpack.c.bf16 %v1636_v9, %v1636_v9  ;;  %v1809_v62 = vunpack.c.l.bf16 %v1753_v28  ;;  %v4446_v3 = vld [vmem:[#allocation34_spill] sm:$0xff]  ;;  %v4449_v28 = vld [vmem:[#allocation9_spill] sm:$0xff] }
 0x19e   : > { %v1736_v63 = vadd.f32 %v3948_v10, %v1704_v36  ;;  %v1502_v17 = vunpack.c.l.bf16 %v1447_v14  ;;  %v1825_v11 = vunpack.c.l.bf16 %v1793_v16  ;;  %v1501_v57 = vunpack.c.l.bf16 %v1446_v19  ;;  %v4444_v10 = vld [vmem:[#allocation21_spill] sm:$0xff]  ;;  %v4447_v19 = vld [vmem:[#allocation20_spill] sm:$0xff] }
 0x19f   : > { %v1852_v34 = vpack.c.bf16 %v1836_v5, %v1836_v5  ;;  %v4017_v27 = vunpack.c.l.bf16 %v1853_v6  ;;  %v1523_v41 = vadd.f32 %v4442_v25, %v3954_v38  ;;  %v1596_v2 = vunpack.c.l.bf16 %v1540_v55  ;;  %v4450_v5 = vld [vmem:[#allocation23_spill] sm:$0xff]  ;;  %v4453_v25 = vld [vmem:[#allocation16_spill] sm:$0xff] }
 0x1a0   : > { %v1752_v13 = vpack.c.bf16 %v1736_v63, %v1736_v63  ;;  %v1534_v35 = vadd.f32 %v4443_v4, %v1502_v17  ;;  %v1824_v53 = vunpack.c.l.bf16 %v1792_v61  ;;  %v1841_v31 = vadd.f32 %v1825_v11, %v1809_v62 }
 0x1a1   : > { %v4022_v24 = vunpack.c.l.bf16 %v1852_v34  ;;  %v1539_v7 = vpack.c.bf16 %v1523_v41, %v1523_v41  ;;  %v1628_v0 = vadd.f32 %v4444_v10, %v1596_v2  ;;  %v1651_v33 = vpack.c.bf16 %v1635_v59, %v1635_v59 }
 0x1a2   : > { %v1808_v32 = vunpack.c.l.bf16 %v1752_v13  ;;  %v1550_v42 = vpack.c.bf16 %v1534_v35, %v1534_v35  ;;  %v1857_v60 = vpack.c.bf16 %v1841_v31, %v1841_v31  ;;  %v1707_v54 = vunpack.c.l.bf16 %v1652_v20  ;;  %v4451_v20 = vld [vmem:[#allocation26_spill] sm:$0xff]  ;;  %v4454_v35 = vld [vmem:[#allocation17_spill] sm:$0xff] }
 0x1a3   : > { %v2868_v52 = vpack.i.bf16 %v4017_v27, %v4022_v24  ;;  %v1595_v38 = vunpack.c.l.bf16 %v1539_v7  ;;  %v1644_v55 = vpack.c.bf16 %v1628_v0, %v1628_v0  ;;  %v1706_v1 = vunpack.c.l.bf16 %v1651_v33  ;;  %v4457_v0 = vld [vmem:[#allocation15_spill] sm:$0xff] }
 0x1a4   : > { %v1840_v16 = vadd.f32 %v1824_v53, %v1808_v32  ;;  %v4028_v40 = vunpack.c.l.bf16 %v1862_v51  ;;  %v4030_v30 = vunpack.c.l.bf16 %v1857_v60  ;;  %v1739_v23 = vadd.f32 %v4445_v12, %v1707_v54  ;;  %v4455_v32 = vld [vmem:[#allocation22_spill] sm:$0xff]  ;;  %v4458_v60 = vld [vmem:[#allocation25_spill] sm:$0xff] }
 0x1a5   : > { %2869 = vrot.lane.b32.xlu2 %v2868_v52, %s2964_s30  ;;  %v1734_v26 = vadd.f32 %v4446_v3, %v3896_v43  ;;  %v1627_v56 = vadd.f32 %v4447_v19, %v1595_v38  ;;  %v1699_v48 = vunpack.c.l.bf16 %v1644_v55  ;;  %v1738_v58 = vadd.f32 %v4448_v15, %v1706_v1 }
 0x1a6   : > { %v1856_v45 = vpack.c.bf16 %v1840_v16, %v1840_v16  ;;  %v1755_v21 = vpack.c.bf16 %v1739_v23, %v1739_v23  ;;  %v1533_v6 = vadd.f32 %v4449_v28, %v1501_v57  ;;  %v1606_v36 = vunpack.c.l.bf16 %v1550_v42  ;;  %v4452_v57 = vld [vmem:[#allocation35_spill] sm:$0xff] }
 0x1a7   : > { %v1750_v9 = vpack.c.bf16 %v1734_v26, %v1734_v26  ;;  %v1643_v61 = vpack.c.bf16 %v1627_v56, %v1627_v56  ;;  %v1731_v50 = vadd.f32 %v4450_v5, %v1699_v48  ;;  %v1754_v51 = vpack.c.bf16 %v1738_v58, %v1738_v58  ;;  %v4462_v5 = vld [vmem:[#allocation18_spill] sm:$0xff] }
 0x1a8   : > { %v4038_v14 = vunpack.c.l.bf16 %v1856_v45  ;;  %v1811_v37 = vunpack.c.l.bf16 %v1755_v21  ;;  %v1549_v43 = vpack.c.bf16 %v1533_v6, %v1533_v6  ;;  %v1638_v62 = vadd.f32 %v4451_v20, %v1606_v36  ;;  %v4459_v45 = vld [vmem:[#allocation24_spill] sm:$0xff] }
 0x1a9   : > { %v1806_v59 = vunpack.c.l.bf16 %v1750_v9  ;;  %v1698_v17 = vunpack.c.l.bf16 %v1643_v61  ;;  %v1747_v34 = vpack.c.bf16 %v1731_v50, %v1731_v50  ;;  %v1810_v11 = vunpack.c.l.bf16 %v1754_v51 }
 0x1aa   : > { %v2848_v63 = vpack.i.bf16 %v4030_v30, %v4038_v14  ;;  %v2873_v13 = vpack.i.bf16 %v4452_v57, %v4028_v40  ;;  %v1843_v41 = vadd.f32 %v4453_v25, %v1811_v37  ;;  %v1605_v2 = vunpack.c.l.bf16 %v1549_v43 }
 0x1ab   : > { %v1654_v4 = vpack.c.bf16 %v1638_v62, %v1638_v62  ;;  %v1730_v53 = vadd.f32 %v4454_v35, %v1698_v17  ;;  %v1803_v31 = vunpack.c.l.bf16 %v1747_v34  ;;  %v4456_v7 = vpack.c.bf16 %v4455_v32, %v4455_v32 }
 0x1ac   : > { %2849 = vrot.lane.b32.xlu0 %v2848_v63, %s2964_s30  ;;  %v1842_v33 = vadd.f32 %v4457_v0, %v1810_v11  ;;  %v1745_v42 = vadd.f32 %v3913_v49, %v3936_v46  ;;  %v1859_v52 = vpack.c.bf16 %v1843_v41, %v1843_v41  ;;  %v1637_v54 = vadd.f32 %v4458_v60, %v1605_v2  ;;  %v4460_v46 = vld [vmem:[#allocation19_spill] sm:$0xff]  ;;  %v4463_v63 = vld [vmem:[#allocation28_spill] sm:$0xff] }
 0x1ad   : > { %v1819_v10 = vunpack.c.l.bf16 %v4456_v7  ;;  %2874 = vrot.lane.b32.xlu2 %v2873_v13, %s2964_s30  ;;  %v1709_v16 = vunpack.c.l.bf16 %v1654_v4  ;;  %v1746_v38 = vpack.c.bf16 %v1730_v53, %v1730_v53  ;;  %v1838_v12 = vadd.f32 %v3901_v39, %v1806_v59 }
 0x1ae   : > { %v1858_v1 = vpack.c.bf16 %v1842_v33, %v1842_v33  ;;  %v1760_v23 = vpack.c.bf16 %v3939_v8, %v3939_v8  ;;  %v4060_v3 = vunpack.c.l.bf16 %v1859_v52  ;;  %v1653_v26 = vpack.c.bf16 %v1637_v54, %v1637_v54  ;;  %v4464_v33 = vld [vmem:[#allocation27_spill] sm:$0xff] }
 0x1af   : > { %v1835_v55 = vadd.f32 %v1819_v10, %v1803_v31  ;;  %v1741_v19 = vadd.f32 %v4459_v45, %v1709_v16  ;;  %v1802_v49 = vunpack.c.l.bf16 %v1746_v38  ;;  %v4461_v56 = vpack.c.bf16 %v4460_v46, %v4460_v46 }
 0x1b0   : > { %v4066_v58 = vunpack.c.l.bf16 %v1858_v1  ;;  %v1833_v39 = vunpack.c.l.bf16 %v1801_v44  ;;  %v1708_v21 = vunpack.c.l.bf16 %v1653_v26  ;;  %v1885_v8 = vmul.f32 %v4017_v27, %v4017_v27 }
 0x1b1   : > { %v1818_v48 = vunpack.c.l.bf16 %v4461_v56  ;;  %v1851_v15 = vpack.c.bf16 %v1835_v55, %v1835_v55  ;;  %v1757_v9 = vpack.c.bf16 %v1741_v19, %v1741_v19  ;;  %v1761_v28 = vpack.c.bf16 %v1745_v42, %v1745_v42 }
 0x1b2   : > { %v2853_v36 = vpack.i.bf16 %v4060_v3, %v4066_v58  ;;  %v1854_v61 = vpack.c.bf16 %v1838_v12, %v1838_v12  ;;  %v1740_v50 = vadd.f32 %v4462_v5, %v1708_v21  ;;  %v1901_v37 = vpack.c.bf16 %v1885_v8, %v1885_v8 }
 0x1b3   : > { %v1834_v6 = vadd.f32 %v1818_v48, %v1802_v49  ;;  %v1813_v51 = vunpack.c.l.bf16 %v1757_v9  ;;  %v1884_v59 = vmul.f32 %v4022_v24, %v4022_v24  ;;  %v1816_v29 = vunpack.c.l.bf16 %v1760_v23 }
 0x1b4   : > { %v4078_v43 = vunpack.c.l.bf16 %v1851_v15  ;;  %2854 = vrot.lane.b32.xlu0 %v2853_v36, %s2964_s30  ;;  %v1894_v20 = vmul.f32 %v4028_v40, %v4028_v40  ;;  %v1756_v62 = vpack.c.bf16 %v1740_v50, %v1740_v50  ;;  %v1917_v34 = vunpack.c.l.bf16 %v1901_v37 }
 0x1b5   : > { %v1850_v44 = vpack.c.bf16 %v1834_v6, %v1834_v6  ;;  %v1845_v17 = vadd.f32 %v4463_v63, %v1813_v51  ;;  %v1900_v11 = vpack.c.bf16 %v1884_v59, %v1884_v59  ;;  %v4086_v25 = vunpack.c.l.bf16 %v1854_v61 }
 0x1b6   : > { %v4091_v41 = vunpack.c.l.bf16 %v1855_v18  ;;  %v1895_v2 = vmul.f32 %v4452_v57, %v4452_v57  ;;  %v1812_v4 = vunpack.c.l.bf16 %v1756_v62  ;;  %v1933_v53 = vmul.f32 %v1917_v34, %v4017_v27 }
 0x1b7   : > { %v4084_v13 = vunpack.c.l.bf16 %v1850_v44  ;;  %v1861_v35 = vpack.c.bf16 %v1845_v17, %v1845_v17  ;;  %v1916_v31 = vunpack.c.l.bf16 %v1900_v11  ;;  %v1817_v32 = vunpack.c.l.bf16 %v1761_v28 }
 0x1b8   : > { %v1910_v10 = vpack.c.bf16 %v1894_v20, %v1894_v20  ;;  %v1911_v0 = vpack.c.bf16 %v1895_v2, %v1895_v2  ;;  %v1844_v42 = vadd.f32 %v4464_v33, %v1812_v4  ;;  %v1949_v52 = vpack.c.bf16 %v1933_v53, %v1933_v53 }
 0x1b9   : > { %v2858_v7 = vpack.i.bf16 %v4078_v43, %v4084_v13  ;;  %v1932_v22 = vmul.f32 %v1916_v31, %v4022_v24  ;;  %v2878_v18 = vpack.i.bf16 %v4091_v41, %v4086_v25  ;;  %v4103_v38 = vunpack.c.l.bf16 %v1861_v35 }
 0x1ba   : > { %v1926_v60 = vunpack.c.l.bf16 %v1910_v10  ;;  %v1927_v54 = vunpack.c.l.bf16 %v1911_v0  ;;  %v1860_v16 = vpack.c.bf16 %v1844_v42, %v1844_v42  ;;  %v1965_v55 = vunpack.c.l.bf16 %v1949_v52 }
 0x1bb   : > { %2859 = vrot.lane.b32.xlu1 %v2858_v7, %s2964_s30  ;;  %v1948_v1 = vpack.c.bf16 %v1932_v22, %v1932_v22  ;;  %v1848_v12 = vadd.f32 %v3920_v47, %v1816_v29  ;;  %v1849_v23 = vadd.f32 %v1833_v39, %v1817_v32  ;;  %v1889_v59 = vmul.f32 %v4030_v30, %v4030_v30 }
 0x1bc   : > { %2879 = vrot.lane.b32.xlu0 %v2878_v18, %s2964_s30  ;;  %v1942_v26 = vmul.f32 %v1926_v60, %v4028_v40  ;;  %v1943_v45 = vmul.f32 %v1927_v54, %v4452_v57  ;;  %v4109_v19 = vunpack.c.l.bf16 %v1860_v16  ;;  %v1981_v49 = vmul.f32 0.044677734, %v1965_v55 }
 0x1bd   : > { %v1964_v46 = vunpack.c.l.bf16 %v1948_v1  ;;  %v1865_v9 = vpack.c.bf16 %v1849_v23, %v1849_v23  ;;  %v1864_v8 = vpack.c.bf16 %v1848_v12, %v1848_v12  ;;  %v1888_v62 = vmul.f32 %v4038_v14, %v4038_v14 }
 0x1be   : > { %v1958_v56 = vpack.c.bf16 %v1942_v26, %v1942_v26  ;;  %v1959_v48 = vpack.c.bf16 %v1943_v45, %v1943_v45  ;;  %v2863_v15 = vpack.i.bf16 %v4103_v38, %v4109_v19  ;;  %v1997_v21 = vpack.c.bf16 %v1981_v49, %v1981_v49 }
 0x1bf   : > { %v1980_v47 = vmul.f32 0.044677734, %v1964_v46  ;;  %v4114_v36 = vunpack.c.l.bf16 %v1865_v9  ;;  %v4116_v61 = vunpack.c.l.bf16 %v1864_v8  ;;  %v1905_v17 = vpack.c.bf16 %v1889_v59, %v1889_v59 }
 0x1c0   : > { %v1974_v39 = vunpack.c.l.bf16 %v1958_v56  ;;  %v1975_v28 = vunpack.c.l.bf16 %v1959_v48  ;;  %v2013_v6 = vunpack.c.l.bf16 %v1997_v21  ;;  %v1904_v34 = vpack.c.bf16 %v1888_v62, %v1888_v62 }
 0x1c1   : > { %v1996_v5 = vpack.c.bf16 %v1980_v47, %v1980_v47  ;;  %v2883_v29 = vpack.i.bf16 %v4114_v36, %v4116_v61  ;;  %v1921_v2 = vunpack.c.l.bf16 %v1905_v17  ;;  %v1887_v33 = vmul.f32 %v4091_v41, %v4091_v41 }
 0x1c2   : > { %v1990_v50 = vmul.f32 0.044677734, %v1974_v39  ;;  %v1991_v51 = vmul.f32 0.044677734, %v1975_v28  ;;  %v2029_v37 = vadd.f32 %v2013_v6, %v4017_v27  ;;  %v1920_v53 = vunpack.c.l.bf16 %v1904_v34 }
 0x1c3   : > { %2864 = vrot.lane.b32.xlu1 %v2863_v15, %s2964_s30  ;;  %v2012_v44 = vunpack.c.l.bf16 %v1996_v5  ;;  %v1937_v32 = vmul.f32 %v1921_v2, %v4030_v30  ;;  %v1903_v1 = vpack.c.bf16 %v1887_v33, %v1887_v33  ;;  %v1883_v45 = vmul.f32 %v4078_v43, %v4078_v43 }
 0x1c4   : > { %v2006_v20 = vpack.c.bf16 %v1990_v50, %v1990_v50  ;;  %v2007_v63 = vpack.c.bf16 %v1991_v51, %v1991_v51  ;;  %v2045_v11 = vpack.c.bf16 %v2029_v37, %v2029_v37  ;;  %v1936_v7 = vmul.f32 %v1920_v53, %v4038_v14 }
 0x1c5   : > { %v2028_v4 = vadd.f32 %v2012_v44, %v4022_v24  ;;  %v1953_v0 = vpack.c.bf16 %v1937_v32, %v1937_v32  ;;  %v1882_v56 = vmul.f32 %v4084_v13, %v4084_v13  ;;  %v2157_v48 = vmul.f32 0.5, %v4017_v27 }
 0x1c6   : > { %v2022_v35 = vunpack.c.l.bf16 %v2006_v20  ;;  %v2023_v31 = vunpack.c.l.bf16 %v2007_v63  ;;  %v2061_v10 = vunpack.c.l.bf16 %v2045_v11  ;;  %v1952_v22 = vpack.c.bf16 %v1936_v7, %v1936_v7 }
 0x1c7   : > { %v2044_v42 = vpack.c.bf16 %v2028_v4, %v2028_v4  ;;  %v1969_v60 = vunpack.c.l.bf16 %v1953_v0  ;;  %v1899_v21 = vpack.c.bf16 %v1883_v45, %v1883_v45  ;;  %v1898_v47 = vpack.c.bf16 %v1882_v56, %v1882_v56 }
 0x1c8   : > { %v2038_v52 = vadd.f32 %v2022_v35, %v4028_v40  ;;  %v2039_v18 = vadd.f32 %v2023_v31, %v4452_v57  ;;  %v1968_v54 = vunpack.c.l.bf16 %v1952_v22  ;;  %v2077_v16 = vmul.f32 0.796875, %v2061_v10 }
 0x1c9   : > { %v1985_v55 = vmul.f32 0.044677734, %v1969_v60  ;;  %v2060_v12 = vunpack.c.l.bf16 %v2044_v42  ;;  %v1919_v39 = vunpack.c.l.bf16 %v1903_v1  ;;  %v1915_v5 = vunpack.c.l.bf16 %v1899_v21 }
 0x1ca   : > { %v2054_v23 = vpack.c.bf16 %v2038_v52, %v2038_v52  ;;  %v1984_v26 = vmul.f32 0.044677734, %v1968_v54  ;;  %v2055_v49 = vpack.c.bf16 %v2039_v18, %v2039_v18  ;;  %v2093_v9 = vpack.c.bf16 %v2077_v16, %v2077_v16 }
 0x1cb   : > { %2884 = vrot.lane.b32.xlu1 %v2883_v29, %s2964_s30  ;;  %v2001_v46 = vpack.c.bf16 %v1985_v55, %v1985_v55  ;;  %v2076_v28 = vmul.f32 0.796875, %v2060_v12  ;;  %v1886_v50 = vmul.f32 %v4086_v25, %v4086_v25  ;;  %v1914_v59 = vunpack.c.l.bf16 %v1898_v47 }
 0x1cc   : > { %v2000_v15 = vpack.c.bf16 %v1984_v26, %v1984_v26  ;;  %v2070_v6 = vunpack.c.l.bf16 %v2054_v23  ;;  %v2071_v51 = vunpack.c.l.bf16 %v2055_v49  ;;  %v2156_v29 = vmul.f32 0.5, %v4022_v24 }
 0x1cd   : > { %v2017_v8 = vunpack.c.l.bf16 %v2001_v46  ;;  %v1931_v27 = vmul.f32 %v1915_v5, %v4078_v43  ;;  %v2109_v20 = vunpack.c.l.bf16 %v2093_v9  ;;  %v1930_v62 = vmul.f32 %v1914_v59, %v4084_v13 }
 0x1ce   : > { %v2016_v37 = vunpack.c.l.bf16 %v2000_v15  ;;  %v1935_v63 = vmul.f32 %v1919_v39, %v4091_v41  ;;  %v2173_v17 = vpack.c.bf16 %v2157_v48, %v2157_v48  ;;  %v2092_v34 = vpack.c.bf16 %v2076_v28, %v2076_v28 }
 0x1cf   : > { %v2033_v44 = vadd.f32 %v2017_v8, %v4030_v30  ;;  %v2086_v11 = vmul.f32 0.796875, %v2070_v6  ;;  %v1902_v2 = vpack.c.bf16 %v1886_v50, %v1886_v50  ;;  %v2087_v4 = vmul.f32 0.796875, %v2071_v51 }
 0x1d0   : > { %v2032_v35 = vadd.f32 %v2016_v37, %v4038_v14  ;;  %v1947_v53 = vpack.c.bf16 %v1931_v27, %v1931_v27  ;;  %v1946_v31 = vpack.c.bf16 %v1930_v62, %v1930_v62  ;;  %v2172_v32 = vpack.c.bf16 %v2156_v29, %v2156_v29 }
 0x1d1   : > { %v2049_v24 = vpack.c.bf16 %v2033_v44, %v2033_v44  ;;  %2890 = vtanh.f32 %v2109_v20  ;;  %v1951_v0 = vpack.c.bf16 %v1935_v63, %v1935_v63  ;;  %v4146_v33 = vunpack.c.l.bf16 %v2173_v17 }
 0x1d2   : > { %v1963_v7 = vunpack.c.l.bf16 %v1947_v53  ;;  %v1962_v10 = vunpack.c.l.bf16 %v1946_v31  ;;  %v2108_v42 = vunpack.c.l.bf16 %v2092_v34  ;;  %v2102_v52 = vpack.c.bf16 %v2086_v11, %v2086_v11 }
 0x1d3   : > { %v1918_v22 = vunpack.c.l.bf16 %v1902_v2  ;;  %v2103_v18 = vpack.c.bf16 %v2087_v4, %v2087_v4  ;;  %v2048_v60 = vpack.c.bf16 %v2032_v35, %v2032_v35  ;;  %v4148_v55 = vunpack.c.l.bf16 %v2172_v32 }
 0x1d4   : > { %v1979_v54 = vmul.f32 0.044677734, %v1963_v7  ;;  %v1978_v16 = vmul.f32 0.044677734, %v1962_v10  ;;  %v2166_v1 = vmul.f32 0.5, %v4028_v40  ;;  %v2065_v12 = vunpack.c.l.bf16 %v2049_v24 }
 0x1d5   : > { %v1890_v23 = vmul.f32 %v4066_v58, %v4066_v58  ;;  %v1891_v49 = vmul.f32 %v4060_v3, %v4060_v3  ;;  %v1967_v46 = vunpack.c.l.bf16 %v1951_v0  ;;  %2892 = vtanh.f32 %v2108_v42 }
 0x1d6   : > { %v1995_v26 = vpack.c.bf16 %v1979_v54, %v1979_v54  ;;  %v1994_v45 = vpack.c.bf16 %v1978_v16, %v1978_v16  ;;  %v2118_v56 = vunpack.c.l.bf16 %v2102_v52  ;;  %v2167_v48 = vmul.f32 0.5, %v4452_v57 }
 0x1d7   : > { %v1934_v15 = vmul.f32 %v1918_v22, %v4086_v25  ;;  %v2891_v21 = vpop.eup %2890  ;;  %v2119_v9 = vunpack.c.l.bf16 %v2103_v18  ;;  %v2064_v8 = vunpack.c.l.bf16 %v2048_v60  ;;  %v2182_v39 = vpack.c.bf16 %v2166_v1, %v2166_v1 }
 0x1d8   : > { %v2011_v40 = vunpack.c.l.bf16 %v1995_v26  ;;  %v2010_v47 = vunpack.c.l.bf16 %v1994_v45  ;;  %v2081_v28 = vmul.f32 0.796875, %v2065_v12  ;;  %v2161_v6 = vmul.f32 0.5, %v4030_v30 }
 0x1d9   : > { %v1906_v5 = vpack.c.bf16 %v1890_v23, %v1890_v23  ;;  %v2160_v50 = vmul.f32 0.5, %v4038_v14  ;;  %v1907_v37 = vpack.c.bf16 %v1891_v49, %v1891_v49  ;;  %v1983_v59 = vmul.f32 0.044677734, %v1967_v46 }
 0x1da   : > { %v2027_v51 = vadd.f32 %v2011_v40, %v4078_v43  ;;  %v2141_v29 = vpack.c.bf16 %v2891_v21, %v2891_v21  ;;  %2894 = vtanh.f32 %v2118_v56  ;;  %v2026_v57 = vadd.f32 %v2010_v47, %v4084_v13 }
 0x1db   : > { %v1922_v44 = vunpack.c.l.bf16 %v1906_v5  ;;  %2896 = vtanh.f32 %v2119_v9  ;;  %v2080_v27 = vmul.f32 0.796875, %v2064_v8  ;;  %v1923_v20 = vunpack.c.l.bf16 %v1907_v37  ;;  %v2893_v63 = vpop.eup %2892 }
 0x1dc   : > { %v1950_v62 = vpack.c.bf16 %v1934_v15, %v1934_v15  ;;  %v2183_v17 = vpack.c.bf16 %v2167_v48, %v2167_v48  ;;  %v4161_v34 = vunpack.c.l.bf16 %v2182_v39  ;;  %v2097_v30 = vpack.c.bf16 %v2081_v28, %v2081_v28 }
 0x1dd   : > { %v1938_v14 = vmul.f32 %v1922_v44, %v4066_v58  ;;  %v2177_v11 = vpack.c.bf16 %v2161_v6, %v2161_v6  ;;  %v2043_v2 = vpack.c.bf16 %v2027_v51, %v2027_v51  ;;  %v1939_v4 = vmul.f32 %v1923_v20, %v4060_v3 }
 0x1de   : > { %v1999_v35 = vpack.c.bf16 %v1983_v59, %v1983_v59  ;;  %v2189_v53 = vunpack.c.l.bf16 %v2141_v29  ;;  %v2176_v31 = vpack.c.bf16 %v2160_v50, %v2160_v50  ;;  %v2042_v32 = vpack.c.bf16 %v2026_v57, %v2026_v57 }
 0x1df   : > { %v1954_v24 = vpack.c.bf16 %v1938_v14, %v1938_v14  ;;  %v2140_v7 = vpack.c.bf16 %v2893_v63, %v2893_v63  ;;  %v2096_v10 = vpack.c.bf16 %v2080_v27, %v2080_v27  ;;  %v1955_v0 = vpack.c.bf16 %v1939_v4, %v1939_v4 }
 0x1e0   : > { %v1966_v42 = vunpack.c.l.bf16 %v1950_v62  ;;  %v2895_v52 = vpop.eup %2894  ;;  %v4165_v22 = vunpack.c.l.bf16 %v2183_v17  ;;  %v2113_v18 = vunpack.c.l.bf16 %v2097_v30  ;;  %v4169_v54 = vmul.f32 %v4116_v61, %v4116_v61 }
 0x1e1   : > { %v1970_v60 = vunpack.c.l.bf16 %v1954_v24  ;;  %v2897_v16 = vpop.eup %2896  ;;  %v4171_v1 = vunpack.c.l.bf16 %v2177_v11  ;;  %v2059_v12 = vunpack.c.l.bf16 %v2043_v2  ;;  %v1971_v23 = vunpack.c.l.bf16 %v1955_v0 }
 0x1e2   : > { %v2015_v26 = vunpack.c.l.bf16 %v1999_v35  ;;  %v2205_v45 = vadd.f32 1.0, %v2189_v53  ;;  %v4173_v49 = vunpack.c.l.bf16 %v2176_v31  ;;  %v2058_v46 = vunpack.c.l.bf16 %v2042_v32 }
 0x1e3   : > { %v1986_v56 = vmul.f32 0.044677734, %v1970_v60  ;;  %v2188_v48 = vunpack.c.l.bf16 %v2140_v7  ;;  %v2112_v15 = vunpack.c.l.bf16 %v2096_v10  ;;  %v1987_v21 = vmul.f32 0.044677734, %v1971_v23 }
 0x1e4   : > { %v1982_v9 = vmul.f32 0.044677734, %v1966_v42  ;;  %v2150_v8 = vpack.c.bf16 %v2895_v52, %v2895_v52  ;;  %v2151_v40 = vpack.c.bf16 %v2897_v16, %v2897_v16  ;;  %2898 = vtanh.f32 %v2113_v18 }
 0x1e5   : > { %v2002_v47 = vpack.c.bf16 %v1986_v56, %v1986_v56  ;;  %v2075_v39 = vmul.f32 0.796875, %v2059_v12  ;;  %v2003_v28 = vpack.c.bf16 %v1987_v21, %v1987_v21  ;;  %v2031_v6 = vadd.f32 %v2015_v26, %v4091_v41 }
 0x1e6   : > { %v1892_v5 = vmul.f32 %v4109_v19, %v4109_v19  ;;  %v2221_v50 = vpack.c.bf16 %v2205_v45, %v2205_v45  ;;  %v4179_v51 = vmul.f32 0.5, %v4078_v43  ;;  %v2074_v37 = vmul.f32 0.796875, %v2058_v46 }
 0x1e7   : > { %v2018_v59 = vunpack.c.l.bf16 %v2002_v47  ;;  %v2204_v29 = vadd.f32 1.0, %v2188_v48  ;;  %2900 = vtanh.f32 %v2112_v15  ;;  %v2019_v57 = vunpack.c.l.bf16 %v2003_v28 }
 0x1e8   : > { %v1893_v44 = vmul.f32 %v4103_v38, %v4103_v38  ;;  %v2198_v27 = vunpack.c.l.bf16 %v2150_v8  ;;  %v2199_v20 = vunpack.c.l.bf16 %v2151_v40  ;;  %v1908_v63 = vpack.c.bf16 %v1892_v5, %v1892_v5 }
 0x1e9   : > { %v2034_v62 = vadd.f32 %v2018_v59, %v4066_v58  ;;  %v2091_v17 = vpack.c.bf16 %v2075_v39, %v2075_v39  ;;  %v4185_v30 = vmul.f32 0.5, %v4084_v13  ;;  %v2035_v43 = vadd.f32 %v2019_v57, %v4060_v3 }
 0x1ea   : > { %v1909_v14 = vpack.c.bf16 %v1893_v44, %v1893_v44  ;;  %v2899_v11 = vpop.eup %2898  ;;  %v2171_v2 = vpack.c.bf16 %v4179_v51, %v4179_v51  ;;  %v2090_v4 = vpack.c.bf16 %v2074_v37, %v2074_v37  ;;  %v1924_v53 = vunpack.c.l.bf16 %v1908_v63 }
 0x1eb   : > { %v2050_v35 = vpack.c.bf16 %v2034_v62, %v2034_v62  ;;  %v2253_v31 = vunpack.c.l.bf16 %v2221_v50  ;;  %v2220_v32 = vpack.c.bf16 %v2204_v29, %v2204_v29  ;;  %v2051_v24 = vpack.c.bf16 %v2035_v43, %v2035_v43 }
 0x1ec   : > { %v1925_v7 = vunpack.c.l.bf16 %v1909_v14  ;;  %v2214_v10 = vadd.f32 1.0, %v2198_v27  ;;  %v2215_v0 = vadd.f32 1.0, %v2199_v20  ;;  %v1940_v13 = vmul.f32 %v1924_v53, %v4109_v19 }
 0x1ed   : > { %v2066_v42 = vunpack.c.l.bf16 %v2050_v35  ;;  %v2901_v52 = vpop.eup %2900  ;;  %v2145_v18 = vpack.c.bf16 %v2899_v11, %v2899_v11  ;;  %v2107_v60 = vunpack.c.l.bf16 %v2091_v17  ;;  %v2067_v16 = vunpack.c.l.bf16 %v2051_v24  ;;  %v2410_v35 = vld [vmem:[%s4356_s7] sm:$0xf] }
 0x1ee   : > { %v1998_v12 = vpack.c.bf16 %v1982_v9, %v1982_v9  ;;  %v2106_v23 = vunpack.c.l.bf16 %v2090_v4  ;;  %v1941_v45 = vmul.f32 %v1925_v7, %v4103_v38  ;;  %v1956_v46 = vpack.c.bf16 %v1940_v13, %v1940_v13 }
 0x1ef   : > { %v2082_v26 = vmul.f32 0.796875, %v2066_v42  ;;  %v2269_v56 = vmul.f32 %v2253_v31, %v4146_v33  ;;  %v2252_v48 = vunpack.c.l.bf16 %v2220_v32  ;;  %v2083_v15 = vmul.f32 0.796875, %v2067_v16 }
 0x1f0   : > { %v2047_v21 = vpack.c.bf16 %v2031_v6, %v2031_v6  ;;  %v2231_v8 = vpack.c.bf16 %v2215_v0, %v2215_v0  ;;  %v2144_v40 = vpack.c.bf16 %v2901_v52, %v2901_v52  ;;  %v1957_v39 = vpack.c.bf16 %v1941_v45, %v1941_v45 }
 0x1f1   : > { %v2098_v47 = vpack.c.bf16 %v2082_v26, %v2082_v26  ;;  %2902 = vtanh.f32 %v2107_v60  ;;  %v2099_v28 = vpack.c.bf16 %v2083_v15, %v2083_v15  ;;  %v2014_v5 = vunpack.c.l.bf16 %v1998_v12 }
 0x1f2   : > { %v1972_v50 = vunpack.c.l.bf16 %v1956_v46  ;;  %v2230_v51 = vpack.c.bf16 %v2214_v10, %v2214_v10  ;;  %v2193_v9 = vunpack.c.l.bf16 %v2145_v18  ;;  %2904 = vtanh.f32 %v2106_v23 }
 0x1f3   : > { %v2114_v37 = vunpack.c.l.bf16 %v2098_v47  ;;  %v2268_v59 = vmul.f32 %v2252_v48, %v4148_v55  ;;  %v2115_v29 = vunpack.c.l.bf16 %v2099_v28  ;;  %v2063_v57 = vunpack.c.l.bf16 %v2047_v21 }
 0x1f4   : > { %v1973_v33 = vunpack.c.l.bf16 %v1957_v39  ;;  %v2285_v44 = vpack.c.bf16 %v2269_v56, %v2269_v56  ;;  %v2263_v27 = vunpack.c.l.bf16 %v2231_v8  ;;  %v2170_v6 = vpack.c.bf16 %v4185_v30, %v4185_v30 }
 0x1f5   : > { %2906 = vtanh.f32 %v2114_v37  ;;  %v2192_v20 = vunpack.c.l.bf16 %v2144_v40  ;;  %v2030_v62 = vadd.f32 %v2014_v5, %v4086_v25  ;;  %v1988_v63 = vmul.f32 0.044677734, %v1972_v50 }
 0x1f6   : > { %2908 = vtanh.f32 %v2115_v29  ;;  %v2262_v17 = vunpack.c.l.bf16 %v2230_v51  ;;  %v2209_v43 = vadd.f32 1.0, %v2193_v9  ;;  %v1989_v14 = vmul.f32 0.044677734, %v1973_v33 }
 0x1f7   : > { %v4199_v55 = vmul.f32 %v4114_v36, %v4114_v36  ;;  %v2903_v11 = vpop.eup %2902  ;;  %v2284_v4 = vpack.c.bf16 %v2268_v59, %v2268_v59  ;;  %v2079_v30 = vmul.f32 0.796875, %v2063_v57  ;;  %v1912_v53 = vpack.c.bf16 %v4169_v54, %v4169_v54 }
 0x1f8   : > { %v2905_v31 = vpop.eup %2904  ;;  %v2279_v32 = vmul.f32 %v2263_v27, %v4165_v22  ;;  %v2482_v24 = vsel %vm2480_vm12, %v2410_v35, 0  ;;  %v4207_v7 = vunpack.c.l.bf16 %v2171_v2  ;;  %v2004_v10 = vpack.c.bf16 %v1988_v63, %v1988_v63 }
 0x1f9   : > { %v4209_v0 = vunpack.c.l.bf16 %v2285_v44  ;;  %v2208_v42 = vadd.f32 1.0, %v2192_v20  ;;  %2805 = vmatpush.bf16.msra.mxu3 %v2482_v24  ;;  %v4211_v13 = vunpack.c.l.bf16 %v2170_v6  ;;  %2491 = vmatpush.bf16.msrb.mxu2 %v2482_v24  ;;  %v2046_v52 = vpack.c.bf16 %v2030_v62, %v2030_v62 }
 0x1fa   : > { %v4214_v60 = vmul.f32 %v2262_v17, %v4161_v34  ;;  %v2225_v54 = vpack.c.bf16 %v2209_v43, %v2209_v43  ;;  %v2162_v16 = vmul.f32 0.5, %v4066_v58  ;;  %v2005_v22 = vpack.c.bf16 %v1989_v14, %v1989_v14 }
 0x1fb   : > { %v2907_v18 = vpop.eup %2906  ;;  %v4217_v2 = vunpack.c.l.bf16 %v2284_v4  ;;  %v2139_v23 = vpack.c.bf16 %v2903_v11, %v2903_v11  ;;  %v2138_v26 = vpack.c.bf16 %v2905_v31, %v2905_v31  ;;  %v2095_v45 = vpack.c.bf16 %v2079_v30, %v2079_v30 }
 0x1fc   : > { %v2909_v12 = vpop.eup %2908  ;;  %v2295_v46 = vpack.c.bf16 %v2279_v32, %v2279_v32  ;;  %v2146_v56 = vpack.c.bf16 %v2907_v18, %v2907_v18  ;;  %v2020_v15 = vunpack.c.l.bf16 %v2004_v10  ;;  %v2224_v21 = vpack.c.bf16 %v2208_v42, %v2208_v42 }
 0x1fd   : > { %v2147_v48 = vpack.c.bf16 %v2909_v12, %v2909_v12  ;;  %v4220_v8 = vmul.f32 0.5, %v4060_v3  ;;  %v2062_v34 = vunpack.c.l.bf16 %v2046_v52  ;;  %v2021_v40 = vunpack.c.l.bf16 %v2005_v22 }
 0x1fe   : > { %v2294_v58 = vpack.c.bf16 %v4214_v60, %v4214_v60  ;;  %v2257_v47 = vunpack.c.l.bf16 %v2225_v54  ;;  %v2178_v39 = vpack.c.bf16 %v2162_v16, %v2162_v16  ;;  %v2036_v28 = vadd.f32 %v2020_v15, %v4109_v19 }
 0x1ff   : > { %v2187_v5 = vunpack.c.l.bf16 %v2139_v23  ;;  %v2186_v50 = vunpack.c.l.bf16 %v2138_v26  ;;  %v2111_v51 = vunpack.c.l.bf16 %v2095_v45  ;;  %v2037_v9 = vadd.f32 %v2021_v40, %v4103_v38  ;;  %v2870_v17 = vpop.permute.xlu2 %2869 }
 0x200   : > { %v4226_v37 = vunpack.c.l.bf16 %v2295_v46  ;;  %v2194_v59 = vunpack.c.l.bf16 %v2146_v56  ;;  %v2195_v29 = vunpack.c.l.bf16 %v2147_v48  ;;  %v2052_v3 = vpack.c.bf16 %v2036_v28, %v2036_v28 }
 0x201   : > { %v2256_v57 = vunpack.c.l.bf16 %v2224_v21  ;;  %v2179_v33 = vpack.c.bf16 %v4220_v8, %v4220_v8  ;;  %v2078_v44 = vmul.f32 0.796875, %v2062_v34  ;;  %v2053_v27 = vpack.c.bf16 %v2037_v9, %v2037_v9 }
 0x202   : > { %v2273_v6 = vmul.f32 %v2257_v47, %v4171_v1  ;;  %v2242_v20 = vunpack.c.l.bf16 %v2178_v39  ;;  %v2068_v62 = vunpack.c.l.bf16 %v2052_v3  ;;  %v1913_v63 = vpack.c.bf16 %v4199_v55, %v4199_v55 }
 0x203   : > { %v2203_v43 = vadd.f32 1.0, %v2187_v5  ;;  %v2202_v14 = vadd.f32 1.0, %v2186_v50  ;;  %2910 = vtanh.f32 %v2111_v51  ;;  %v2069_v11 = vunpack.c.l.bf16 %v2053_v27 }
 0x204   : > { %v2210_v4 = vadd.f32 1.0, %v2194_v59  ;;  %v2211_v35 = vadd.f32 1.0, %v2195_v29  ;;  %v2084_v30 = vmul.f32 0.796875, %v2068_v62  ;;  %v1928_v31 = vunpack.c.l.bf16 %v1912_v53 }
 0x205   : > { %v2272_v32 = vmul.f32 %v2256_v57, %v4173_v49  ;;  %v2094_v24 = vpack.c.bf16 %v2078_v44, %v2078_v44  ;;  %v2085_v10 = vmul.f32 0.796875, %v2069_v11  ;;  %v1929_v42 = vunpack.c.l.bf16 %v1913_v63 }
 0x206   : > { %v2872_v1 = vunpack.i.h.bf16 %v2870_v17  ;;  %v2871_v52 = vunpack.i.l.bf16 %v2870_v17  ;;  %v2100_v18 = vpack.c.bf16 %v2084_v30, %v2084_v30  ;;  %v1944_v54 = vmul.f32 %v1928_v31, %v4116_v61 }
 0x207   : > { %v2219_v55 = vpack.c.bf16 %v2203_v43, %v2203_v43  ;;  %v2218_v16 = vpack.c.bf16 %v2202_v14, %v2202_v14  ;;  %v2101_v22 = vpack.c.bf16 %v2085_v10, %v2085_v10  ;;  %v1945_v12 = vmul.f32 %v1929_v42, %v4114_v36 }
 0x208   : > { %v2226_v23 = vpack.c.bf16 %v2210_v4, %v2210_v4  ;;  %v2227_v26 = vpack.c.bf16 %v2211_v35, %v2211_v35  ;;  %v2116_v45 = vunpack.c.l.bf16 %v2100_v18  ;;  %v1960_v46 = vpack.c.bf16 %v1944_v54, %v1944_v54 }
 0x209   : > { %v4236_v53 = vpop.eup %2910  ;;  %v2289_v49 = vpack.c.bf16 %v2273_v6, %v2273_v6  ;;  %v2288_v56 = vpack.c.bf16 %v2272_v32, %v2272_v32  ;;  %v2117_v48 = vunpack.c.l.bf16 %v2101_v22  ;;  %v1961_v15 = vpack.c.bf16 %v1945_v12, %v1945_v12 }
 0x20a   : > { %v2381_v21 = vmul.f32 %v2872_v1, %v4209_v0  ;;  %v2380_v8 = vmul.f32 %v2871_v52, %v4217_v2  ;;  %2912 = vtanh.f32 %v2116_v45  ;;  %v1976_v34 = vunpack.c.l.bf16 %v1960_v46 }
 0x20b   : > { %v2251_v40 = vunpack.c.l.bf16 %v2219_v55  ;;  %v2110_v47 = vunpack.c.l.bf16 %v2094_v24  ;;  %2914 = vtanh.f32 %v2117_v48  ;;  %v1977_v39 = vunpack.c.l.bf16 %v1961_v15 }
 0x20c   : > { %v2250_v28 = vunpack.c.l.bf16 %v2218_v16  ;;  %v2258_v5 = vunpack.c.l.bf16 %v2226_v23  ;;  %v2259_v50 = vunpack.c.l.bf16 %v2227_v26  ;;  %v1992_v51 = vmul.f32 0.044677734, %v1976_v34 }
 0x20d   : > { %v2305_v9 = vunpack.c.l.bf16 %v2289_v49  ;;  %v2243_v59 = vunpack.c.l.bf16 %v2179_v33  ;;  %v4241_v29 = vmul.f32 0.5, %v4109_v19  ;;  %v1993_v3 = vmul.f32 0.044677734, %v1977_v39 }
 0x20e   : > { %v2397_v57 = vpack.c.bf16 %v2381_v21, %v2381_v21  ;;  %v2396_v0 = vpack.c.bf16 %v2380_v8, %v2380_v8  ;;  %v2304_v44 = vunpack.c.l.bf16 %v2288_v56  ;;  %v2008_v2 = vpack.c.bf16 %v1992_v51, %v1992_v51 }
 0x20f   : > { %v4244_v27 = vmul.f32 %v2251_v40, %v4207_v7  ;;  %v2143_v6 = vpack.c.bf16 %v4236_v53, %v4236_v53  ;;  %2916 = vtanh.f32 %v2110_v47  ;;  %v2009_v62 = vpack.c.bf16 %v1993_v3, %v1993_v3 }
 0x210   : > { %v2913_v63 = vpop.eup %2912  ;;  %v2266_v33 = vmul.f32 %v2250_v28, %v4211_v13  ;;  %v2274_v43 = vmul.f32 %v2258_v5, %v2242_v20  ;;  %v2275_v19 = vmul.f32 %v2259_v50, %v2243_v59  ;;  %v2024_v14 = vunpack.c.l.bf16 %v2008_v2  ;;  %v2875_v20 = vpop.permute.xlu2 %2874 }
 0x211   : > { %v2915_v11 = vpop.eup %2914  ;;  %v2148_v30 = vpack.c.bf16 %v2913_v63, %v2913_v63  ;;  %v2025_v31 = vunpack.c.l.bf16 %v2009_v62  ;;  %v4249_v32 = vunpack.c.l.b16 %v2397_v57  ;;  %v4251_v7 = vunpack.c.l.b16 %v2396_v0 }
 0x212   : > { %v2149_v24 = vpack.c.bf16 %v2915_v11, %v2915_v11  ;;  %v2040_v10 = vadd.f32 %v2024_v14, %v4116_v61  ;;  %v2290_v18 = vpack.c.bf16 %v2274_v43, %v2274_v43  ;;  %v2291_v54 = vpack.c.bf16 %v2275_v19, %v2275_v19 }
 0x213   : > { %v2196_v52 = vunpack.c.l.bf16 %v2148_v30  ;;  %v2041_v13 = vadd.f32 %v2025_v31, %v4114_v36  ;;  %v2283_v26 = vpack.c.bf16 %v4244_v27, %v4244_v27  ;;  %v2877_v48 = vunpack.i.h.bf16 %v2875_v20 }
 0x214   : > { %v2197_v55 = vunpack.c.l.bf16 %v2149_v24  ;;  %v2056_v16 = vpack.c.bf16 %v2040_v10, %v2040_v10  ;;  %v2876_v34 = vunpack.i.l.bf16 %v2875_v20  ;;  %v2306_v40 = vunpack.c.l.bf16 %v2290_v18 }
 0x215   : > { %v2917_v22 = vpop.eup %2916  ;;  %v2057_v45 = vpack.c.bf16 %v2041_v13, %v2041_v13  ;;  %v2212_v46 = vadd.f32 1.0, %v2196_v52  ;;  %v2307_v47 = vunpack.c.l.bf16 %v2291_v54  ;;  %v2165_v28 = vmul.f32 0.5, %v4103_v38 }
 0x216   : > { %v2213_v49 = vadd.f32 1.0, %v2197_v55  ;;  %v2072_v56 = vunpack.c.l.bf16 %v2056_v16  ;;  %v2282_v59 = vpack.c.bf16 %v2266_v33, %v2266_v33  ;;  %v2142_v62 = vpack.c.bf16 %v2917_v22, %v2917_v22 }
 0x217   : > { %v2073_v8 = vunpack.c.l.bf16 %v2057_v45  ;;  %v2228_v3 = vpack.c.bf16 %v2212_v46, %v2212_v46  ;;  %v2391_v63 = vmul.f32 %v2877_v48, %v4226_v37  ;;  %v2180_v38 = vpack.c.bf16 %v4241_v29, %v4241_v29 }
 0x218   : > { %v2229_v57 = vpack.c.bf16 %v2213_v49, %v2213_v49  ;;  %v2448_v33 = vpack.c.b16 %v4249_v32, %v4251_v7  ;;  %v2299_v19 = vunpack.c.l.bf16 %v2283_v26  ;;  %v2191_v60 = vunpack.c.l.bf16 %v2143_v6 }
 0x219   : > { %v2089_v0 = vmul.f32 0.796875, %v2073_v8  ;;  %v2298_v11 = vunpack.c.l.bf16 %v2282_v59  ;;  %v2407_v10 = vpack.c.bf16 %v2391_v63, %v2391_v63 }
 0x21a   : > { %v2207_v45 = vadd.f32 1.0, %v2191_v60 }
 0x21b   : > { %v2105_v30 = vpack.c.bf16 %v2089_v0, %v2089_v0  ;;  %v4270_v26 = vunpack.c.l.b16 %v2407_v10 }
 0x21d   : > { %v2121_v55 = vunpack.c.l.bf16 %v2105_v30 }
 0x21e   : > { %v2850_v17 = vpop.permute.xlu0 %2849 }
 0x21f   : > { %v2852_v4 = vunpack.i.h.bf16 %v2850_v17  ;;  %v2851_v35 = vunpack.i.l.bf16 %v2850_v17  ;;  %v2181_v17 = vpack.c.bf16 %v2165_v28, %v2165_v28  ;;  %v2223_v28 = vpack.c.bf16 %v2207_v45, %v2207_v45 }
 0x221   : > { %v2385_v42 = vmul.f32 %v2852_v4, %v2305_v9  ;;  %v2384_v1 = vmul.f32 %v2851_v35, %v2304_v44  ;;  %v2088_v9 = vmul.f32 0.796875, %v2072_v56  ;;  %v2310_v44 = vunpack.c.l.bf16 %v2294_v58 }
 0x222   : > { %v2260_v4 = vunpack.c.l.bf16 %v2228_v3  ;;  %v2261_v35 = vunpack.c.l.bf16 %v2229_v57  ;;  %v2245_v52 = vunpack.c.l.bf16 %v2181_v17 }
 0x223   : > { %v2401_v12 = vpack.c.bf16 %v2385_v42, %v2385_v42  ;;  %v2400_v23 = vpack.c.bf16 %v2384_v1, %v2384_v1  ;;  %v2390_v43 = vmul.f32 %v2876_v34, %v2310_v44  ;;  %v2104_v58 = vpack.c.bf16 %v2088_v9, %v2088_v9 }
 0x224   : > { %v2190_v42 = vunpack.c.l.bf16 %v2142_v62  ;;  %v2244_v1 = vunpack.c.l.bf16 %v2180_v38  ;;  %v2277_v6 = vmul.f32 %v2261_v35, %v2245_v52  ;;  %v2255_v44 = vunpack.c.l.bf16 %v2223_v28 }
 0x225   : > { %v2438_v15 = vunpack.c.l.b16 %v2401_v12  ;;  %v2437_v21 = vunpack.c.l.b16 %v2400_v23  ;;  %v2406_v13 = vpack.c.bf16 %v2390_v43, %v2390_v43  ;;  %v2120_v54 = vunpack.c.l.bf16 %v2104_v58 }
 0x226   : > { %v2855_v39 = vpop.permute.xlu0 %2854  ;;  %v2276_v53 = vmul.f32 %v2260_v4, %v2244_v1  ;;  %v2206_v46 = vadd.f32 1.0, %v2190_v42 }
 0x227   : > { %v2450_v5 = vpack.c.b16 %v2438_v15, %v2437_v21  ;;  %v2857_v50 = vunpack.i.h.bf16 %v2855_v39  ;;  %v2856_v51 = vunpack.i.l.bf16 %v2855_v39  ;;  %v4272_v49 = vunpack.c.l.b16 %v2406_v13 }
 0x228   : > { %2918 = vtanh.f32 %v2120_v54  ;;  %v2159_v15 = vmul.f32 0.5, %v4091_v41  ;;  %v2158_v21 = vmul.f32 0.5, %v4086_v25  ;;  %v2293_v39 = vpack.c.bf16 %v2277_v6, %v2277_v6 }
 0x229   : > { %2779 = vmatmul.msk.bf16.vlgmr.msra.gmra.mxu3 %vm2455_vm13, %v2450_v5  ;;  %v2387_v2 = vmul.f32 %v2857_v50, %v2307_v47  ;;  %v2386_v27 = vmul.f32 %v2856_v51, %v2306_v40  ;;  %2920 = vtanh.f32 %v2121_v55  ;;  %v2292_v47 = vpack.c.bf16 %v2276_v53, %v2276_v53 }
 0x22a   : > { %v2222_v5 = vpack.c.bf16 %v2206_v46, %v2206_v46  ;;  %v2453_v9 = vpack.c.b16 %v4270_v26, %v4272_v49  ;;  %v2175_v59 = vpack.c.bf16 %v2159_v15, %v2159_v15  ;;  %v2174_v41 = vpack.c.bf16 %v2158_v21, %v2158_v21 }
 0x22b   : > { %v2403_v24 = vpack.c.bf16 %v2387_v2, %v2387_v2  ;;  %v2402_v29 = vpack.c.bf16 %v2386_v27, %v2386_v27  ;;  %v2308_v25 = vunpack.c.l.bf16 %v2292_v47  ;;  %v2309_v57 = vunpack.c.l.bf16 %v2293_v39 }
 0x22c   : > { %v2254_v2 = vunpack.c.l.bf16 %v2222_v5  ;;  %v2239_v63 = vunpack.c.l.bf16 %v2175_v59  ;;  %v2238_v38 = vunpack.c.l.bf16 %v2174_v41 }
 0x22d   : > { %v2860_v14 = vpop.permute.xlu1 %2859  ;;  %v2440_v12 = vunpack.c.l.b16 %v2403_v24  ;;  %v2439_v23 = vunpack.c.l.b16 %v2402_v29 }
 0x22e   : > { %v2862_v37 = vunpack.i.h.bf16 %v2860_v14  ;;  %v2861_v31 = vunpack.i.l.bf16 %v2860_v14  ;;  %v2919_v3 = vpop.eup %2918  ;;  %v2270_v60 = vmul.f32 %v2254_v2, %v2238_v38  ;;  %v2880_v30 = vpop.permute.xlu0 %2879 }
 0x22f   : > { %v2451_v40 = vpack.c.b16 %v2440_v12, %v2439_v23  ;;  %v2921_v0 = vpop.eup %2920  ;;  %v2152_v17 = vpack.c.bf16 %v2919_v3, %v2919_v3  ;;  %v2882_v29 = vunpack.i.h.bf16 %v2880_v30  ;;  %v2881_v10 = vunpack.i.l.bf16 %v2880_v30 }
 0x230   : > { %v2379_v20 = vmul.f32 %v2862_v37, %v2299_v19  ;;  %v2378_v18 = vmul.f32 %v2861_v31, %v2298_v11  ;;  %v2153_v43 = vpack.c.bf16 %v2921_v0, %v2921_v0  ;;  %v2271_v19 = vmul.f32 %v2255_v44, %v2239_v63 }
 0x231   : > { %v2200_v11 = vunpack.c.l.bf16 %v2152_v17  ;;  %v2286_v37 = vpack.c.bf16 %v2270_v60, %v2270_v60 }
 0x232   : > { %v2395_v16 = vpack.c.bf16 %v2379_v20, %v2379_v20  ;;  %v2394_v22 = vpack.c.bf16 %v2378_v18, %v2378_v18  ;;  %v2201_v4 = vunpack.c.l.bf16 %v2153_v43  ;;  %v2287_v35 = vpack.c.bf16 %v2271_v19, %v2271_v19 }
 0x233   : > { %v2216_v42 = vadd.f32 1.0, %v2200_v11  ;;  %v2302_v13 = vunpack.c.l.bf16 %v2286_v37  ;;  %v2168_v20 = vmul.f32 0.5, %v4116_v61  ;;  %v2169_v18 = vmul.f32 0.5, %v4114_v36 }
 0x234   : > { %v2432_v56 = vunpack.c.l.b16 %v2395_v16  ;;  %v2431_v48 = vunpack.c.l.b16 %v2394_v22  ;;  %v2217_v1 = vadd.f32 1.0, %v2201_v4  ;;  %v2303_v52 = vunpack.c.l.bf16 %v2287_v35 }
 0x235   : > { %v2865_v8 = vpop.permute.xlu1 %2864  ;;  %v2382_v6 = vmul.f32 %v2881_v10, %v2302_v13  ;;  %v2232_v55 = vpack.c.bf16 %v2216_v42, %v2216_v42  ;;  %v2184_v22 = vpack.c.bf16 %v2168_v20, %v2168_v20  ;;  %v2185_v12 = vpack.c.bf16 %v2169_v18, %v2169_v18 }
 0x236   : > { %v2447_v34 = vpack.c.b16 %v2432_v56, %v2431_v48  ;;  %v2867_v50 = vunpack.i.h.bf16 %v2865_v8  ;;  %v2866_v51 = vunpack.i.l.bf16 %v2865_v8  ;;  %v2383_v53 = vmul.f32 %v2882_v29, %v2303_v52 }
 0x237   : > { %v2233_v16 = vpack.c.bf16 %v2217_v1, %v2217_v1  ;;  %v2398_v45 = vpack.c.bf16 %v2382_v6, %v2382_v6  ;;  %v2264_v46 = vunpack.c.l.bf16 %v2232_v55  ;;  %v2248_v56 = vunpack.c.l.bf16 %v2184_v22 }
 0x238   : > { %2776 = vmatmul.msk.bf16.vlgmr.msrb.gmra.mxu2 %vm2455_vm13, %v2447_v34  ;;  %v2389_v27 = vmul.f32 %v2867_v50, %v2309_v57  ;;  %v2388_v62 = vmul.f32 %v2866_v51, %v2308_v25  ;;  %v2399_v23 = vpack.c.bf16 %v2383_v53, %v2383_v53  ;;  %v2249_v36 = vunpack.c.l.bf16 %v2185_v12  ;;  %v2889_v57 = vld [vmem:[%s4357_s8] ss:$0 sm:$0xff] }
 0x239   : > { %2780 = vmatmul.msk.bf16.gmra.mxu3 %vm2455_vm13, %v2451_v40  ;;  %v2265_v61 = vunpack.c.l.bf16 %v2233_v16  ;;  %v2435_v15 = vunpack.c.l.b16 %v2398_v45  ;;  %v2280_v32 = vmul.f32 %v2264_v46, %v2248_v56 }
 0x23a   : > { %v2405_v58 = vpack.c.bf16 %v2389_v27, %v2389_v27  ;;  %v2404_v14 = vpack.c.bf16 %v2388_v62, %v2388_v62  ;;  %v2436_v48 = vunpack.c.l.b16 %v2399_v23 }
 0x23b   : > { %v2281_v7 = vmul.f32 %v2265_v61, %v2249_v36  ;;  %v2296_v21 = vpack.c.bf16 %v2280_v32, %v2280_v32 }
 0x23c   : > { %v2442_v31 = vunpack.c.l.b16 %v2405_v58  ;;  %v2441_v24 = vunpack.c.l.b16 %v2404_v14  ;;  %v2449_v34 = vpack.c.b16 %v2436_v48, %v2435_v15 }
 0x23d   : > { %v2297_v8 = vpack.c.bf16 %v2281_v7, %v2281_v7  ;;  %v2312_v39 = vunpack.c.l.bf16 %v2296_v21 }
 0x23e   : > { %v2452_v54 = vpack.c.b16 %v2442_v31, %v2441_v24 }
 0x23f   : > { %v2313_v28 = vunpack.c.l.bf16 %v2297_v8 }
 0x248   : > { %2777 = vmatmul.msk.bf16.gmra.mxu2 %vm2455_vm13, %v2448_v33  ;;  %v2885_v33 = vpop.permute.xlu1 %2884 }
 0x249   : > { %2781 = vmatmul.msk.bf16.gmra.mxu3 %vm2455_vm13, %v2452_v54  ;;  %v2887_v40 = vunpack.i.h.bf16 %v2885_v33  ;;  %v2886_v47 = vunpack.i.l.bf16 %v2885_v33 }
 0x24b   : > { %v2393_v5 = vmul.f32 %v2887_v40, %v2313_v28  ;;  %v2392_v50 = vmul.f32 %v2886_v47, %v2312_v39 }
 0x24d   : > { %v2409_v51 = vpack.c.bf16 %v2393_v5, %v2393_v5  ;;  %v2408_v59 = vpack.c.bf16 %v2392_v50, %v2392_v50 }
 0x24f   : > { %v2446_v3 = vunpack.c.l.b16 %v2409_v51  ;;  %v2445_v41 = vunpack.c.l.b16 %v2408_v59 }
 0x251   : > { %v2454_v25 = vpack.c.b16 %v2446_v3, %v2445_v41 }
 0x258   : > { %2778 = vmatmul.msk.bf16.gmra.mxu2 %vm2455_vm13, %v2449_v34 }
 0x259   : > { %2782 = vmatmul.msk.bf16.gmra.mxu3 %vm2455_vm13, %v2453_v9 }
 0x269   : > { %2783 = vmatmul.msk.bf16.gmra.mxu3 %vm2455_vm13, %v2454_v25 }
 0x2ac   : > { %v2508_v26 = vpop.f32.mrf.mxu3 }
 0x2ad   : > { %v2509_v49 = vadd.f32 %v2889_v57, %v2508_v26 }
 0x2af   : > { %2539 = vst.msk [vmem:[%s4300_s26 + $0x30] sm:$0xff] %vm565_vm1, %v2509_v49 }
 0x2b4   : > { %v2510_v9 = vpop.f32.mrf.mxu3 }
 0x2b5   : > { %v2511_v0 = vadd.f32 %v2889_v57, %v2510_v9 }
 0x2b7   : > { %2540 = vst.msk [vmem:[%s4300_s26 + $0x38] sm:$0xff] %vm565_vm1, %v2511_v0 }
 0x2bb   : > { %v2493_v44 = vpop.f32.mrf.mxu2 }
 0x2bc   : > { %v2494_v2 = vadd.f32 %v2889_v57, %v2493_v44  ;;  %v2513_v27 = vpop.f32.mrf.mxu3 }
 0x2bd   : > { %v2514_v62 = vadd.f32 %v2889_v57, %v2513_v27 }
 0x2be   : > { %2533 = vst.msk [vmem:[%s4300_s26] sm:$0xff] %vm565_vm1, %v2494_v2 }
 0x2bf   : > { %2541 = vst.msk [vmem:[%s4300_s26 + $0x40] sm:$0xff] %vm565_vm1, %v2514_v62 }
 0x2c3   : > { %v2495_v63 = vpop.f32.mrf.mxu2 }
 0x2c4   : > { %v2496_v38 = vadd.f32 %v2889_v57, %v2495_v63  ;;  %v2515_v17 = vpop.f32.mrf.mxu3 }
 0x2c5   : > { %v2516_v43 = vadd.f32 %v2889_v57, %v2515_v17 }
 0x2c6   : > { %2534 = vst.msk [vmem:[%s4300_s26 + $0x8] sm:$0xff] %vm565_vm1, %v2496_v38 }
 0x2c7   : > { %2542 = vst.msk [vmem:[%s4300_s26 + $0x48] sm:$0xff] %vm565_vm1, %v2516_v43 }
 0x2cb   : > { %v2498_v19 = vpop.f32.mrf.mxu2 }
 0x2cc   : > { %v2499_v60 = vadd.f32 %v2889_v57, %v2498_v19  ;;  %v2518_v58 = vpop.f32.mrf.mxu3 }
 0x2cd   : > { %v2519_v14 = vadd.f32 %v2889_v57, %v2518_v58 }
 0x2ce   : > { %2535 = vst.msk [vmem:[%s4300_s26 + $0x10] sm:$0xff] %vm565_vm1, %v2499_v60 }
 0x2cf   : > { %2543 = vst.msk [vmem:[%s4300_s26 + $0x50] sm:$0xff] %vm565_vm1, %v2519_v14 }
 0x2d3   : > { %v2500_v11 = vpop.f32.mrf.mxu2 }
 0x2d4   : > { %v2501_v4 = vadd.f32 %v2889_v57, %v2500_v11  ;;  %v2520_v35 = vpop.f32.mrf.mxu3 }
 0x2d5   : > { %v2521_v30 = vadd.f32 %v2889_v57, %v2520_v35 }
 0x2d6   : > { %2536 = vst.msk [vmem:[%s4300_s26 + $0x18] sm:$0xff] %vm565_vm1, %v2501_v4 }
 0x2d7   : > { %2544 = vst.msk [vmem:[%s4300_s26 + $0x58] sm:$0xff] %vm565_vm1, %v2521_v30 }
 0x2db   : > { %v2503_v37 = vpop.f32.mrf.mxu2 }
 0x2dc   : > { %v2504_v31 = vadd.f32 %v2889_v57, %v2503_v37  ;;  %v2523_v24 = vpop.f32.mrf.mxu3 }
 0x2dd   : > { %v2524_v29 = vadd.f32 %v2889_v57, %v2523_v24 }
 0x2de   : > { %2537 = vst.msk [vmem:[%s4300_s26 + $0x20] sm:$0xff] %vm565_vm1, %v2504_v31 }
 0x2df   : > { %2545 = vst.msk [vmem:[%s4300_s26 + $0x60] sm:$0xff] %vm565_vm1, %v2524_v29 }
 0x2e3   : > { %v2505_v10 = vpop.f32.mrf.mxu2 }
 0x2e4   : > { %v2506_v42 = vadd.f32 %v2889_v57, %v2505_v10  ;;  %v2525_v1 = vpop.f32.mrf.mxu3 }
 0x2e5   : > { %v2526_v52 = vadd.f32 %v2889_v57, %v2525_v1 }
 0x2e6   : > { %2538 = vst.msk [vmem:[%s4300_s26 + $0x28] sm:$0xff] %vm565_vm1, %v2506_v42 }
 0x2e7   : > { %2546 = vst.msk [vmem:[%s4300_s26 + $0x68] sm:$0xff] %vm565_vm1, %v2526_v52 }
 0x2ec   : > { %v2528_v13 = vpop.f32.mrf.mxu3 }
 0x2ed   : > { %v2529_v20 = vadd.f32 %v2889_v57, %v2528_v13 }
 0x2ef   : > { %2547 = vst.msk [vmem:[%s4300_s26 + $0x70] sm:$0xff] %vm565_vm1, %v2529_v20 }
 0x2f4   : > { %v2530_v18 = vpop.f32.mrf.mxu3 }
 0x2f5   : > { %v2531_v54 = vadd.f32 %v2889_v57, %v2530_v18 }
 0x2f7   : > { %2548 = vst.msk [vmem:[%s4300_s26 + $0x78] sm:$0xff] %vm565_vm1, %v2531_v54 }
 0x2f8 PF: > { %s19_s13 = sadd.s32 1, %s2961_s13   ;;  %s4465_s30 = smov %s2953_s11 }
 0x2f9   : > { %p16_p12 = scmp.ge.s32.totalorder %s19_s13, 6   ;;  %s4466_s10 = smov %s2957_s12 }
 0x2fa   : > { %s4467_s11 = smov %s4470_s14  ;;  %s4468_s12 = smov %s4474_s15 }
 0x2fb   :  { %18 = sbr.rel (!%p16_p12) target bundleno = 3 (0x3), region = 92 }

</bundles_post_ra>
